<compile_context>
chip_gen: v6e
topology: v6e:2x2x1
jax: 0.10.0
libtpu: 0.0.40
codegen_flags: <defaults>
</compile_context>

<pallas_src>
import functools

import jax
import jax.numpy as jnp
from jax.experimental import pallas as pl
from jax.experimental.pallas import tpu as pltpu


def _hardswish(x):
    # x * relu6(x + 3) / 6
    return x * jnp.clip(x + 3.0, 0.0, 6.0) * (1.0 / 6.0)


# ----------------------------- fused dw-conv + SE + pw-conv kernel -----------------------------

def _lc_block_kernel(*refs, ksize, stride, pad, in_h, in_w, out_h, out_w, use_se):
    if use_se:
        (x_ref, w_dw_ref, b_dw_ref, w1_ref, b1_ref, w2_ref, b2_ref,
         w_pw_ref, b_pw_ref, o_ref, xp_ref) = refs
    else:
        (x_ref, w_dw_ref, b_dw_ref, w_pw_ref, b_pw_ref, o_ref, xp_ref) = refs

    # ---- zero-pad the input into a VMEM scratch (no HBM pad pass) ----
    # The border is re-zeroed every grid step: on megacore parts the batch grid is sharded
    # across TensorCores, so a "zero only on program_id==0" init would leave one core's
    # scratch border uninitialized.
    if pad > 0:
        xp_ref[...] = jnp.zeros_like(xp_ref)
    xp_ref[pad:pad + in_h, pad:pad + in_w, :] = x_ref[0]
    xv = xp_ref[...]                                              # (Hp, Wp, C)

    # ---- depthwise KxK conv (+ folded BN + hardswish), strided taps, f32 accumulation ----
    def tap(kh, kw):
        patch = xv[kh:kh + stride * (out_h - 1) + 1:stride,
                   kw:kw + stride * (out_w - 1) + 1:stride, :]    # (out_h, out_w, C)
        return patch.astype(jnp.float32) * w_dw_ref[kh, kw, :].astype(jnp.float32)

    acc = tap(0, 0)                                               # init from first tap
    for kh in range(ksize):
        for kw in range(ksize):
            if kh == 0 and kw == 0:
                continue
            acc = acc + tap(kh, kw)
    y = _hardswish(acc + b_dw_ref[0, :].astype(jnp.float32))      # (out_h, out_w, C), f32
    # Merge the leading (spatial) dims; the minor/lane dim (C) is unchanged so this is a
    # layout-friendly reshape (out_w is sublane-aligned for typical feature-map widths).
    y = y.reshape(out_h * out_w, y.shape[-1])                     # (M, C)

    # ---- SE gate computed on the VMEM-resident y (no extra HBM pass) ----
    if use_se:
        pooled = jnp.mean(y, axis=0, keepdims=True)               # (1, C) == AdaptiveAvgPool2d(1)
        h1 = jnp.dot(pooled, w1_ref[...].astype(jnp.float32),
                     preferred_element_type=jnp.float32) + b1_ref[...]
        h1 = jnp.maximum(h1, 0.0)                                 # ReLU
        g = jnp.dot(h1, w2_ref[...].astype(jnp.float32),
                    preferred_element_type=jnp.float32) + b2_ref[...]
        # Exact SiLU; the gate is only (1, C) so an EUP approx reciprocal buys nothing here
        # and exact math keeps the kernel bit-faithful to the PyTorch reference.
        gate = g * (1.0 / (1.0 + jnp.exp(-g)))                    # (1, C)
        y = y * gate                                              # (M, C) * (1, C)

    # ---- pointwise 1x1 conv (+ folded BN + hardswish), transposed so the HBM store is
    #      lane-dense (last dim = Ho*Wo) and the result is already NCHW-flattened. ----
    y_mm = y.astype(w_pw_ref.dtype)                               # MXU operand dtype = activation dtype
    out_t = jnp.einsum('fc,mc->fm', w_pw_ref[...], y_mm,
                       preferred_element_type=jnp.float32)        # (F, M) on the MXU
    out_t = _hardswish(out_t + b_pw_ref[...])                     # b_pw is (F, 1), broadcast over lanes
    o_ref[0] = out_t.astype(o_ref.dtype)


# ----------------------------------------- wrapper -----------------------------------------

def lc_block_forward(x_nchw, params, *, dw_size, stride, use_se, eps=1e-5):
    """x_nchw: (N, C, H, W). Returns (N, F, Ho, Wo) matching PyTorch LC_Block (eval-mode BN)."""
    n, c, h, w = x_nchw.shape
    pad = (dw_size - 1) // 2
    out_h = (h + 2 * pad - dw_size) // stride + 1
    out_w = (w + 2 * pad - dw_size) // stride + 1
    m = out_h * out_w
    f = params["w_pw"].shape[0]
    dt = x_nchw.dtype

    # TODO(synk): keep the surrounding model NHWC end-to-end; this entry transpose is a full-tensor
    # HBM relayout done by XLA outside the kernel (the output side needs no transpose at all).
    x_nhwc = jnp.transpose(x_nchw, (0, 2, 3, 1))

    # Fold eval-mode BatchNorm into the conv weights / biases (wrapper-side glue, tiny tensors).
    scale_dw = params["bn_dw_gamma"] / jnp.sqrt(params["bn_dw_var"] + eps)
    w_dw = (jnp.transpose(params["w_dw"][:, 0, :, :], (1, 2, 0)) * scale_dw).astype(dt)             # (K, K, C)
    b_dw = ((params["bn_dw_beta"] - params["bn_dw_mean"] * scale_dw)[None, :]).astype(jnp.float32)  # (1, C)

    scale_pw = params["bn_pw_gamma"] / jnp.sqrt(params["bn_pw_var"] + eps)
    w_pw_t = (params["w_pw"][:, :, 0, 0] * scale_pw[:, None]).astype(dt)                            # (F, C)
    b_pw = ((params["bn_pw_beta"] - params["bn_pw_mean"] * scale_pw)[:, None]).astype(jnp.float32)  # (F, 1)

    in_specs = [
        pl.BlockSpec((1, h, w, c), lambda i: (i, 0, 0, 0)),
        pl.BlockSpec((dw_size, dw_size, c), lambda i: (0, 0, 0)),
        pl.BlockSpec((1, c), lambda i: (0, 0)),
    ]
    args = [x_nhwc, w_dw, b_dw]

    if use_se:
        cr = params["w_se1"].shape[0]
        w1 = jnp.transpose(params["w_se1"][:, :, 0, 0], (1, 0)).astype(jnp.float32)   # (C, Cr)
        b1 = params["b_se1"][None, :].astype(jnp.float32)                             # (1, Cr)
        w2 = jnp.transpose(params["w_se2"][:, :, 0, 0], (1, 0)).astype(jnp.float32)   # (Cr, C)
        b2 = params["b_se2"][None, :].astype(jnp.float32)                             # (1, C)
        in_specs += [
            pl.BlockSpec((c, cr), lambda i: (0, 0)),
            pl.BlockSpec((1, cr), lambda i: (0, 0)),
            pl.BlockSpec((cr, c), lambda i: (0, 0)),
            pl.BlockSpec((1, c), lambda i: (0, 0)),
        ]
        args += [w1, b1, w2, b2]

    in_specs += [
        pl.BlockSpec((f, c), lambda i: (0, 0)),
        pl.BlockSpec((f, 1), lambda i: (0, 0)),
    ]
    args += [w_pw_t, b_pw]

    kernel = functools.partial(
        _lc_block_kernel, ksize=dw_size, stride=stride, pad=pad,
        in_h=h, in_w=w, out_h=out_h, out_w=out_w, use_se=use_se)

    itemsize = jnp.dtype(dt).itemsize
    flops = 2 * n * m * c * (dw_size * dw_size + f)
    bytes_accessed = (n * h * w * c + n * f * m
                      + dw_size * dw_size * c + f * c) * itemsize

    # TODO(synk): for large H*W (or N==1 on multi-TensorCore chips) add a spatial row-block grid
    # axis with a (K-1)-row halo and a cross-block SE accumulator, and re-derive the VMEM budget
    # against v7x's 64 MiB; whole-image-per-step blocks are fine at these PP-LCNet sizes.
    out = pl.pallas_call(
        kernel,
        out_shape=jax.ShapeDtypeStruct((n, f, m), dt),
        grid=(n,),
        in_specs=in_specs,
        out_specs=pl.BlockSpec((1, f, m), lambda i: (i, 0, 0)),
        scratch_shapes=[pltpu.VMEM((h + 2 * pad, w + 2 * pad, c), dt)],
        compiler_params=pltpu.CompilerParams(dimension_semantics=("parallel",)),
        cost_estimate=pl.CostEstimate(
            flops=flops,
            transcendentals=(n * c if use_se else 0),
            bytes_accessed=bytes_accessed),
    )(*args)

    # (N, F, Ho*Wo) is already NCHW-flattened; this reshape is metadata-only (no HBM pass).
    return out.reshape(n, f, out_h, out_w)


# ------------------------------------------ reference ------------------------------------------

def lc_block_reference(x, params, *, dw_size, stride, use_se, eps=1e-5):
    c = x.shape[1]
    pad = (dw_size - 1) // 2

    def bn(z, g, b, m, v):
        return (z - m[None, :, None, None]) / jnp.sqrt(v[None, :, None, None] + eps) \
               * g[None, :, None, None] + b[None, :, None, None]

    def hswish(z):
        return z * jnp.clip(z + 3.0, 0.0, 6.0) / 6.0

    y = jax.lax.conv_general_dilated(
        x, params["w_dw"], window_strides=(stride, stride),
        padding=[(pad, pad), (pad, pad)],
        dimension_numbers=("NCHW", "OIHW", "NCHW"), feature_group_count=c)
    y = hswish(bn(y, params["bn_dw_gamma"], params["bn_dw_beta"],
                  params["bn_dw_mean"], params["bn_dw_var"]))
    if use_se:
        z = jnp.mean(y, axis=(2, 3))                                               # (N, C)
        h1 = jnp.maximum(z @ params["w_se1"][:, :, 0, 0].T + params["b_se1"], 0.0)
        h2 = h1 @ params["w_se2"][:, :, 0, 0].T + params["b_se2"]
        gate = h2 * jax.nn.sigmoid(h2)
        y = y * gate[:, :, None, None]
    out = jnp.einsum("nchw,fc->nfhw", y, params["w_pw"][:, :, 0, 0])
    out = hswish(bn(out, params["bn_pw_gamma"], params["bn_pw_beta"],
                    params["bn_pw_mean"], params["bn_pw_var"]))
    return out


if __name__ == "__main__":
    # LC_Block(num_channels=8, num_filters=16, stride=1, dw_size=3, use_se={True, False})
    N, C, H, W = 2, 8, 16, 16
    F = 16
    DW_SIZE, STRIDE = 3, 1
    CR = C // 4

    keys = jax.random.split(jax.random.PRNGKey(0), 16)
    x = jax.random.normal(keys[0], (N, C, H, W), jnp.float32)
    params = dict(
        # depthwise CBH
        w_dw=jax.random.normal(keys[1], (C, 1, DW_SIZE, DW_SIZE), jnp.float32) * 0.3,
        bn_dw_gamma=1.0 + 0.1 * jax.random.normal(keys[2], (C,), jnp.float32),
        bn_dw_beta=0.1 * jax.random.normal(keys[3], (C,), jnp.float32),
        bn_dw_mean=0.1 * jax.random.normal(keys[4], (C,), jnp.float32),
        bn_dw_var=jnp.abs(jax.random.normal(keys[5], (C,), jnp.float32)) + 0.5,
        # SE module
        w_se1=jax.random.normal(keys[6], (CR, C, 1, 1), jnp.float32) * 0.3,
        b_se1=0.1 * jax.random.normal(keys[7], (CR,), jnp.float32),
        w_se2=jax.random.normal(keys[8], (C, CR, 1, 1), jnp.float32) * 0.3,
        b_se2=0.1 * jax.random.normal(keys[9], (C,), jnp.float32),
        # pointwise CBH
        w_pw=jax.random.normal(keys[10], (F, C, 1, 1), jnp.float32) * 0.3,
        bn_pw_gamma=1.0 + 0.1 * jax.random.normal(keys[11], (F,), jnp.float32),
        bn_pw_beta=0.1 * jax.random.normal(keys[12], (F,), jnp.float32),
        bn_pw_mean=0.1 * jax.random.normal(keys[13], (F,), jnp.float32),
        bn_pw_var=jnp.abs(jax.random.normal(keys[14], (F,), jnp.float32)) + 0.5,
    )

    for use_se in (True, False):
        out = lc_block_forward(x, params, dw_size=DW_SIZE, stride=STRIDE, use_se=use_se)
        out = jax.block_until_ready(out)
        ref = lc_block_reference(x, params, dw_size=DW_SIZE, stride=STRIDE, use_se=use_se)
        assert out.shape == ref.shape == (N, F, H, W), (out.shape, ref.shape)
        err = float(jnp.max(jnp.abs(out - ref)))
        assert jnp.allclose(out, ref, atol=2e-4, rtol=2e-4), (use_se, err)

    print("KERNEL_OK")
</pallas_src>

<mosaic_0001>
module attributes {stable_mosaic.version = 11 : i64} {
  func.func @_lc_block_kernel(%arg0: i32, %arg1: memref<1x16x16x8xf32, #tpu.memory_space<vmem>>, %arg2: memref<3x3x8xf32, #tpu.memory_space<vmem>>, %arg3: memref<1x8xf32, #tpu.memory_space<vmem>>, %arg4: memref<8x2xf32, #tpu.memory_space<vmem>>, %arg5: memref<1x2xf32, #tpu.memory_space<vmem>>, %arg6: memref<2x8xf32, #tpu.memory_space<vmem>>, %arg7: memref<1x8xf32, #tpu.memory_space<vmem>>, %arg8: memref<16x8xf32, #tpu.memory_space<vmem>>, %arg9: memref<16x1xf32, #tpu.memory_space<vmem>>, %arg10: memref<1x16x256xf32, #tpu.memory_space<vmem>>, %arg11: memref<18x18x8xf32, #tpu.memory_space<vmem>>) attributes {dimension_semantics = [#tpu.dimension_semantics<parallel>], iteration_bounds = array<i64: 2>, scalar_prefetch = 0 : i64, scratch_operands = 1 : i64, tpu.core_type = #tpu.core_type<tc>, window_params = [{transform_indices = @transform_0, window_bounds = array<i64: 1, 16, 16, 8>}, {pipeline_mode = #tpu.pipeline_mode<synchronous>, transform_indices = @transform_1, window_bounds = array<i64: 3, 3, 8>}, {pipeline_mode = #tpu.pipeline_mode<synchronous>, transform_indices = @transform_2, window_bounds = array<i64: 1, 8>}, {pipeline_mode = #tpu.pipeline_mode<synchronous>, transform_indices = @transform_3, window_bounds = array<i64: 8, 2>}, {pipeline_mode = #tpu.pipeline_mode<synchronous>, transform_indices = @transform_4, window_bounds = array<i64: 1, 2>}, {pipeline_mode = #tpu.pipeline_mode<synchronous>, transform_indices = @transform_5, window_bounds = array<i64: 2, 8>}, {pipeline_mode = #tpu.pipeline_mode<synchronous>, transform_indices = @transform_6, window_bounds = array<i64: 1, 8>}, {pipeline_mode = #tpu.pipeline_mode<synchronous>, transform_indices = @transform_7, window_bounds = array<i64: 16, 8>}, {pipeline_mode = #tpu.pipeline_mode<synchronous>, transform_indices = @transform_8, window_bounds = array<i64: 16, 1>}, {transform_indices = @transform_9, window_bounds = array<i64: 1, 16, 256>}]} {
    %cst = arith.constant 0.000000e+00 : f32
    %0 = vector.broadcast %cst : f32 to vector<18x18x8xf32>
    %c0 = arith.constant 0 : index
    %c0_0 = arith.constant 0 : index
    %c0_1 = arith.constant 0 : index
    %1 = vector.load %arg11[%c0, %c0_0, %c0_1] : memref<18x18x8xf32, #tpu.memory_space<vmem>>, vector<18x18x8xf32>
    tpu.vector_store %arg11[%c0, %c0_0, %c0_1], %0 {strides = array<i32>} : memref<18x18x8xf32, #tpu.memory_space<vmem>>, vector<18x18x8xf32>,
    %c0_2 = arith.constant 0 : index
    %c0_3 = arith.constant 0 : index
    %c0_4 = arith.constant 0 : index
    %c0_5 = arith.constant 0 : index
    %2 = vector.load %arg1[%c0_2, %c0_3, %c0_4, %c0_5] : memref<1x16x16x8xf32, #tpu.memory_space<vmem>>, vector<1x16x16x8xf32>
    %3 = vector.shape_cast %2 : vector<1x16x16x8xf32> to vector<16x16x8xf32>
    %c1 = arith.constant 1 : index
    %c1_6 = arith.constant 1 : index
    %c0_7 = arith.constant 0 : index
    %4 = vector.load %arg11[%c1, %c1_6, %c0_7] : memref<18x18x8xf32, #tpu.memory_space<vmem>>, vector<16x16x8xf32>
    tpu.vector_store %arg11[%c1, %c1_6, %c0_7], %3 {strides = array<i32>} : memref<18x18x8xf32, #tpu.memory_space<vmem>>, vector<16x16x8xf32>,
    %c0_8 = arith.constant 0 : index
    %c0_9 = arith.constant 0 : index
    %c0_10 = arith.constant 0 : index
    %5 = vector.load %arg11[%c0_8, %c0_9, %c0_10] : memref<18x18x8xf32, #tpu.memory_space<vmem>>, vector<18x18x8xf32>
    %6 = vector.extract_strided_slice %5 {offsets = [0, 0, 0], sizes = [16, 16, 8], strides = [1, 1, 1]} : vector<18x18x8xf32> to vector<16x16x8xf32>
    %c0_11 = arith.constant 0 : index
    %c0_12 = arith.constant 0 : index
    %c0_13 = arith.constant 0 : index
    %7 = vector.load %arg2[%c0_11, %c0_12, %c0_13] : memref<3x3x8xf32, #tpu.memory_space<vmem>>, vector<1x1x8xf32>
    %8 = vector.shape_cast %7 : vector<1x1x8xf32> to vector<8xf32>
    %9 = vector.shape_cast %8 : vector<8xf32> to vector<1x1x8xf32>
    %10 = vector.broadcast %9 : vector<1x1x8xf32> to vector<16x16x8xf32>
    %11 = arith.mulf %6, %10 : vector<16x16x8xf32>
    %12 = vector.extract_strided_slice %5 {offsets = [0, 1, 0], sizes = [16, 16, 8], strides = [1, 1, 1]} : vector<18x18x8xf32> to vector<16x16x8xf32>
    %c0_14 = arith.constant 0 : index
    %c1_15 = arith.constant 1 : index
    %c0_16 = arith.constant 0 : index
    %13 = vector.load %arg2[%c0_14, %c1_15, %c0_16] : memref<3x3x8xf32, #tpu.memory_space<vmem>>, vector<1x1x8xf32>
    %14 = vector.shape_cast %13 : vector<1x1x8xf32> to vector<8xf32>
    %15 = vector.shape_cast %14 : vector<8xf32> to vector<1x1x8xf32>
    %16 = vector.broadcast %15 : vector<1x1x8xf32> to vector<16x16x8xf32>
    %17 = arith.mulf %12, %16 : vector<16x16x8xf32>
    %18 = arith.addf %11, %17 : vector<16x16x8xf32>
    %19 = vector.extract_strided_slice %5 {offsets = [0, 2, 0], sizes = [16, 16, 8], strides = [1, 1, 1]} : vector<18x18x8xf32> to vector<16x16x8xf32>
    %c0_17 = arith.constant 0 : index
    %c2 = arith.constant 2 : index
    %c0_18 = arith.constant 0 : index
    %20 = vector.load %arg2[%c0_17, %c2, %c0_18] : memref<3x3x8xf32, #tpu.memory_space<vmem>>, vector<1x1x8xf32>
    %21 = vector.shape_cast %20 : vector<1x1x8xf32> to vector<8xf32>
    %22 = vector.shape_cast %21 : vector<8xf32> to vector<1x1x8xf32>
    %23 = vector.broadcast %22 : vector<1x1x8xf32> to vector<16x16x8xf32>
    %24 = arith.mulf %19, %23 : vector<16x16x8xf32>
    %25 = arith.addf %18, %24 : vector<16x16x8xf32>
    %26 = vector.extract_strided_slice %5 {offsets = [1, 0, 0], sizes = [16, 16, 8], strides = [1, 1, 1]} : vector<18x18x8xf32> to vector<16x16x8xf32>
    %c1_19 = arith.constant 1 : index
    %c0_20 = arith.constant 0 : index
    %c0_21 = arith.constant 0 : index
    %27 = vector.load %arg2[%c1_19, %c0_20, %c0_21] : memref<3x3x8xf32, #tpu.memory_space<vmem>>, vector<1x1x8xf32>
    %28 = vector.shape_cast %27 : vector<1x1x8xf32> to vector<8xf32>
    %29 = vector.shape_cast %28 : vector<8xf32> to vector<1x1x8xf32>
    %30 = vector.broadcast %29 : vector<1x1x8xf32> to vector<16x16x8xf32>
    %31 = arith.mulf %26, %30 : vector<16x16x8xf32>
    %32 = arith.addf %25, %31 : vector<16x16x8xf32>
    %33 = vector.extract_strided_slice %5 {offsets = [1, 1, 0], sizes = [16, 16, 8], strides = [1, 1, 1]} : vector<18x18x8xf32> to vector<16x16x8xf32>
    %c1_22 = arith.constant 1 : index
    %c1_23 = arith.constant 1 : index
    %c0_24 = arith.constant 0 : index
    %34 = vector.load %arg2[%c1_22, %c1_23, %c0_24] : memref<3x3x8xf32, #tpu.memory_space<vmem>>, vector<1x1x8xf32>
    %35 = vector.shape_cast %34 : vector<1x1x8xf32> to vector<8xf32>
    %36 = vector.shape_cast %35 : vector<8xf32> to vector<1x1x8xf32>
    %37 = vector.broadcast %36 : vector<1x1x8xf32> to vector<16x16x8xf32>
    %38 = arith.mulf %33, %37 : vector<16x16x8xf32>
    %39 = arith.addf %32, %38 : vector<16x16x8xf32>
    %40 = vector.extract_strided_slice %5 {offsets = [1, 2, 0], sizes = [16, 16, 8], strides = [1, 1, 1]} : vector<18x18x8xf32> to vector<16x16x8xf32>
    %c1_25 = arith.constant 1 : index
    %c2_26 = arith.constant 2 : index
    %c0_27 = arith.constant 0 : index
    %41 = vector.load %arg2[%c1_25, %c2_26, %c0_27] : memref<3x3x8xf32, #tpu.memory_space<vmem>>, vector<1x1x8xf32>
    %42 = vector.shape_cast %41 : vector<1x1x8xf32> to vector<8xf32>
    %43 = vector.shape_cast %42 : vector<8xf32> to vector<1x1x8xf32>
    %44 = vector.broadcast %43 : vector<1x1x8xf32> to vector<16x16x8xf32>
    %45 = arith.mulf %40, %44 : vector<16x16x8xf32>
    %46 = arith.addf %39, %45 : vector<16x16x8xf32>
    %47 = vector.extract_strided_slice %5 {offsets = [2, 0, 0], sizes = [16, 16, 8], strides = [1, 1, 1]} : vector<18x18x8xf32> to vector<16x16x8xf32>
    %c2_28 = arith.constant 2 : index
    %c0_29 = arith.constant 0 : index
    %c0_30 = arith.constant 0 : index
    %48 = vector.load %arg2[%c2_28, %c0_29, %c0_30] : memref<3x3x8xf32, #tpu.memory_space<vmem>>, vector<1x1x8xf32>
    %49 = vector.shape_cast %48 : vector<1x1x8xf32> to vector<8xf32>
    %50 = vector.shape_cast %49 : vector<8xf32> to vector<1x1x8xf32>
    %51 = vector.broadcast %50 : vector<1x1x8xf32> to vector<16x16x8xf32>
    %52 = arith.mulf %47, %51 : vector<16x16x8xf32>
    %53 = arith.addf %46, %52 : vector<16x16x8xf32>
    %54 = vector.extract_strided_slice %5 {offsets = [2, 1, 0], sizes = [16, 16, 8], strides = [1, 1, 1]} : vector<18x18x8xf32> to vector<16x16x8xf32>
    %c2_31 = arith.constant 2 : index
    %c1_32 = arith.constant 1 : index
    %c0_33 = arith.constant 0 : index
    %55 = vector.load %arg2[%c2_31, %c1_32, %c0_33] : memref<3x3x8xf32, #tpu.memory_space<vmem>>, vector<1x1x8xf32>
    %56 = vector.shape_cast %55 : vector<1x1x8xf32> to vector<8xf32>
    %57 = vector.shape_cast %56 : vector<8xf32> to vector<1x1x8xf32>
    %58 = vector.broadcast %57 : vector<1x1x8xf32> to vector<16x16x8xf32>
    %59 = arith.mulf %54, %58 : vector<16x16x8xf32>
    %60 = arith.addf %53, %59 : vector<16x16x8xf32>
    %61 = vector.extract_strided_slice %5 {offsets = [2, 2, 0], sizes = [16, 16, 8], strides = [1, 1, 1]} : vector<18x18x8xf32> to vector<16x16x8xf32>
    %c2_34 = arith.constant 2 : index
    %c2_35 = arith.constant 2 : index
    %c0_36 = arith.constant 0 : index
    %62 = vector.load %arg2[%c2_34, %c2_35, %c0_36] : memref<3x3x8xf32, #tpu.memory_space<vmem>>, vector<1x1x8xf32>
    %63 = vector.shape_cast %62 : vector<1x1x8xf32> to vector<8xf32>
    %64 = vector.shape_cast %63 : vector<8xf32> to vector<1x1x8xf32>
    %65 = vector.broadcast %64 : vector<1x1x8xf32> to vector<16x16x8xf32>
    %66 = arith.mulf %61, %65 : vector<16x16x8xf32>
    %67 = arith.addf %60, %66 : vector<16x16x8xf32>
    %c0_37 = arith.constant 0 : index
    %c0_38 = arith.constant 0 : index
    %68 = vector.load %arg3[%c0_37, %c0_38] : memref<1x8xf32, #tpu.memory_space<vmem>>, vector<1x8xf32>
    %69 = vector.shape_cast %68 : vector<1x8xf32> to vector<8xf32>
    %70 = vector.shape_cast %69 : vector<8xf32> to vector<1x1x8xf32>
    %71 = vector.broadcast %70 : vector<1x1x8xf32> to vector<16x16x8xf32>
    %72 = arith.addf %67, %71 : vector<16x16x8xf32>
    %cst_39 = arith.constant 3.000000e+00 : f32
    %73 = vector.broadcast %cst_39 : f32 to vector<16x16x8xf32>
    %74 = arith.addf %72, %73 : vector<16x16x8xf32>
    %cst_40 = arith.constant 0.000000e+00 : f32
    %cst_41 = arith.constant 6.000000e+00 : f32
    %75 = vector.broadcast %cst_40 : f32 to vector<16x16x8xf32>
    %76 = arith.maximumf %75, %74 : vector<16x16x8xf32>
    %77 = vector.broadcast %cst_41 : f32 to vector<16x16x8xf32>
    %78 = arith.minimumf %77, %76 : vector<16x16x8xf32>
    %79 = arith.mulf %72, %78 : vector<16x16x8xf32>
    %cst_42 = arith.constant 0.166666672 : f32
    %80 = vector.broadcast %cst_42 : f32 to vector<16x16x8xf32>
    %81 = arith.mulf %79, %80 : vector<16x16x8xf32>
    %82 = vector.shape_cast %81 : vector<16x16x8xf32> to vector<256x8xf32>
    %cst_43 = arith.constant dense<0.000000e+00> : vector<8xf32>
    %83 = vector.multi_reduction <add>, %82, %cst_43 [0] : vector<256x8xf32> to vector<8xf32>
    %84 = vector.shape_cast %83 : vector<8xf32> to vector<1x8xf32>
    %cst_44 = arith.constant 2.560000e+02 : f32
    %85 = vector.broadcast %cst_44 : f32 to vector<1x8xf32>
    %86 = arith.divf %84, %85 : vector<1x8xf32>
    %c0_45 = arith.constant 0 : index
    %c0_46 = arith.constant 0 : index
    %87 = vector.load %arg4[%c0_45, %c0_46] : memref<8x2xf32, #tpu.memory_space<vmem>>, vector<8x2xf32>
    %cst_47 = arith.constant dense<0.000000e+00> : vector<1x2xf32>
    %88 = tpu.matmul %86, %87, %cst_47 {dimension_numbers = #tpu.dot_dimension_numbers<[1], [0], [0], [1], [0, 0, 1, 1], [], []>} : vector<1x8xf32>, vector<8x2xf32>, vector<1x2xf32> -> vector<1x2xf32>
    %c0_48 = arith.constant 0 : index
    %c0_49 = arith.constant 0 : index
    %89 = vector.load %arg5[%c0_48, %c0_49] : memref<1x2xf32, #tpu.memory_space<vmem>>, vector<1x2xf32>
    %90 = arith.addf %88, %89 : vector<1x2xf32>
    %cst_50 = arith.constant 0.000000e+00 : f32
    %91 = vector.broadcast %cst_50 : f32 to vector<1x2xf32>
    %92 = arith.maximumf %90, %91 : vector<1x2xf32>
    %c0_51 = arith.constant 0 : index
    %c0_52 = arith.constant 0 : index
    %93 = vector.load %arg6[%c0_51, %c0_52] : memref<2x8xf32, #tpu.memory_space<vmem>>, vector<2x8xf32>
    %cst_53 = arith.constant dense<0.000000e+00> : vector<1x8xf32>
    %94 = tpu.matmul %92, %93, %cst_53 {dimension_numbers = #tpu.dot_dimension_numbers<[1], [0], [0], [1], [0, 0, 1, 1], [], []>} : vector<1x2xf32>, vector<2x8xf32>, vector<1x8xf32> -> vector<1x8xf32>
    %c0_54 = arith.constant 0 : index
    %c0_55 = arith.constant 0 : index
    %95 = vector.load %arg7[%c0_54, %c0_55] : memref<1x8xf32, #tpu.memory_space<vmem>>, vector<1x8xf32>
    %96 = arith.addf %94, %95 : vector<1x8xf32>
    %cst_56 = arith.constant 0.000000e+00 : f32
    %97 = vector.broadcast %cst_56 : f32 to vector<1x8xf32>
    %98 = arith.subf %97, %96 : vector<1x8xf32>
    %99 = math.exp %98 : vector<1x8xf32>
    %cst_57 = arith.constant 1.000000e+00 : f32
    %100 = vector.broadcast %cst_57 : f32 to vector<1x8xf32>
    %101 = arith.addf %100, %99 : vector<1x8xf32>
    %cst_58 = arith.constant 1.000000e+00 : f32
    %102 = vector.broadcast %cst_58 : f32 to vector<1x8xf32>
    %103 = arith.divf %102, %101 : vector<1x8xf32>
    %104 = arith.mulf %96, %103 : vector<1x8xf32>
    %105 = vector.broadcast %104 : vector<1x8xf32> to vector<256x8xf32>
    %106 = arith.mulf %82, %105 : vector<256x8xf32>
    %c0_59 = arith.constant 0 : index
    %c0_60 = arith.constant 0 : index
    %107 = vector.load %arg8[%c0_59, %c0_60] : memref<16x8xf32, #tpu.memory_space<vmem>>, vector<16x8xf32>
    "tpu.trace_start"() <{level = 10 : i32, message = "fc,mc->fm"}> : () -> ()
    %cst_61 = arith.constant dense<0.000000e+00> : vector<16x256xf32>
    %108 = tpu.matmul %107, %106, %cst_61 {dimension_numbers = #tpu.dot_dimension_numbers<[1], [1], [0], [0], [0, 0, 1, 0], [], []>} : vector<16x8xf32>, vector<256x8xf32>, vector<16x256xf32> -> vector<16x256xf32>
    "tpu.trace_stop"() : () -> ()
    %c0_62 = arith.constant 0 : index
    %c0_63 = arith.constant 0 : index
    %109 = vector.load %arg9[%c0_62, %c0_63] : memref<16x1xf32, #tpu.memory_space<vmem>>, vector<16x1xf32>
    %110 = vector.broadcast %109 : vector<16x1xf32> to vector<16x256xf32>
    %111 = arith.addf %108, %110 : vector<16x256xf32>
    %cst_64 = arith.constant 3.000000e+00 : f32
    %112 = vector.broadcast %cst_64 : f32 to vector<16x256xf32>
    %113 = arith.addf %111, %112 : vector<16x256xf32>
    %cst_65 = arith.constant 0.000000e+00 : f32
    %cst_66 = arith.constant 6.000000e+00 : f32
    %114 = vector.broadcast %cst_65 : f32 to vector<16x256xf32>
    %115 = arith.maximumf %114, %113 : vector<16x256xf32>
    %116 = vector.broadcast %cst_66 : f32 to vector<16x256xf32>
    %117 = arith.minimumf %116, %115 : vector<16x256xf32>
    %118 = arith.mulf %111, %117 : vector<16x256xf32>
    %cst_67 = arith.constant 0.166666672 : f32
    %119 = vector.broadcast %cst_67 : f32 to vector<16x256xf32>
    %120 = arith.mulf %118, %119 : vector<16x256xf32>
    %c0_68 = arith.constant 0 : index
    %c0_69 = arith.constant 0 : index
    %c0_70 = arith.constant 0 : index
    %121 = vector.load %arg10[%c0_68, %c0_69, %c0_70] : memref<1x16x256xf32, #tpu.memory_space<vmem>>, vector<1x16x256xf32>
    %122 = vector.shape_cast %121 : vector<1x16x256xf32> to vector<16x256xf32>
    %123 = vector.shape_cast %120 : vector<16x256xf32> to vector<1x16x256xf32>
    tpu.vector_store %arg10[%c0_68, %c0_69, %c0_70], %123 {strides = array<i32>} : memref<1x16x256xf32, #tpu.memory_space<vmem>>, vector<1x16x256xf32>,
    return
  }
  func.func @transform_0(%arg0: i32) -> (i32, i32, i32, i32) {
    %c0_i32 = arith.constant 0 : i32
    %c0_i32_0 = arith.constant 0 : i32
    %c0_i32_1 = arith.constant 0 : i32
    %c0_i32_2 = arith.constant 0 : i32
    return %arg0, %c0_i32, %c0_i32_0, %c0_i32_1 : i32, i32, i32, i32
  }
  func.func @transform_1(%arg0: i32) -> (i32, i32, i32) {
    %c0_i32 = arith.constant 0 : i32
    %c0_i32_0 = arith.constant 0 : i32
    %c0_i32_1 = arith.constant 0 : i32
    %c0_i32_2 = arith.constant 0 : i32
    return %c0_i32, %c0_i32_0, %c0_i32_1 : i32, i32, i32
  }
  func.func @transform_2(%arg0: i32) -> (i32, i32) {
    %c0_i32 = arith.constant 0 : i32
    %c0_i32_0 = arith.constant 0 : i32
    %c0_i32_1 = arith.constant 0 : i32
    return %c0_i32, %c0_i32_0 : i32, i32
  }
  func.func @transform_3(%arg0: i32) -> (i32, i32) {
    %c0_i32 = arith.constant 0 : i32
    %c0_i32_0 = arith.constant 0 : i32
    %c0_i32_1 = arith.constant 0 : i32
    return %c0_i32, %c0_i32_0 : i32, i32
  }
  func.func @transform_4(%arg0: i32) -> (i32, i32) {
    %c0_i32 = arith.constant 0 : i32
    %c0_i32_0 = arith.constant 0 : i32
    %c0_i32_1 = arith.constant 0 : i32
    return %c0_i32, %c0_i32_0 : i32, i32
  }
  func.func @transform_5(%arg0: i32) -> (i32, i32) {
    %c0_i32 = arith.constant 0 : i32
    %c0_i32_0 = arith.constant 0 : i32
    %c0_i32_1 = arith.constant 0 : i32
    return %c0_i32, %c0_i32_0 : i32, i32
  }
  func.func @transform_6(%arg0: i32) -> (i32, i32) {
    %c0_i32 = arith.constant 0 : i32
    %c0_i32_0 = arith.constant 0 : i32
    %c0_i32_1 = arith.constant 0 : i32
    return %c0_i32, %c0_i32_0 : i32, i32
  }
  func.func @transform_7(%arg0: i32) -> (i32, i32) {
    %c0_i32 = arith.constant 0 : i32
    %c0_i32_0 = arith.constant 0 : i32
    %c0_i32_1 = arith.constant 0 : i32
    return %c0_i32, %c0_i32_0 : i32, i32
  }
  func.func @transform_8(%arg0: i32) -> (i32, i32) {
    %c0_i32 = arith.constant 0 : i32
    %c0_i32_0 = arith.constant 0 : i32
    %c0_i32_1 = arith.constant 0 : i32
    return %c0_i32, %c0_i32_0 : i32, i32
  }
  func.func @transform_9(%arg0: i32) -> (i32, i32, i32) {
    %c0_i32 = arith.constant 0 : i32
    %c0_i32_0 = arith.constant 0 : i32
    %c0_i32_1 = arith.constant 0 : i32
    return %arg0, %c0_i32, %c0_i32_0 : i32, i32, i32
  }
}

</mosaic_0001>

<bundles_post_ra>
// kernel: tpu_custom_call.1
= control target key start
LH: loop header
LB: loop body
LE: loop exit
PB: predicated region body
PF: predicated region fallthrough
CT: control target
= control target key end

     0   :  { %14 = vsyncpa [#allocation4], 0  ;;  %s6772_s0 = inlined_call_operand.vmem [shape: f32[2,16,16,8], index: 0, kind: input, shape index: {}]   ;;  %s6773_s1 = inlined_call_operand.vmem [shape: f32[3,3,8], index: 1, kind: input, shape index: {}]   ;;  %s6774_s2 = inlined_call_operand.vmem [shape: f32[1,8], index: 2, kind: input, shape index: {}]   ;;  %s6775_s3 = inlined_call_operand.vmem [shape: f32[8,2], index: 3, kind: input, shape index: {}]   ;;  %s6776_s4 = inlined_call_operand.vmem [shape: f32[1,2], index: 4, kind: input, shape index: {}]   ;;  %s6777_s5 = inlined_call_operand.vmem [shape: f32[2,8], index: 5, kind: input, shape index: {}]   ;;  %s6778_s6 = inlined_call_operand.vmem [shape: f32[1,8], index: 6, kind: input, shape index: {}]   ;;  %s6779_s7 = inlined_call_operand.vmem [shape: f32[16,8], index: 7, kind: input, shape index: {}]   ;;  %s6780_s8 = inlined_call_operand.vmem [shape: f32[16,1], index: 8, kind: input, shape index: {}]   ;;  %s6781_s9 = inlined_call_operand.hbm [shape: f32[2,16,256], index: 9, kind: output, shape index: {}]  }
   0x1   :  { %16 = vsyncpa [#allocation4 + $0x1], 0  ;;  %s3281_s30 = smov 0   ;;  %s3283_s10 = smov 0  }
   0x2   :  { %s3285_s11 = smov 0   ;;  %s3287_s12 = smov 0  }
   0x3 LB: > { %s3302_s13 = sadd.s32 4294967295, %s3223_s12   ;;  %s2917_s14 = sadd.s32 4294967294, %s3223_s12   ;;  %s3223_s12 = sphi %s3287_s12, %s7657_s12   ;;  %s3219_s11 = sphi %s3285_s11, %s7656_s11   ;;  %s3215_s10 = sphi %s3283_s10, %s7655_s10   ;;  %s3211_s30 = sphi %s3281_s30, %s7654_s30  }
   0x4   : > { %s3306_s15 = sadd.s32 1, %s3223_s12   ;;  %s223_s16 = sadd.s32 1, %s3219_s11 }
   0x5   : > { %s220_s17 = ssub.s32 %s3223_s12, %s3306_s15  ;;  %p233_p0 = scmp.ne.s32.totalorder %s3219_s11, %s3215_s10 }
   0x6   : > { %p221_p1 = scmp.eq.s32.totalorder %s220_s17, 0  ;;  %p234_p2 = scmp.eq.s32.totalorder %s3302_s13, 1 }
   0x7   : > { %p239_p3 = scmp.ne.s32.totalorder %s3215_s10, %s3211_s30  ;;  %p240_p4 = scmp.eq.s32.totalorder %s2917_s14, 1 }
   0x8   : > { %s3317_s18 = scalar_select %p221_p1, %s3219_s11, %s223_s16  }
   0x9   : > { %p3319_p5 = por %p234_p2, %p233_p0  ;;  %p3323_p6 = por %p240_p4, %p239_p3 }
   0xa   : > { %p2920_p7 = scmp.ge.s32.totalorder %s3223_s12, 1  ;;  %p290_p8 = scmp.lt.s32.totalorder %s3223_s12, 3 }
   0xc   : > { %p291_p9 = pnand %p2920_p7, %p290_p8 }
   0xe   : > { %294 = sbr.rel (%p291_p9) target bundleno = 1205 (0x4b5), region = 56 }
  0x13   : > { %v2425_v0 = vld [vmem:[%s6775_s3] sm:$0xff]  ;;  %p326_p10 = scmp.lt.s32.totalorder %s3302_s13, 1  ;;  %vm331_vm0 = vcmask 64512   ;;  %vm334_vm1 = vcmask 58368   ;;  %v3225_v1 = vmov 0.0   ;;  %vm3226_vm2 = vmmov 0  }
  0x14   : > { %3024 = vmatprep.subr.mxu0 %v3225_v1  ;;  %3026 = vmatprep.mubr.msk.f32.mxu0 %vm3226_vm2, %v3225_v1  ;;  %332 = vst.msk [vmem:[#allocation2] sm:$0xff] %vm331_vm0, %v3225_v1  ;;  %333 = vst.msk [vmem:[#allocation2 + $0x8] sm:$0xff] %vm331_vm0, %v3225_v1  ;;  %v3464_v34 = vld [vmem:[%s6773_s1] ss:$0 sm:$0xff]  ;;  %v3469_v36 = vld [vmem:[%s6773_s1 + $0x1] ss:$0 sm:$0xff] }
  0x15   : > { %335 = vst.msk [vmem:[#allocation2 + $0x10] sm:$0x3] %vm334_vm1, %v3225_v1  ;;  %338 = vst.msk [vmem:[#allocation2 + $0x28] sm:$0x3] %vm334_vm1, %v3225_v1  ;;  %3025 = vmatpush3.msra.mxu0 %v2425_v0  ;;  %s327_s23 = scalar_select %p326_p10, %s3302_s13, 1  ;;  %3029 = vmatprep.subr.mxu1 %v3225_v1  ;;  %vm644_vm3 = vcmask 1046528  }
  0x16   : > { %336 = vst.msk [vmem:[#allocation2 + $0x18] sm:$0xff] %vm331_vm0, %v3225_v1  ;;  %337 = vst.msk [vmem:[#allocation2 + $0x20] sm:$0xff] %vm331_vm0, %v3225_v1  ;;  %3031 = vmatprep.mubr.msk.f32.mxu1 %vm3226_vm2, %v3225_v1  ;;  %v3474_v37 = vld [vmem:[%s6773_s1 + $0x2] ss:$0 sm:$0xff]  ;;  %vm890_vm4 = vcmask 1045504   ;;  %vm2507_vm5 = vcmask 1041408  }
  0x17   : > { %339 = vst.msk [vmem:[#allocation2 + $0x30] sm:$0xff] %vm331_vm0, %v3225_v1  ;;  %340 = vst.msk [vmem:[#allocation2 + $0x38] sm:$0xff] %vm331_vm0, %v3225_v1  ;;  %s2982_s24 = sshll.u32 %s327_s23, 8  ;;  %vm2503_vm6 = vcmask 15360   ;;  %s323_s26 = sand.u32 1, %s3215_s10  }
  0x18   : > { %341 = vst.msk [vmem:[#allocation2 + $0x40] sm:$0x3] %vm334_vm1, %v3225_v1  ;;  %344 = vst.msk [vmem:[#allocation2 + $0x58] sm:$0x3] %vm334_vm1, %v3225_v1  ;;  %s3395_s27 = scalar_lea.vmem %s6772_s0, %s2982_s24  ;;  %s2983_s14 = sshll.u32 %s3302_s13, 9 }
  0x19   : > { %342 = vst.msk [vmem:[#allocation2 + $0x48] sm:$0xff] %vm331_vm0, %v3225_v1  ;;  %343 = vst.msk [vmem:[#allocation2 + $0x50] sm:$0xff] %vm331_vm0, %v3225_v1  ;;  %v387_v2 = vld [vmem:[%s3395_s27] sm:$0xff]  ;;  %v388_v3 = vld [vmem:[%s3395_s27 + $0x8] sm:$0xff]  ;;  %s6728_s21 = scalar_lea.hbm %s6781_s9, %s2983_s14  ;;  %s6732_s13 = scalar_lea.sflag [#allocation4], %s323_s26 }
  0x1a   : > { %345 = vst.msk [vmem:[#allocation2 + $0x60] sm:$0xff] %vm331_vm0, %v3225_v1  ;;  %346 = vst.msk [vmem:[#allocation2 + $0x68] sm:$0xff] %vm331_vm0, %v3225_v1  ;;  %v389_v4 = vld [vmem:[%s3395_s27 + $0x10] sm:$0xff]  ;;  %v390_v5 = vld [vmem:[%s3395_s27 + $0x18] sm:$0xff]  ;;  %s3228_s23 = smov [#allocation3]  }
  0x1b   : > { %347 = vst.msk [vmem:[#allocation2 + $0x70] sm:$0x3] %vm334_vm1, %v3225_v1  ;;  %350 = vst.msk [vmem:[#allocation2 + $0x88] sm:$0x3] %vm334_vm1, %v3225_v1  ;;  %v391_v6 = vld [vmem:[%s3395_s27 + $0x20] sm:$0xff]  ;;  %v392_v7 = vld [vmem:[%s3395_s27 + $0x28] sm:$0xff] }
  0x1c   : > { %348 = vst.msk [vmem:[#allocation2 + $0x78] sm:$0xff] %vm331_vm0, %v3225_v1  ;;  %349 = vst.msk [vmem:[#allocation2 + $0x80] sm:$0xff] %vm331_vm0, %v3225_v1  ;;  %v393_v8 = vld [vmem:[%s3395_s27 + $0x30] sm:$0xff]  ;;  %v394_v9 = vld [vmem:[%s3395_s27 + $0x38] sm:$0xff]  ;;  %s3167_s24 = sshll.u32 %s3228_s23, 4  ;;  %s3168_s24 = int_to_ptr.vmem [resolvable:$false] %s3167_s24 }
  0x1d   : > { %351 = vst.msk [vmem:[#allocation2 + $0x90] sm:$0xff] %vm331_vm0, %v3225_v1  ;;  %352 = vst.msk [vmem:[#allocation2 + $0x98] sm:$0xff] %vm331_vm0, %v3225_v1  ;;  %v395_v10 = vld [vmem:[%s3395_s27 + $0x40] sm:$0xff]  ;;  %v396_v11 = vld [vmem:[%s3395_s27 + $0x48] sm:$0xff]  ;;  %s3169_s25 = scalar_lea.vmem %s3168_s24, 1024 }
  0x1e   : > { %353 = vst.msk [vmem:[#allocation2 + $0xa0] sm:$0x3] %vm334_vm1, %v3225_v1  ;;  %356 = vst.msk [vmem:[#allocation2 + $0xb8] sm:$0x3] %vm334_vm1, %v3225_v1  ;;  %v397_v12 = vld [vmem:[%s3395_s27 + $0x50] sm:$0xff]  ;;  %v398_v13 = vld [vmem:[%s3395_s27 + $0x58] sm:$0xff] }
  0x1f   : > { %354 = vst.msk [vmem:[#allocation2 + $0xa8] sm:$0xff] %vm331_vm0, %v3225_v1  ;;  %355 = vst.msk [vmem:[#allocation2 + $0xb0] sm:$0xff] %vm331_vm0, %v3225_v1  ;;  %v399_v14 = vld [vmem:[%s3395_s27 + $0x60] sm:$0xff]  ;;  %v400_v15 = vld [vmem:[%s3395_s27 + $0x68] sm:$0xff] }
  0x20   : > { %357 = vst.msk [vmem:[#allocation2 + $0xc0] sm:$0xff] %vm331_vm0, %v3225_v1  ;;  %358 = vst.msk [vmem:[#allocation2 + $0xc8] sm:$0xff] %vm331_vm0, %v3225_v1  ;;  %v401_v16 = vld [vmem:[%s3395_s27 + $0x70] sm:$0xff]  ;;  %v402_v17 = vld [vmem:[%s3395_s27 + $0x78] sm:$0xff] }
  0x21   : > { %359 = vst.msk [vmem:[#allocation2 + $0xd0] sm:$0x3] %vm334_vm1, %v3225_v1  ;;  %362 = vst.msk [vmem:[#allocation2 + $0xe8] sm:$0x3] %vm334_vm1, %v3225_v1  ;;  %v403_v18 = vld [vmem:[%s3395_s27 + $0x80] sm:$0xff]  ;;  %v404_v19 = vld [vmem:[%s3395_s27 + $0x88] sm:$0xff] }
  0x22   : > { %360 = vst.msk [vmem:[#allocation2 + $0xd8] sm:$0xff] %vm331_vm0, %v3225_v1  ;;  %361 = vst.msk [vmem:[#allocation2 + $0xe0] sm:$0xff] %vm331_vm0, %v3225_v1  ;;  %v405_v20 = vld [vmem:[%s3395_s27 + $0x90] sm:$0xff]  ;;  %v406_v21 = vld [vmem:[%s3395_s27 + $0x98] sm:$0xff] }
  0x23   : > { %363 = vst.msk [vmem:[#allocation2 + $0xf0] sm:$0xff] %vm331_vm0, %v3225_v1  ;;  %364 = vst.msk [vmem:[#allocation2 + $0xf8] sm:$0xff] %vm331_vm0, %v3225_v1  ;;  %v407_v22 = vld [vmem:[%s3395_s27 + $0xa0] sm:$0xff]  ;;  %v408_v23 = vld [vmem:[%s3395_s27 + $0xa8] sm:$0xff] }
  0x24   : > { %365 = vst.msk [vmem:[#allocation2 + $0x100] sm:$0x3] %vm334_vm1, %v3225_v1  ;;  %368 = vst.msk [vmem:[#allocation2 + $0x118] sm:$0x3] %vm334_vm1, %v3225_v1  ;;  %v409_v24 = vld [vmem:[%s3395_s27 + $0xb0] sm:$0xff]  ;;  %v410_v25 = vld [vmem:[%s3395_s27 + $0xb8] sm:$0xff] }
  0x25   : > { %366 = vst.msk [vmem:[#allocation2 + $0x108] sm:$0xff] %vm331_vm0, %v3225_v1  ;;  %367 = vst.msk [vmem:[#allocation2 + $0x110] sm:$0xff] %vm331_vm0, %v3225_v1  ;;  %v411_v26 = vld [vmem:[%s3395_s27 + $0xc0] sm:$0xff]  ;;  %v412_v27 = vld [vmem:[%s3395_s27 + $0xc8] sm:$0xff] }
  0x26   : > { %369 = vst.msk [vmem:[#allocation2 + $0x120] sm:$0xff] %vm331_vm0, %v3225_v1  ;;  %370 = vst.msk [vmem:[#allocation2 + $0x128] sm:$0xff] %vm331_vm0, %v3225_v1  ;;  %v413_v28 = vld [vmem:[%s3395_s27 + $0xd0] sm:$0xff]  ;;  %v414_v29 = vld [vmem:[%s3395_s27 + $0xd8] sm:$0xff] }
  0x27   : > { %371 = vst.msk [vmem:[#allocation2 + $0x130] sm:$0x3] %vm334_vm1, %v3225_v1  ;;  %374 = vst.msk [vmem:[#allocation2 + $0x148] sm:$0x3] %vm334_vm1, %v3225_v1  ;;  %v415_v30 = vld [vmem:[%s3395_s27 + $0xe0] sm:$0xff]  ;;  %v416_v31 = vld [vmem:[%s3395_s27 + $0xe8] sm:$0xff] }
  0x28   : > { %372 = vst.msk [vmem:[#allocation2 + $0x138] sm:$0xff] %vm331_vm0, %v3225_v1  ;;  %373 = vst.msk [vmem:[#allocation2 + $0x140] sm:$0xff] %vm331_vm0, %v3225_v1  ;;  %v417_v32 = vld [vmem:[%s3395_s27 + $0xf0] sm:$0xff]  ;;  %v418_v33 = vld [vmem:[%s3395_s27 + $0xf8] sm:$0xff]  ;;  %s2921_s27 = sshll.u32 %s323_s26, 5 }
  0x29   : > { %375 = vst.msk [vmem:[#allocation2 + $0x150] sm:$0xff] %vm331_vm0, %v3225_v1  ;;  %376 = vst.msk [vmem:[#allocation2 + $0x158] sm:$0xff] %vm331_vm0, %v3225_v1  ;;  %v452_v35 = vld [vmem:[#allocation2] sm:$0xff]  ;;  %v3476_v38 = vld [vmem:[#allocation2 + $0x8] sm:$0xff]  ;;  %s325_s28 = scalar_lea.vmem [#allocation3], %s2921_s27 }
  0x2a   : > { %377 = vst.msk [vmem:[#allocation2 + $0x160] sm:$0x3] %vm334_vm1, %v3225_v1  ;;  %380 = vst.msk [vmem:[#allocation2 + $0x178] sm:$0x3] %vm334_vm1, %v3225_v1  ;;  %v3478_v39 = vld [vmem:[#allocation2 + $0x10] sm:$0x3]  ;;  %v3489_v44 = vmul.f32 %v3464_v34, %v452_v35  ;;  %v3492_v45 = vmul.f32 %v3469_v36, %v452_v35  ;;  %v3495_v46 = vmul.f32 %v3474_v37, %v452_v35 }
  0x2b   : > { %378 = vst.msk [vmem:[#allocation2 + $0x168] sm:$0xff] %vm331_vm0, %v3225_v1  ;;  %379 = vst.msk [vmem:[#allocation2 + $0x170] sm:$0xff] %vm331_vm0, %v3225_v1  ;;  %v3503_v49 = vmul.f32 %v3464_v34, %v3476_v38  ;;  %v3511_v51 = vmul.f32 %v3469_v36, %v3476_v38  ;;  %v3515_v52 = vmul.f32 %v3469_v36, %v3478_v39  ;;  %s2855_s29 = sshll.u32 %s325_s28, 4  ;;  %s6723_s29 = int_to_ptr.vmem [resolvable:$true] %s2855_s29 }
  0x2c   : > { %381 = vst.msk [vmem:[#allocation2 + $0x180] sm:$0xff] %vm331_vm0, %v3225_v1  ;;  %382 = vst.msk [vmem:[#allocation2 + $0x188] sm:$0xff] %vm331_vm0, %v3225_v1  ;;  %s3163_s22 = scalar_lea.vmem %s6723_s29, 512  ;;  %p3170_p0 = scmp.lt.s32.totalorder %s6723_s29, %s3168_s24 }
  0x2d   : > { %383 = vst.msk [vmem:[#allocation2 + $0x190] sm:$0x3] %vm334_vm1, %v3225_v1  ;;  %386 = vst.msk [vmem:[#allocation2 + $0x1a8] sm:$0x3] %vm334_vm1, %v3225_v1  ;;  %p3164_p11 = scmp.ne.s32.totalorder %s6723_s29, %s3163_s22  ;;  %p3171_p1 = scmp.lt.s32.totalorder %s3169_s25, %s3163_s22 }
  0x2e   : > { %384 = vst.msk [vmem:[#allocation2 + $0x198] sm:$0xff] %vm331_vm0, %v3225_v1  ;;  %385 = vst.msk [vmem:[#allocation2 + $0x1a0] sm:$0xff] %vm331_vm0, %v3225_v1 }
  0x2f   : > { %420 = vst.msk [vmem:[#allocation2 + $0x19] sm:$0xff] %vm331_vm0, %v387_v2  ;;  %421 = vst.msk [vmem:[#allocation2 + $0x21] sm:$0xff] %vm331_vm0, %v388_v3  ;;  %p3165_p12 = pnand %p3164_p11, %p3319_p5  ;;  %p3172_p2 = por %p3171_p1, %p3170_p0 }
  0x30   : > { %422 = vst.msk [vmem:[#allocation2 + $0x31] sm:$0xff] %vm331_vm0, %v389_v4  ;;  %423 = vst.msk [vmem:[#allocation2 + $0x39] sm:$0xff] %vm331_vm0, %v390_v5 }
  0x31   : > { %424 = vst.msk [vmem:[#allocation2 + $0x49] sm:$0xff] %vm331_vm0, %v391_v6  ;;  %425 = vst.msk [vmem:[#allocation2 + $0x51] sm:$0xff] %vm331_vm0, %v392_v7  ;;  %p3166_p13 = pneg %p3165_p12 }
  0x32   : > { %426 = vst.msk [vmem:[#allocation2 + $0x61] sm:$0xff] %vm331_vm0, %v393_v8  ;;  %427 = vst.msk [vmem:[#allocation2 + $0x69] sm:$0xff] %vm331_vm0, %v394_v9 }
  0x33   : > { %428 = vst.msk [vmem:[#allocation2 + $0x79] sm:$0xff] %vm331_vm0, %v395_v10  ;;  %429 = vst.msk [vmem:[#allocation2 + $0x81] sm:$0xff] %vm331_vm0, %v396_v11  ;;  %p3173_p3 = pnand %p3172_p2, %p3166_p13 }
  0x34   : > { %430 = vst.msk [vmem:[#allocation2 + $0x91] sm:$0xff] %vm331_vm0, %v397_v12  ;;  %431 = vst.msk [vmem:[#allocation2 + $0x99] sm:$0xff] %vm331_vm0, %v398_v13 }
  0x35   : > { %432 = vst.msk [vmem:[#allocation2 + $0xa9] sm:$0xff] %vm331_vm0, %v399_v14  ;;  %433 = vst.msk [vmem:[#allocation2 + $0xb1] sm:$0xff] %vm331_vm0, %v400_v15 }
  0x36   : > { %434 = vst.msk [vmem:[#allocation2 + $0xc1] sm:$0xff] %vm331_vm0, %v401_v16  ;;  %435 = vst.msk [vmem:[#allocation2 + $0xc9] sm:$0xff] %vm331_vm0, %v402_v17  ;;  %v3480_v40 = vld [vmem:[#allocation2 + $0x18] sm:$0xff]  ;;  %v3482_v41 = vld [vmem:[#allocation2 + $0x20] sm:$0xff] }
  0x37   : > { %436 = vst.msk [vmem:[#allocation2 + $0xd9] sm:$0xff] %vm331_vm0, %v403_v18  ;;  %437 = vst.msk [vmem:[#allocation2 + $0xe1] sm:$0xff] %vm331_vm0, %v404_v19  ;;  %v3484_v42 = vld [vmem:[#allocation2 + $0x28] sm:$0x3]  ;;  %v3486_v43 = vld [vmem:[#allocation2 + $0x30] sm:$0xff]  ;;  %v3507_v50 = vmul.f32 %v3464_v34, %v3480_v40  ;;  %v3523_v55 = vmul.f32 %v3464_v34, %v3482_v41  ;;  %v3531_v57 = vmul.f32 %v3469_v36, %v3480_v40 }
  0x38   : > { %438 = vst.msk [vmem:[#allocation2 + $0xf1] sm:$0xff] %vm331_vm0, %v405_v20  ;;  %439 = vst.msk [vmem:[#allocation2 + $0xf9] sm:$0xff] %vm331_vm0, %v406_v21  ;;  %v3497_v47 = vld [vmem:[#allocation2 + $0x38] sm:$0xff]  ;;  %v3499_v48 = vld [vmem:[#allocation2 + $0x40] sm:$0x3]  ;;  %v3527_v56 = vmul.f32 %v3464_v34, %v3486_v43  ;;  %v3535_v58 = vmul.f32 %v3469_v36, %v3482_v41  ;;  %v3551_v63 = vmul.f32 %v3469_v36, %v3484_v42 }
  0x39   : > { %440 = vst.msk [vmem:[#allocation2 + $0x109] sm:$0xff] %vm331_vm0, %v407_v22  ;;  %441 = vst.msk [vmem:[#allocation2 + $0x111] sm:$0xff] %vm331_vm0, %v408_v23  ;;  %v3517_v53 = vld [vmem:[#allocation2 + $0x48] sm:$0xff]  ;;  %v3519_v54 = vld [vmem:[#allocation2 + $0x50] sm:$0xff]  ;;  %v3543_v61 = vmul.f32 %v3464_v34, %v3497_v47  ;;  %v3555_v0 = vmul.f32 %v3469_v36, %v3486_v43  ;;  %v3573_v6 = vmul.f32 %v3469_v36, %v3497_v47 }
  0x3a   : > { %442 = vst.msk [vmem:[#allocation2 + $0x121] sm:$0xff] %vm331_vm0, %v409_v24  ;;  %443 = vst.msk [vmem:[#allocation2 + $0x129] sm:$0xff] %vm331_vm0, %v410_v25  ;;  %v3537_v59 = vld [vmem:[#allocation2 + $0x58] sm:$0x3]  ;;  %v3539_v60 = vld [vmem:[#allocation2 + $0x60] sm:$0xff]  ;;  %v3547_v62 = vmul.f32 %v3464_v34, %v3517_v53  ;;  %v3565_v4 = vmul.f32 %v3464_v34, %v3519_v54  ;;  %v3577_v7 = vmul.f32 %v3469_v36, %v3499_v48 }
  0x3b   : > { %444 = vst.msk [vmem:[#allocation2 + $0x139] sm:$0xff] %vm331_vm0, %v411_v26  ;;  %445 = vst.msk [vmem:[#allocation2 + $0x141] sm:$0xff] %vm331_vm0, %v412_v27  ;;  %v3557_v1 = vld [vmem:[#allocation2 + $0x68] sm:$0xff]  ;;  %v3559_v2 = vld [vmem:[#allocation2 + $0x70] sm:$0x3]  ;;  %v3569_v5 = vmul.f32 %v3464_v34, %v3539_v60  ;;  %v3593_v12 = vmul.f32 %v3469_v36, %v3517_v53  ;;  %v3597_v13 = vmul.f32 %v3469_v36, %v3519_v54 }
  0x3c   : > { %446 = vst.msk [vmem:[#allocation2 + $0x151] sm:$0xff] %vm331_vm0, %v413_v28  ;;  %447 = vst.msk [vmem:[#allocation2 + $0x159] sm:$0xff] %vm331_vm0, %v414_v29  ;;  %v3561_v3 = vld [vmem:[#allocation2 + $0x78] sm:$0xff]  ;;  %v3579_v8 = vld [vmem:[#allocation2 + $0x80] sm:$0xff]  ;;  %v3585_v10 = vmul.f32 %v3464_v34, %v3557_v1  ;;  %v3615_v19 = vmul.f32 %v3469_v36, %v3537_v59  ;;  %v3619_v20 = vmul.f32 %v3469_v36, %v3539_v60 }
  0x3d   : > { %448 = vst.msk [vmem:[#allocation2 + $0x169] sm:$0xff] %vm331_vm0, %v415_v30  ;;  %449 = vst.msk [vmem:[#allocation2 + $0x171] sm:$0xff] %vm331_vm0, %v416_v31  ;;  %v3581_v9 = vld [vmem:[#allocation2 + $0x90] sm:$0xff]  ;;  %v3589_v11 = vmul.f32 %v3464_v34, %v3561_v3  ;;  %v3599_v14 = vld [vmem:[#allocation2 + $0x88] sm:$0x3]  ;;  %v3607_v17 = vmul.f32 %v3464_v34, %v3579_v8  ;;  %v3637_v26 = vmul.f32 %v3469_v36, %v3557_v1 }
  0x3e   : > { %450 = vst.msk [vmem:[#allocation2 + $0x181] sm:$0xff] %vm331_vm0, %v417_v32  ;;  %451 = vst.msk [vmem:[#allocation2 + $0x189] sm:$0xff] %vm331_vm0, %v418_v33  ;;  %v3601_v15 = vld [vmem:[#allocation2 + $0x98] sm:$0xff]  ;;  %v3603_v16 = vld [vmem:[#allocation2 + $0xa8] sm:$0xff]  ;;  %v3611_v18 = vmul.f32 %v3464_v34, %v3581_v9  ;;  %v3641_v27 = vmul.f32 %v3469_v36, %v3559_v2  ;;  %v3657_v32 = vmul.f32 %v3469_v36, %v3561_v3 }
  0x3f   : > { %6971 = vst [vmem:[#allocation6_spill] sm:$0xff] %v3474_v37  ;;  %6972 = vst [vmem:[#allocation7_spill] sm:$0xff] %v3476_v38  ;;  %v3621_v21 = vld [vmem:[#allocation2 + $0xa0] sm:$0x3]  ;;  %v3623_v22 = vld [vmem:[#allocation2 + $0xb0] sm:$0xff]  ;;  %v3629_v24 = vmul.f32 %v3464_v34, %v3601_v15  ;;  %v3633_v25 = vmul.f32 %v3464_v34, %v3603_v16  ;;  %v3661_v33 = vmul.f32 %v3469_v36, %v3579_v8 }
  0x40   : > { %6973 = vst [vmem:[#allocation8_spill] sm:$0xff] %v3478_v39  ;;  %6974 = vst [vmem:[#allocation9_spill] sm:$0xff] %v3480_v40  ;;  %v3625_v23 = vld [vmem:[#allocation2 + $0xc0] sm:$0xff]  ;;  %v3643_v28 = vld [vmem:[#allocation2 + $0xc8] sm:$0xff]  ;;  %v3649_v30 = vmul.f32 %v3464_v34, %v3623_v22 }
  0x41   : > { %6975 = vst [vmem:[#allocation10_spill] sm:$0xff] %v3482_v41  ;;  %6976 = vst [vmem:[#allocation11_spill] sm:$0xff] %v3484_v42  ;;  %v3645_v29 = vld [vmem:[#allocation2 + $0xd8] sm:$0xff]  ;;  %v3653_v31 = vmul.f32 %v3464_v34, %v3625_v23  ;;  %v3709_v42 = vld [vmem:[#allocation2 + $0x120] sm:$0xff] }
  0x42   : > { %6977 = vst [vmem:[#allocation12_spill] sm:$0xff] %v3486_v43  ;;  %6978 = vst [vmem:[#allocation13_spill] sm:$0xff] %v3495_v46  ;;  %v3663_v35 = vld [vmem:[#allocation2 + $0xb8] sm:$0x3]  ;;  %v3665_v46 = vld [vmem:[#allocation2 + $0xe0] sm:$0xff] }
  0x43   : > { %6979 = vst [vmem:[#allocation14_spill] sm:$0xff] %v3497_v47  ;;  %6980 = vst [vmem:[#allocation15_spill] sm:$0xff] %v3499_v48  ;;  %v3693_v48 = vmul.f32 %v3464_v34, %v3665_v46  ;;  %v3707_v43 = vld [vmem:[#allocation2 + $0x110] sm:$0xff]  ;;  %v3727_v39 = vld [vmem:[#allocation2 + $0xe8] sm:$0x3] }
  0x44   : > { %6981 = vst [vmem:[#allocation16_spill] sm:$0xff] %v3517_v53  ;;  %6982 = vst [vmem:[#allocation17_spill] sm:$0xff] %v3519_v54  ;;  %v3687_v54 = vld [vmem:[#allocation2 + $0xf8] sm:$0xff]  ;;  %v3689_v53 = vld [vmem:[#allocation2 + $0x108] sm:$0xff] }
  0x45   : > { %6983 = vst [vmem:[#allocation18_spill] sm:$0xff] %v3537_v59  ;;  %6984 = vst [vmem:[#allocation19_spill] sm:$0xff] %v3539_v60  ;;  %v3675_v60 = vmul.f32 %v3464_v34, %v3645_v29  ;;  %v3685_v59 = vld [vmem:[#allocation2 + $0xd0] sm:$0x3]  ;;  %v3713_v41 = vmul.f32 %v3464_v34, %v3687_v54  ;;  %v3717_v40 = vmul.f32 %v3464_v34, %v3689_v53  ;;  %v3729_v37 = vld [vmem:[#allocation2 + $0x128] sm:$0xff] }
  0x46   : > { %6985 = vst [vmem:[#allocation20_spill] sm:$0xff] %v3557_v1  ;;  %6986 = vst [vmem:[#allocation21_spill] sm:$0xff] %v3559_v2  ;;  %v3667_v2 = vld [vmem:[#allocation2 + $0xf0] sm:$0xff]  ;;  %v3671_v1 = vmul.f32 %v3464_v34, %v3643_v28  ;;  %v3731_v38 = vld [vmem:[#allocation2 + $0x138] sm:$0xff] }
  0x47   : > { %6987 = vst [vmem:[#allocation22_spill] sm:$0xff] %v3561_v3  ;;  %6988 = vst [vmem:[#allocation23_spill] sm:$0xff] %v3565_v4  ;;  %v3679_v3 = vmul.f32 %v3469_v36, %v3599_v14  ;;  %v3697_v47 = vmul.f32 %v3464_v34, %v3667_v2  ;;  %v653_v4 = vrot.slane %v3551_v63, 1 }
  0x48   : > { %6989 = vst [vmem:[#allocation24_spill] sm:$0xff] %v3569_v5  ;;  %6990 = vst [vmem:[#allocation25_spill] sm:$0xff] %v3579_v8  ;;  %v3683_v8 = vmul.f32 %v3469_v36, %v3581_v9  ;;  %v651_v5 = vrot.slane %v3535_v58, 1 }
  0x49   : > { %6991 = vst [vmem:[#allocation26_spill] sm:$0xff] %v3581_v9  ;;  %6992 = vst [vmem:[#allocation27_spill] sm:$0xff] %v3585_v10  ;;  %v3705_v9 = vmul.f32 %v3469_v36, %v3621_v21  ;;  %v648_v10 = vrot.slane %v3515_v52, 1 }
  0x4a   : > { %6993 = vst [vmem:[#allocation28_spill] sm:$0xff] %v3589_v11  ;;  %6994 = vst [vmem:[#allocation29_spill] sm:$0xff] %v3599_v14  ;;  %v3701_v14 = vmul.f32 %v3469_v36, %v3601_v15  ;;  %v646_v11 = vrot.slane %v3511_v51, 1  ;;  %v656_v51 = vrot.slane %v3573_v6, 1 }
  0x4b   : > { %6995 = vst [vmem:[#allocation30_spill] sm:$0xff] %v3601_v15  ;;  %6996 = vst [vmem:[#allocation31_spill] sm:$0xff] %v3603_v16  ;;  %v3721_v15 = vmul.f32 %v3469_v36, %v3603_v16  ;;  %v3743_v16 = vmul.f32 %v3469_v36, %v3663_v35 }
  0x4c   : > { %6997 = vst [vmem:[#allocation32_spill] sm:$0xff] %v3607_v17  ;;  %6998 = vst [vmem:[#allocation33_spill] sm:$0xff] %v3611_v18  ;;  %v3819_v17 = vmul.f32 %v3469_v36, %v3687_v54 }
  0x4d   : > { %6999 = vst [vmem:[#allocation34_spill] sm:$0xff] %v3621_v21  ;;  %7000 = vst [vmem:[#allocation35_spill] sm:$0xff] %v3623_v22  ;;  %v3725_v21 = vmul.f32 %v3469_v36, %v3623_v22  ;;  %v3747_v22 = vmul.f32 %v3469_v36, %v3625_v23 }
  0x4e   : > { %7001 = vst [vmem:[#allocation36_spill] sm:$0xff] %v3625_v23  ;;  %7002 = vst [vmem:[#allocation37_spill] sm:$0xff] %v3629_v24  ;;  %v3769_v23 = vmul.f32 %v3469_v36, %v3685_v59  ;;  %v3795_v24 = vld [vmem:[#allocation2 + $0x170] sm:$0xff] }
  0x4f   : > { %7003 = vst [vmem:[#allocation38_spill] sm:$0xff] %v3633_v25  ;;  %7004 = vst [vmem:[#allocation39_spill] sm:$0xff] %v3643_v28  ;;  %v3793_v25 = vld [vmem:[#allocation2 + $0x130] sm:$0x3] }
  0x50   : > { %7005 = vst [vmem:[#allocation40_spill] sm:$0xff] %v3645_v29  ;;  %7006 = vst [vmem:[#allocation41_spill] sm:$0xff] %v3649_v30  ;;  %v3775_v30 = vld [vmem:[#allocation2 + $0x168] sm:$0xff] }
  0x51   : > { %7007 = vst [vmem:[#allocation42_spill] sm:$0xff] %v3653_v31  ;;  %7008 = vst [vmem:[#allocation43_spill] sm:$0xff] %v3663_v35  ;;  %v3765_v35 = vmul.f32 %v3469_v36, %v3643_v28  ;;  %v3773_v31 = vld [vmem:[#allocation2 + $0x158] sm:$0xff]  ;;  %v3787_v28 = vmul.f32 %v3469_v36, %v3645_v29  ;;  %v3807_v29 = vmul.f32 %v3469_v36, %v3727_v39 }
  0x52   : > { %7009 = vst [vmem:[#allocation44_spill] sm:$0xff] %v3665_v46  ;;  %7010 = vst [vmem:[#allocation45_spill] sm:$0xff] %v3667_v2  ;;  %v3799_v18 = vmul.f32 %v3464_v34, %v3773_v31  ;;  %v3889_v63 = vmul.f32 %v3469_v36, %v3775_v30 }
  0x53   : > { %7011 = vst [vmem:[#allocation46_spill] sm:$0xff] %v3671_v1  ;;  %7012 = vst [vmem:[#allocation47_spill] sm:$0xff] %v3675_v60  ;;  %v3753_v60 = vld [vmem:[#allocation2 + $0x150] sm:$0xff]  ;;  %v3771_v1 = vld [vmem:[#allocation2 + $0x118] sm:$0x3] }
  0x54   : > { %7013 = vst [vmem:[#allocation48_spill] sm:$0xff] %v3685_v59  ;;  %7014 = vst [vmem:[#allocation49_spill] sm:$0xff] %v3687_v54  ;;  %v3791_v59 = vmul.f32 %v3469_v36, %v3665_v46  ;;  %v3811_v46 = vmul.f32 %v3469_v36, %v3667_v2  ;;  %v3833_v2 = vmul.f32 %v3469_v36, %v3707_v43 }
  0x55   : > { %7015 = vst [vmem:[#allocation50_spill] sm:$0xff] %v3689_v53  ;;  %7016 = vst [vmem:[#allocation51_spill] sm:$0xff] %v3693_v48  ;;  %v3751_v48 = vld [vmem:[#allocation2 + $0x140] sm:$0xff]  ;;  %v3841_v54 = vmul.f32 %v3469_v36, %v3709_v42  ;;  %v3877_v52 = vmul.f32 %v3469_v36, %v3753_v60 }
  0x56   : > { %7017 = vst [vmem:[#allocation52_spill] sm:$0xff] %v3697_v47  ;;  %7018 = vst [vmem:[#allocation53_spill] sm:$0xff] %v3707_v43  ;;  %v3749_v47 = vld [vmem:[#allocation2 + $0x100] sm:$0x3] }
  0x57   : > { %7019 = vst [vmem:[#allocation54_spill] sm:$0xff] %v3709_v42  ;;  %7020 = vst [vmem:[#allocation55_spill] sm:$0xff] %v3713_v41  ;;  %v3735_v41 = vmul.f32 %v3464_v34, %v3707_v43  ;;  %v3855_v43 = vmul.f32 %v3469_v36, %v3731_v38 }
  0x58   : > { %7021 = vst [vmem:[#allocation56_spill] sm:$0xff] %v3717_v40  ;;  %7022 = vst [vmem:[#allocation57_spill] sm:$0xff] %v3727_v39  ;;  %v3739_v40 = vmul.f32 %v3464_v34, %v3709_v42  ;;  %v3827_v39 = vmul.f32 %v3469_v36, %v3689_v53  ;;  %v3847_v53 = vld [vmem:[#allocation2 + $0x160] sm:$0x3]  ;;  %v3859_v42 = vld [vmem:[#allocation2 + $0x178] sm:$0x3] }
  0x59   : > { %7023 = vst [vmem:[#allocation58_spill] sm:$0xff] %v3729_v37  ;;  %7024 = vst [vmem:[#allocation59_spill] sm:$0xff] %v3731_v38  ;;  %v3885_v58 = vmul.f32 %v3469_v36, %v3847_v53  ;;  %v3897_v6 = vmul.f32 %v3469_v36, %v3859_v42 }
  0x5a   : > { %7025 = vst [vmem:[#allocation60_spill] sm:$0xff] %v3735_v41  ;;  %7026 = vst [vmem:[#allocation61_spill] sm:$0xff] %v3739_v40  ;;  %v3757_v41 = vmul.f32 %v3464_v34, %v3729_v37  ;;  %v3761_v40 = vmul.f32 %v3464_v34, %v3731_v38 }
  0x5b   : > { %7027 = vst [vmem:[#allocation62_spill] sm:$0xff] %v3749_v47  ;;  %7028 = vst [vmem:[#allocation63_spill] sm:$0xff] %v3751_v48 }
  0x5c   : > { %7029 = vst [vmem:[#allocation64_spill] sm:$0xff] %v3753_v60  ;;  %7030 = vst [vmem:[#allocation65_spill] sm:$0xff] %v3757_v41  ;;  %v3779_v41 = vmul.f32 %v3464_v34, %v3751_v48 }
  0x5d   : > { %7031 = vst [vmem:[#allocation66_spill] sm:$0xff] %v3761_v40  ;;  %7032 = vst [vmem:[#allocation67_spill] sm:$0xff] %v3771_v1  ;;  %v3783_v40 = vmul.f32 %v3464_v34, %v3753_v60 }
  0x5e   : > { %7033 = vst [vmem:[#allocation68_spill] sm:$0xff] %v3773_v31  ;;  %7034 = vst [vmem:[#allocation69_spill] sm:$0xff] %v3775_v30 }
  0x5f   : > { %7035 = vst [vmem:[#allocation70_spill] sm:$0xff] %v3779_v41  ;;  %7036 = vst [vmem:[#allocation71_spill] sm:$0xff] %v3783_v40  ;;  %v3803_v41 = vmul.f32 %v3464_v34, %v3775_v30  ;;  %v3815_v40 = vmul.f32 %v3464_v34, %v3795_v24  ;;  %v3837_v34 = vmul.f32 %v3469_v36, %v3771_v1  ;;  %v645_v1 = vrot.slane %v3492_v45, 1 }
  0x60   : > { %7037 = vst [vmem:[#allocation72_spill] sm:$0xff] %v3793_v25  ;;  %7038 = vst [vmem:[#allocation73_spill] sm:$0xff] %v3795_v24  ;;  %v655_v45 = vrot.slane %v3555_v0, 1  ;;  %v3893_v0 = vmul.f32 %v3469_v36, %v3795_v24  ;;  %v3910_v30 = vsel %vm644_vm3, %v651_v5, %v653_v4  ;;  %v660_v24 = vrot.slane %v3593_v12, 1 }
  0x61   : > { %7039 = vst [vmem:[#allocation74_spill] sm:$0xff] %v3799_v18  ;;  %7040 = vst [vmem:[#allocation75_spill] sm:$0xff] %v3803_v41  ;;  %v3823_v18 = vmul.f32 %v3469_v36, %v3749_v47  ;;  %v3829_v41 = vld [vmem:[#allocation2 + $0x148] sm:$0x3]  ;;  %v3845_v47 = vmul.f32 %v3469_v36, %v3729_v37  ;;  %v650_v37 = vrot.slane %v3531_v57, 1  ;;  %v3881_v57 = vmul.f32 %v3469_v36, %v3773_v31 }
  0x62   : > { %7041 = vst [vmem:[#allocation76_spill] sm:$0xff] %v3815_v40  ;;  %7042 = vst [vmem:[#allocation77_spill] sm:$0xff] %v3829_v41  ;;  %v3851_v40 = vmul.f32 %v3469_v36, %v3793_v25  ;;  %v3867_v25 = vmul.f32 %v3469_v36, %v3751_v48  ;;  %v3871_v38 = vmul.f32 %v3469_v36, %v3829_v41  ;;  %v658_v31 = vrot.slane %v3577_v7, 1 }
  0x63   : > { %7043 = vst [vmem:[#allocation78_spill] sm:$0xff] %v3847_v53  ;;  %7044 = vst [vmem:[#allocation79_spill] sm:$0xff] %v3859_v42  ;;  %v3900_v60 = vsel %vm644_vm3, %v645_v1, %v646_v11  ;;  %v3904_v53 = vsel %vm644_vm3, %v646_v11, %v648_v10  ;;  %v3907_v41 = vsel %vm644_vm3, %v650_v37, %v651_v5  ;;  %v661_v36 = vrot.slane %v3597_v13, 1 }
  0x64   : > { %v3914_v48 = vsel %vm644_vm3, %v655_v45, %v656_v51  ;;  %v663_v1 = vrot.slane %v3615_v19, 1  ;;  %v665_v7 = vrot.slane %v3619_v20, 1  ;;  %v666_v10 = vrot.slane %v3637_v26, 1 }
  0x65   : > { %v668_v11 = vrot.slane %v3641_v27, 1  ;;  %v670_v37 = vrot.slane %v3657_v32, 1  ;;  %v671_v4 = vrot.slane %v3661_v33, 1  ;;  %v673_v5 = vrot.slane %v3679_v3, 1 }
  0x66   : > { %v675_v12 = vrot.slane %v3683_v8, 1  ;;  %v676_v45 = vrot.slane %v3701_v14, 1  ;;  %v678_v13 = vrot.slane %v3705_v9, 1  ;;  %v659_v19 = vsel %vm644_vm3, %v656_v51, %v658_v31 }
  0x67   : > { %v680_v20 = vrot.slane %v3721_v15, 1  ;;  %v681_v26 = vrot.slane %v3725_v21, 1  ;;  %v683_v27 = vrot.slane %v3743_v16, 1  ;;  %v662_v32 = vsel %vm644_vm3, %v660_v24, %v661_v36 }
  0x68   : > { %v685_v33 = vrot.slane %v3747_v22, 1  ;;  %v686_v3 = vrot.slane %v3765_v35, 1  ;;  %v688_v8 = vrot.slane %v3769_v23, 1  ;;  %v664_v14 = vsel %vm644_vm3, %v661_v36, %v663_v1 }
  0x69   : > { %v667_v9 = vsel %vm644_vm3, %v665_v7, %v666_v10  ;;  %v669_v31 = vsel %vm644_vm3, %v666_v10, %v668_v11  ;;  %v672_v15 = vsel %vm644_vm3, %v670_v37, %v671_v4  ;;  %v674_v21 = vsel %vm644_vm3, %v671_v4, %v673_v5 }
  0x6a   : > { %v677_v16 = vsel %vm644_vm3, %v675_v12, %v676_v45  ;;  %v679_v24 = vsel %vm644_vm3, %v676_v45, %v678_v13  ;;  %v690_v22 = vrot.slane %v3787_v28, 1  ;;  %v682_v35 = vsel %vm644_vm3, %v680_v20, %v681_v26 }
  0x6b   : > { %v684_v23 = vsel %vm644_vm3, %v681_v26, %v683_v27  ;;  %v691_v51 = vrot.slane %v3791_v59, 1  ;;  %v693_v36 = vrot.slane %v3807_v29, 1  ;;  %v687_v1 = vsel %vm644_vm3, %v685_v33, %v686_v3 }
  0x6c   : > { %v689_v7 = vsel %vm644_vm3, %v686_v3, %v688_v8  ;;  %v695_v10 = vrot.slane %v3811_v46, 1  ;;  %v696_v11 = vrot.slane %v3819_v17, 1  ;;  %v698_v37 = vrot.slane %v3823_v18, 1 }
  0x6d   : > { %v700_v28 = vrot.slane %v3827_v39, 1  ;;  %v701_v4 = vrot.slane %v3833_v2, 1  ;;  %v703_v5 = vrot.slane %v3837_v34, 1  ;;  %v705_v59 = vrot.slane %v3841_v54, 1 }
  0x6e   : > { %v706_v29 = vrot.slane %v3845_v47, 1  ;;  %v708_v12 = vrot.slane %v3851_v40, 1  ;;  %v710_v45 = vrot.slane %v3855_v43, 1  ;;  %v711_v46 = vrot.slane %v3867_v25, 1 }
  0x6f   : > { %v713_v17 = vrot.slane %v3871_v38, 1  ;;  %v715_v18 = vrot.slane %v3877_v52, 1  ;;  %v716_v39 = vrot.slane %v3881_v57, 1  ;;  %v692_v2 = vsel %vm644_vm3, %v690_v22, %v691_v51 }
  0x70   : > { %v694_v34 = vsel %vm644_vm3, %v691_v51, %v693_v36  ;;  %v697_v54 = vsel %vm644_vm3, %v695_v10, %v696_v11  ;;  %v718_v47 = vrot.slane %v3885_v58, 1  ;;  %v699_v40 = vsel %vm644_vm3, %v696_v11, %v698_v37  ;;  %v7051_v36 = vld [vmem:[#allocation28_spill] sm:$0xff] }
  0x71   : > { %v720_v43 = vrot.slane %v3889_v63, 1  ;;  %v721_v25 = vrot.slane %v3893_v0, 1  ;;  %v723_v38 = vrot.slane %v3897_v6, 1  ;;  %v702_v52 = vsel %vm644_vm3, %v700_v28, %v701_v4 }
  0x72   : > { %v704_v57 = vsel %vm644_vm3, %v701_v4, %v703_v5  ;;  %v707_v13 = vsel %vm644_vm3, %v705_v59, %v706_v29  ;;  %v709_v20 = vsel %vm644_vm3, %v706_v29, %v708_v12  ;;  %v712_v26 = vsel %vm644_vm3, %v710_v45, %v711_v46 }
  0x73   : > { %v714_v58 = vsel %vm644_vm3, %v711_v46, %v713_v17  ;;  %v717_v27 = vsel %vm644_vm3, %v715_v18, %v716_v39  ;;  %v3980_v63 = vadd.f32 %v3900_v60, %v3489_v44  ;;  %v719_v0 = vsel %vm644_vm3, %v716_v39, %v718_v47  ;;  %v7081_v18 = vld [vmem:[#allocation65_spill] sm:$0xff] }
  0x74   : > { %v3985_v6 = vadd.f32 %v3904_v53, %v3503_v49  ;;  %v3989_v33 = vadd.f32 %v3907_v41, %v3507_v50  ;;  %v3993_v3 = vadd.f32 %v3910_v30, %v3523_v55  ;;  %v722_v8 = vsel %vm644_vm3, %v720_v43, %v721_v25  ;;  %v7045_v41 = vld [vmem:[#allocation23_spill] sm:$0xff]  ;;  %v7047_v53 = vld [vmem:[#allocation24_spill] sm:$0xff] }
  0x75   : > { %v724_v22 = vsel %vm644_vm3, %v721_v25, %v723_v38  ;;  %v3999_v44 = vadd.f32 %v3914_v48, %v3527_v56  ;;  %v4002_v60 = vadd.f32 %v659_v19, %v3543_v61  ;;  %v4005_v49 = vadd.f32 %v662_v32, %v3547_v62  ;;  %v7049_v30 = vld [vmem:[#allocation27_spill] sm:$0xff]  ;;  %v7053_v48 = vld [vmem:[#allocation32_spill] sm:$0xff]  ;;  %v7055_v61 = vld [vmem:[#allocation33_spill] sm:$0xff] }
  0x76   : > { %v4008_v50 = vadd.f32 %v664_v14, %v7045_v41  ;;  %v4011_v55 = vadd.f32 %v667_v9, %v7047_v53  ;;  %v4014_v51 = vadd.f32 %v669_v31, %v7049_v30  ;;  %v4017_v10 = vadd.f32 %v672_v15, %v7051_v36  ;;  %v7057_v62 = vld [vmem:[#allocation37_spill] sm:$0xff]  ;;  %v7059_v14 = vld [vmem:[#allocation38_spill] sm:$0xff] }
  0x77   : > { %v4020_v56 = vadd.f32 %v674_v21, %v7053_v48  ;;  %v4023_v19 = vadd.f32 %v677_v16, %v7055_v61  ;;  %v4026_v32 = vadd.f32 %v679_v24, %v7057_v62  ;;  %v4029_v11 = vadd.f32 %v682_v35, %v7059_v14  ;;  %v7061_v9 = vld [vmem:[#allocation41_spill] sm:$0xff]  ;;  %v7063_v31 = vld [vmem:[#allocation42_spill] sm:$0xff]  ;;  %v7067_v21 = vld [vmem:[#allocation47_spill] sm:$0xff] }
  0x78   : > { %7046 = vst [vmem:[#allocation23_spill] sm:$0xff] %v4008_v50  ;;  %7048 = vst [vmem:[#allocation24_spill] sm:$0xff] %v4011_v55  ;;  %v4032_v37 = vadd.f32 %v684_v23, %v7061_v9  ;;  %v4035_v28 = vadd.f32 %v687_v1, %v7063_v31  ;;  %v7065_v15 = vld [vmem:[#allocation46_spill] sm:$0xff]  ;;  %v4041_v5 = vadd.f32 %v692_v2, %v7067_v21  ;;  %v7069_v16 = vld [vmem:[#allocation51_spill] sm:$0xff] }
  0x79   : > { %7050 = vst [vmem:[#allocation27_spill] sm:$0xff] %v4014_v51  ;;  %7052 = vst [vmem:[#allocation28_spill] sm:$0xff] %v4017_v10  ;;  %v4038_v4 = vadd.f32 %v689_v7, %v7065_v15  ;;  %v4044_v59 = vadd.f32 %v694_v34, %v7069_v16  ;;  %v7071_v24 = vld [vmem:[#allocation52_spill] sm:$0xff]  ;;  %v7073_v35 = vld [vmem:[#allocation55_spill] sm:$0xff]  ;;  %v4062_v39 = vadd.f32 %v709_v20, %v7081_v18 }
  0x7a   : > { %7054 = vst [vmem:[#allocation32_spill] sm:$0xff] %v4020_v56  ;;  %7056 = vst [vmem:[#allocation33_spill] sm:$0xff] %v4023_v19  ;;  %v4047_v29 = vadd.f32 %v697_v54, %v7071_v24  ;;  %v4050_v12 = vadd.f32 %v699_v40, %v7073_v35  ;;  %v7075_v23 = vld [vmem:[#allocation56_spill] sm:$0xff]  ;;  %v7079_v7 = vld [vmem:[#allocation61_spill] sm:$0xff] }
  0x7b   : > { %7058 = vst [vmem:[#allocation37_spill] sm:$0xff] %v4026_v32  ;;  %7060 = vst [vmem:[#allocation38_spill] sm:$0xff] %v4029_v11  ;;  %v4053_v45 = vadd.f32 %v702_v52, %v7075_v23  ;;  %v7077_v1 = vld [vmem:[#allocation60_spill] sm:$0xff]  ;;  %v4059_v17 = vadd.f32 %v707_v13, %v7079_v7  ;;  %v7083_v2 = vld [vmem:[#allocation66_spill] sm:$0xff] }
  0x7c   : > { %7062 = vst [vmem:[#allocation41_spill] sm:$0xff] %v4032_v37  ;;  %7064 = vst [vmem:[#allocation42_spill] sm:$0xff] %v4035_v28  ;;  %v4056_v46 = vadd.f32 %v704_v57, %v7077_v1  ;;  %v4065_v34 = vadd.f32 %v712_v26, %v7083_v2  ;;  %v7085_v54 = vld [vmem:[#allocation70_spill] sm:$0xff]  ;;  %v7087_v40 = vld [vmem:[#allocation71_spill] sm:$0xff] }
  0x7d   : > { %7066 = vst [vmem:[#allocation46_spill] sm:$0xff] %v4038_v4  ;;  %7068 = vst [vmem:[#allocation47_spill] sm:$0xff] %v4041_v5  ;;  %v4068_v47 = vadd.f32 %v714_v58, %v7085_v54  ;;  %v4071_v43 = vadd.f32 %v717_v27, %v7087_v40  ;;  %v7089_v25 = vld [vmem:[#allocation74_spill] sm:$0xff]  ;;  %v7091_v52 = vld [vmem:[#allocation75_spill] sm:$0xff] }
  0x7e   : > { %7070 = vst [vmem:[#allocation51_spill] sm:$0xff] %v4044_v59  ;;  %7072 = vst [vmem:[#allocation52_spill] sm:$0xff] %v4047_v29  ;;  %v4074_v38 = vadd.f32 %v719_v0, %v7089_v25  ;;  %v4077_v57 = vadd.f32 %v722_v8, %v7091_v52  ;;  %v7093_v13 = vld [vmem:[#allocation76_spill] sm:$0xff]  ;;  %v7095_v20 = vld [vmem:[#allocation7_spill] sm:$0xff] }
  0x7f   : > { %7074 = vst [vmem:[#allocation55_spill] sm:$0xff] %v4050_v12  ;;  %7076 = vst [vmem:[#allocation56_spill] sm:$0xff] %v4053_v45  ;;  %v4080_v41 = vadd.f32 %v724_v22, %v7093_v13  ;;  %v7096_v53 = vld [vmem:[#allocation6_spill] sm:$0xff]  ;;  %v7097_v26 = vld [vmem:[#allocation8_spill] sm:$0xff] }
  0x80   : > { %7078 = vst [vmem:[#allocation60_spill] sm:$0xff] %v4056_v46  ;;  %7080 = vst [vmem:[#allocation61_spill] sm:$0xff] %v4059_v17  ;;  %v795_v30 = vmul.f32 %v7096_v53, %v7095_v20  ;;  %v796_v36 = vmul.f32 %v7096_v53, %v7097_v26  ;;  %v7098_v58 = vld [vmem:[#allocation9_spill] sm:$0xff]  ;;  %v7099_v27 = vld [vmem:[#allocation10_spill] sm:$0xff] }
  0x81   : > { %7082 = vst [vmem:[#allocation65_spill] sm:$0xff] %v4062_v39  ;;  %7084 = vst [vmem:[#allocation66_spill] sm:$0xff] %v4065_v34  ;;  %v797_v48 = vmul.f32 %v7096_v53, %v7098_v58  ;;  %v798_v61 = vmul.f32 %v7096_v53, %v7099_v27  ;;  %v7100_v0 = vld [vmem:[#allocation11_spill] sm:$0xff]  ;;  %v7101_v8 = vld [vmem:[#allocation12_spill] sm:$0xff] }
  0x82   : > { %7086 = vst [vmem:[#allocation70_spill] sm:$0xff] %v4068_v47  ;;  %7088 = vst [vmem:[#allocation71_spill] sm:$0xff] %v4071_v43  ;;  %v799_v62 = vmul.f32 %v7096_v53, %v7100_v0  ;;  %v4094_v14 = vmul.f32 %v7096_v53, %v7101_v8  ;;  %v7102_v22 = vld [vmem:[#allocation14_spill] sm:$0xff]  ;;  %v7103_v31 = vld [vmem:[#allocation15_spill] sm:$0xff]  ;;  %v894_v37 = vrot.slane %v796_v36, 2 }
  0x83   : > { %7090 = vst [vmem:[#allocation74_spill] sm:$0xff] %v4074_v38  ;;  %7092 = vst [vmem:[#allocation75_spill] sm:$0xff] %v4077_v57  ;;  %v4098_v9 = vmul.f32 %v7096_v53, %v7102_v22  ;;  %v4102_v15 = vmul.f32 %v7096_v53, %v7103_v31  ;;  %v7104_v21 = vld [vmem:[#allocation16_spill] sm:$0xff]  ;;  %v7105_v24 = vld [vmem:[#allocation17_spill] sm:$0xff]  ;;  %v896_v32 = vrot.slane %v797_v48, 2  ;;  %v897_v19 = vrot.slane %v798_v61, 2 }
  0x84   : > { %7094 = vst [vmem:[#allocation76_spill] sm:$0xff] %v4080_v41  ;;  %v4106_v16 = vmul.f32 %v7096_v53, %v7104_v21  ;;  %v4110_v35 = vmul.f32 %v7096_v53, %v7105_v24  ;;  %v7106_v23 = vld [vmem:[#allocation18_spill] sm:$0xff]  ;;  %v7107_v7 = vld [vmem:[#allocation19_spill] sm:$0xff]  ;;  %v7108_v2 = vld [vmem:[#allocation20_spill] sm:$0xff] }
  0x85   : > { %v4114_v1 = vmul.f32 %v7096_v53, %v7106_v23  ;;  %v4118_v18 = vmul.f32 %v7096_v53, %v7107_v7  ;;  %v4122_v54 = vmul.f32 %v7096_v53, %v7108_v2  ;;  %v7109_v40 = vld [vmem:[#allocation21_spill] sm:$0xff]  ;;  %v7110_v52 = vld [vmem:[#allocation22_spill] sm:$0xff]  ;;  %v7116_v21 = vld [vmem:[#allocation31_spill] sm:$0xff]  ;;  %v902_v55 = vrot.slane %v4098_v9, 2 }
  0x86   : > { %v4126_v25 = vmul.f32 %v7096_v53, %v7109_v40  ;;  %v4130_v13 = vmul.f32 %v7096_v53, %v7110_v52  ;;  %v7111_v20 = vld [vmem:[#allocation25_spill] sm:$0xff]  ;;  %v7113_v0 = vld [vmem:[#allocation26_spill] sm:$0xff]  ;;  %v7117_v22 = vld [vmem:[#allocation35_spill] sm:$0xff]  ;;  %v4271_v50 = vsel %vm890_vm4, %v896_v32, %v897_v19 }
  0x87   : > { %v4134_v26 = vmul.f32 %v7096_v53, %v7111_v20  ;;  %v7112_v23 = vld [vmem:[#allocation29_spill] sm:$0xff]  ;;  %v4142_v2 = vmul.f32 %v7096_v53, %v7113_v0  ;;  %v7114_v7 = vld [vmem:[#allocation30_spill] sm:$0xff]  ;;  %v4154_v20 = vmul.f32 %v7096_v53, %v7116_v21  ;;  %v7118_v8 = vld [vmem:[#allocation43_spill] sm:$0xff] }
  0x88   : > { %v4138_v31 = vmul.f32 %v7096_v53, %v7112_v23  ;;  %v4146_v40 = vmul.f32 %v7096_v53, %v7114_v7  ;;  %v7115_v24 = vld [vmem:[#allocation34_spill] sm:$0xff]  ;;  %v4158_v23 = vmul.f32 %v7096_v53, %v7117_v22  ;;  %v4162_v0 = vmul.f32 %v7096_v53, %v7118_v8  ;;  %v7119_v27 = vld [vmem:[#allocation36_spill] sm:$0xff]  ;;  %v7120_v58 = vld [vmem:[#allocation39_spill] sm:$0xff] }
  0x89   : > { %v4150_v52 = vmul.f32 %v7096_v53, %v7115_v24  ;;  %v4166_v7 = vmul.f32 %v7096_v53, %v7119_v27  ;;  %v4170_v24 = vmul.f32 %v7096_v53, %v7120_v58  ;;  %v7121_v41 = vld [vmem:[#allocation48_spill] sm:$0xff]  ;;  %v7124_v43 = vld [vmem:[#allocation57_spill] sm:$0xff]  ;;  %v7127_v39 = vld [vmem:[#allocation62_spill] sm:$0xff]  ;;  %v916_v9 = vrot.slane %v4130_v13, 2 }
  0x8a   : > { %v4174_v21 = vmul.f32 %v7096_v53, %v7121_v41  ;;  %v7122_v57 = vld [vmem:[#allocation40_spill] sm:$0xff]  ;;  %v4186_v27 = vmul.f32 %v7096_v53, %v7124_v43  ;;  %v7125_v47 = vld [vmem:[#allocation45_spill] sm:$0xff]  ;;  %v7128_v17 = vld [vmem:[#allocation50_spill] sm:$0xff]  ;;  %v917_v32 = vrot.slane %v4134_v26, 2  ;;  %v929_v13 = vrot.slane %v4162_v0, 2 }
  0x8b   : > { %v4178_v22 = vmul.f32 %v7096_v53, %v7122_v57  ;;  %v7123_v38 = vld [vmem:[#allocation44_spill] sm:$0xff]  ;;  %v4190_v58 = vmul.f32 %v7096_v53, %v7125_v47  ;;  %v7126_v34 = vld [vmem:[#allocation49_spill] sm:$0xff]  ;;  %v4198_v57 = vmul.f32 %v7096_v53, %v7127_v39  ;;  %v7130_v45 = vld [vmem:[#allocation67_spill] sm:$0xff] }
  0x8c   : > { %v4182_v8 = vmul.f32 %v7096_v53, %v7123_v38  ;;  %v4194_v41 = vmul.f32 %v7096_v53, %v7126_v34  ;;  %v4202_v38 = vmul.f32 %v7096_v53, %v7128_v17  ;;  %v7129_v46 = vld [vmem:[#allocation53_spill] sm:$0xff]  ;;  %v4210_v47 = vmul.f32 %v7096_v53, %v7130_v45  ;;  %v7131_v12 = vld [vmem:[#allocation54_spill] sm:$0xff]  ;;  %v7133_v59 = vld [vmem:[#allocation72_spill] sm:$0xff] }
  0x8d   : > { %v4206_v43 = vmul.f32 %v7096_v53, %v7129_v46  ;;  %v4214_v34 = vmul.f32 %v7096_v53, %v7131_v12  ;;  %v7132_v29 = vld [vmem:[#allocation58_spill] sm:$0xff]  ;;  %v4222_v17 = vmul.f32 %v7096_v53, %v7133_v59  ;;  %v7134_v5 = vld [vmem:[#allocation59_spill] sm:$0xff]  ;;  %v7135_v4 = vld [vmem:[#allocation13_spill] sm:$0xff]  ;;  %v892_v45 = vrot.slane %v795_v30, 2 }
  0x8e   : > { %v4218_v39 = vmul.f32 %v7096_v53, %v7132_v29  ;;  %v4226_v46 = vmul.f32 %v7096_v53, %v7134_v5  ;;  %v891_v28 = vrot.slane %v7135_v4, 2  ;;  %v7136_v11 = vld [vmem:[#allocation63_spill] sm:$0xff]  ;;  %v899_v29 = vrot.slane %v799_v62, 2  ;;  %v7137_v56 = vld [vmem:[#allocation77_spill] sm:$0xff]  ;;  %v7138_v59 = vld [vmem:[#allocation64_spill] sm:$0xff] }
  0x8f   : > { %v4231_v12 = vmul.f32 %v7096_v53, %v7136_v11  ;;  %v4235_v10 = vmul.f32 %v7096_v53, %v7137_v56  ;;  %v4239_v51 = vmul.f32 %v7096_v53, %v7138_v59  ;;  %v7139_v5 = vld [vmem:[#allocation68_spill] sm:$0xff]  ;;  %v7140_v30 = vld [vmem:[#allocation78_spill] sm:$0xff]  ;;  %v7141_v11 = vld [vmem:[#allocation69_spill] sm:$0xff]  ;;  %v4259_v56 = vmul.f32 %v7096_v53, %v3859_v42 }
  0x90   : > { %v4243_v4 = vmul.f32 %v7096_v53, %v7139_v5  ;;  %v4247_v36 = vmul.f32 %v7096_v53, %v7140_v30  ;;  %v4251_v48 = vmul.f32 %v7096_v53, %v7141_v11  ;;  %v7142_v61 = vld [vmem:[#allocation73_spill] sm:$0xff]  ;;  %v901_v59 = vrot.slane %v4094_v14, 2 }
  0x91   : > { %v4255_v62 = vmul.f32 %v7096_v53, %v7142_v61  ;;  %v4263_v5 = vsel %vm890_vm4, %v891_v28, %v892_v45  ;;  %v4266_v30 = vsel %vm890_vm4, %v892_v45, %v894_v37  ;;  %v904_v11 = vrot.slane %v4102_v15, 2 }
  0x92   : > { %v4274_v61 = vsel %vm890_vm4, %v897_v19, %v899_v29  ;;  %v906_v53 = vrot.slane %v4106_v16, 2  ;;  %v907_v14 = vrot.slane %v4110_v35, 2  ;;  %v909_v28 = vrot.slane %v4114_v1, 2 }
  0x93   : > { %v911_v42 = vrot.slane %v4118_v18, 2  ;;  %v912_v37 = vrot.slane %v4122_v54, 2  ;;  %v914_v45 = vrot.slane %v4126_v25, 2  ;;  %v919_v15 = vrot.slane %v4138_v31, 2 }
  0x94   : > { %v921_v19 = vrot.slane %v4142_v2, 2  ;;  %v922_v29 = vrot.slane %v4146_v40, 2  ;;  %v924_v16 = vrot.slane %v4150_v52, 2  ;;  %v926_v35 = vrot.slane %v4154_v20, 2 }
  0x95   : > { %v927_v1 = vrot.slane %v4158_v23, 2  ;;  %v903_v18 = vsel %vm890_vm4, %v901_v59, %v902_v55  ;;  %v905_v54 = vsel %vm890_vm4, %v902_v55, %v904_v11  ;;  %v908_v25 = vsel %vm890_vm4, %v906_v53, %v907_v14 }
  0x96   : > { %v910_v31 = vsel %vm890_vm4, %v907_v14, %v909_v28  ;;  %v931_v2 = vrot.slane %v4166_v7, 2  ;;  %v932_v40 = vrot.slane %v4170_v24, 2  ;;  %v934_v52 = vrot.slane %v4174_v21, 2 }
  0x97   : > { %v913_v20 = vsel %vm890_vm4, %v911_v42, %v912_v37  ;;  %v915_v23 = vsel %vm890_vm4, %v912_v37, %v914_v45  ;;  %v918_v59 = vsel %vm890_vm4, %v916_v9, %v917_v32  ;;  %v920_v55 = vsel %vm890_vm4, %v917_v32, %v919_v15 }
  0x98   : > { %v923_v11 = vsel %vm890_vm4, %v921_v19, %v922_v29  ;;  %v925_v0 = vsel %vm890_vm4, %v922_v29, %v924_v16  ;;  %v928_v26 = vsel %vm890_vm4, %v926_v35, %v927_v1  ;;  %v936_v7 = vrot.slane %v4178_v22, 2 }
  0x99   : > { %v930_v24 = vsel %vm890_vm4, %v927_v1, %v929_v13  ;;  %v937_v21 = vrot.slane %v4182_v8, 2  ;;  %v939_v42 = vrot.slane %v4186_v27, 2  ;;  %v941_v53 = vrot.slane %v4190_v58, 2 }
  0x9a   : > { %v933_v14 = vsel %vm890_vm4, %v931_v2, %v932_v40  ;;  %v935_v28 = vsel %vm890_vm4, %v932_v40, %v934_v52  ;;  %v942_v37 = vrot.slane %v4194_v41, 2  ;;  %v944_v45 = vrot.slane %v4198_v57, 2 }
  0x9b   : > { %v946_v9 = vrot.slane %v4202_v38, 2  ;;  %v947_v22 = vrot.slane %v4206_v43, 2  ;;  %v949_v32 = vrot.slane %v4210_v47, 2  ;;  %v951_v8 = vrot.slane %v4214_v34, 2 }
  0x9c   : > { %v952_v27 = vrot.slane %v4218_v39, 2  ;;  %v954_v58 = vrot.slane %v4222_v17, 2  ;;  %v956_v15 = vrot.slane %v4226_v46, 2  ;;  %v957_v19 = vrot.slane %v4231_v12, 2 }
  0x9d   : > { %v959_v41 = vrot.slane %v4235_v10, 2  ;;  %v961_v57 = vrot.slane %v4239_v51, 2  ;;  %v962_v38 = vrot.slane %v4243_v4, 2  ;;  %v964_v43 = vrot.slane %v4247_v36, 2 }
  0x9e   : > { %v938_v47 = vsel %vm890_vm4, %v936_v7, %v937_v21  ;;  %v940_v34 = vsel %vm890_vm4, %v937_v21, %v939_v42  ;;  %v966_v39 = vrot.slane %v4251_v48, 2  ;;  %v967_v17 = vrot.slane %v4255_v62, 2  ;;  %v7145_v21 = vld [vmem:[#allocation27_spill] sm:$0xff] }
  0x9f   : > { %v943_v46 = vsel %vm890_vm4, %v941_v53, %v942_v37  ;;  %v945_v12 = vsel %vm890_vm4, %v942_v37, %v944_v45  ;;  %v948_v10 = vsel %vm890_vm4, %v946_v9, %v947_v22  ;;  %v969_v51 = vrot.slane %v4259_v56, 2 }
  0xa0   : > { %v950_v4 = vsel %vm890_vm4, %v947_v22, %v949_v32  ;;  %v953_v36 = vsel %vm890_vm4, %v951_v8, %v952_v27  ;;  %v955_v29 = vsel %vm890_vm4, %v952_v27, %v954_v58  ;;  %v958_v16 = vsel %vm890_vm4, %v956_v15, %v957_v19 }
  0xa1   : > { %v960_v48 = vsel %vm890_vm4, %v957_v19, %v959_v41  ;;  %v963_v62 = vsel %vm890_vm4, %v961_v57, %v962_v38  ;;  %v965_v35 = vsel %vm890_vm4, %v962_v38, %v964_v43  ;;  %v4343_v1 = vadd.f32 %v4263_v5, %v3980_v63  ;;  %v7162_v19 = vld [vmem:[#allocation61_spill] sm:$0xff]  ;;  %v7166_v43 = vld [vmem:[#allocation66_spill] sm:$0xff] }
  0xa2   : > { %v968_v56 = vsel %vm890_vm4, %v966_v39, %v967_v17  ;;  %v4348_v13 = vadd.f32 %v4266_v30, %v3985_v6  ;;  %v4352_v2 = vadd.f32 %v4271_v50, %v3989_v33  ;;  %v4356_v40 = vadd.f32 %v4274_v61, %v3993_v3  ;;  %v7143_v6 = vld [vmem:[#allocation23_spill] sm:$0xff]  ;;  %v7144_v33 = vld [vmem:[#allocation24_spill] sm:$0xff]  ;;  %v7164_v57 = vld [vmem:[#allocation65_spill] sm:$0xff] }
  0xa3   : > { %v970_v52 = vsel %vm890_vm4, %v967_v17, %v969_v51  ;;  %v4360_v7 = vadd.f32 %v903_v18, %v3999_v44  ;;  %v4363_v63 = vadd.f32 %v905_v54, %v4002_v60  ;;  %v4366_v5 = vadd.f32 %v908_v25, %v4005_v49  ;;  %v7146_v61 = vld [vmem:[#allocation28_spill] sm:$0xff]  ;;  %v7148_v60 = vld [vmem:[#allocation33_spill] sm:$0xff]  ;;  %v7170_v17 = vld [vmem:[#allocation71_spill] sm:$0xff] }
  0xa4   : > { %v4369_v30 = vadd.f32 %v910_v31, %v7143_v6  ;;  %v4372_v50 = vadd.f32 %v913_v20, %v7144_v33  ;;  %v4375_v3 = vadd.f32 %v915_v23, %v7145_v21  ;;  %v4378_v42 = vadd.f32 %v918_v59, %v7146_v61  ;;  %v7147_v44 = vld [vmem:[#allocation32_spill] sm:$0xff]  ;;  %v7149_v49 = vld [vmem:[#allocation37_spill] sm:$0xff]  ;;  %v7150_v31 = vld [vmem:[#allocation38_spill] sm:$0xff] }
  0xa5   : > { %v4381_v18 = vadd.f32 %v920_v55, %v7147_v44  ;;  %v4384_v54 = vadd.f32 %v923_v11, %v7148_v60  ;;  %v4387_v25 = vadd.f32 %v925_v0, %v7149_v49  ;;  %v4390_v53 = vadd.f32 %v928_v26, %v7150_v31  ;;  %v7151_v20 = vld [vmem:[#allocation41_spill] sm:$0xff]  ;;  %v7152_v23 = vld [vmem:[#allocation42_spill] sm:$0xff]  ;;  %v7154_v55 = vld [vmem:[#allocation47_spill] sm:$0xff] }
  0xa6   : > { %v4393_v37 = vadd.f32 %v930_v24, %v7151_v20  ;;  %v4396_v45 = vadd.f32 %v933_v14, %v7152_v23  ;;  %v7153_v59 = vld [vmem:[#allocation46_spill] sm:$0xff]  ;;  %v4402_v22 = vadd.f32 %v938_v47, %v7154_v55  ;;  %v7155_v11 = vld [vmem:[#allocation51_spill] sm:$0xff]  ;;  %v7156_v0 = vld [vmem:[#allocation52_spill] sm:$0xff]  ;;  %v4423_v41 = vadd.f32 %v953_v36, %v7162_v19 }
  0xa7   : > { %v4399_v9 = vadd.f32 %v935_v28, %v7153_v59  ;;  %v4405_v32 = vadd.f32 %v940_v34, %v7155_v11  ;;  %v4408_v8 = vadd.f32 %v943_v46, %v7156_v0  ;;  %v7157_v26 = vld [vmem:[#allocation55_spill] sm:$0xff]  ;;  %v7158_v24 = vld [vmem:[#allocation56_spill] sm:$0xff]  ;;  %v4426_v38 = vadd.f32 %v955_v29, %v7164_v57  ;;  %v7168_v34 = vld [vmem:[#allocation70_spill] sm:$0xff] }
  0xa8   : > { %v4411_v27 = vadd.f32 %v945_v12, %v7157_v26  ;;  %v4414_v58 = vadd.f32 %v948_v10, %v7158_v24  ;;  %v2928_v14 = vld [vmem:[%s6773_s1 + $0x4] ss:$0 sm:$0xff]  ;;  %7163 = vst [vmem:[#allocation8_spill] sm:$0xff] %v4423_v41  ;;  %v4429_v47 = vadd.f32 %v958_v16, %v7166_v43  ;;  %v4432_v39 = vadd.f32 %v960_v48, %v7168_v34  ;;  %v7172_v12 = vld [vmem:[#allocation74_spill] sm:$0xff]  ;;  %v7174_v51 = vld [vmem:[#allocation75_spill] sm:$0xff] }
  0xa9   : > { %v7160_v28 = vld [vmem:[#allocation60_spill] sm:$0xff]  ;;  %7165 = vst [vmem:[#allocation13_spill] sm:$0xff] %v4426_v38  ;;  %v4435_v46 = vadd.f32 %v963_v62, %v7170_v17  ;;  %v4438_v10 = vadd.f32 %v965_v35, %v7172_v12  ;;  %v7178_v29 = vld [vmem:[#allocation9_spill] sm:$0xff]  ;;  %v7179_v21 = vld [vmem:[#allocation10_spill] sm:$0xff] }
  0xaa   : > { %7159 = vst [vmem:[#allocation7_spill] sm:$0xff] %v4414_v58  ;;  %v4420_v15 = vadd.f32 %v950_v4, %v7160_v28  ;;  %7167 = vst [vmem:[#allocation23_spill] sm:$0xff] %v4429_v47  ;;  %v4441_v4 = vadd.f32 %v968_v56, %v7174_v51  ;;  %v7176_v36 = vld [vmem:[#allocation76_spill] sm:$0xff]  ;;  %v1041_v33 = vmul.f32 %v2928_v14, %v7178_v29  ;;  %v7181_v48 = vld [vmem:[#allocation14_spill] sm:$0xff] }
  0xab   : > { %7169 = vst [vmem:[#allocation24_spill] sm:$0xff] %v4432_v39  ;;  %7171 = vst [vmem:[#allocation27_spill] sm:$0xff] %v4435_v46  ;;  %v4444_v6 = vadd.f32 %v970_v52, %v7176_v36  ;;  %v1042_v16 = vmul.f32 %v2928_v14, %v7179_v21  ;;  %v7180_v61 = vld [vmem:[#allocation12_spill] sm:$0xff]  ;;  %v1044_v60 = vmul.f32 %v2928_v14, %v7181_v48  ;;  %v7183_v31 = vld [vmem:[#allocation17_spill] sm:$0xff] }
  0xac   : > { %7161 = vst [vmem:[#allocation6_spill] sm:$0xff] %v4420_v15  ;;  %7173 = vst [vmem:[#allocation28_spill] sm:$0xff] %v4438_v10  ;;  %v1043_v44 = vmul.f32 %v2928_v14, %v7180_v61  ;;  %v7182_v49 = vld [vmem:[#allocation16_spill] sm:$0xff]  ;;  %v1046_v20 = vmul.f32 %v2928_v14, %v7183_v31  ;;  %v7184_v35 = vld [vmem:[#allocation19_spill] sm:$0xff] }
  0xad   : > { %7175 = vst [vmem:[#allocation32_spill] sm:$0xff] %v4441_v4  ;;  %7177 = vst [vmem:[#allocation33_spill] sm:$0xff] %v4444_v6  ;;  %v1045_v62 = vmul.f32 %v2928_v14, %v7182_v49  ;;  %v1047_v23 = vmul.f32 %v2928_v14, %v7184_v35  ;;  %v7185_v59 = vld [vmem:[#allocation20_spill] sm:$0xff]  ;;  %v7186_v55 = vld [vmem:[#allocation22_spill] sm:$0xff] }
  0xae   : > { %v1048_v56 = vmul.f32 %v2928_v14, %v7185_v59  ;;  %v1049_v11 = vmul.f32 %v2928_v14, %v7186_v55  ;;  %v7187_v52 = vld [vmem:[#allocation25_spill] sm:$0xff]  ;;  %v7188_v26 = vld [vmem:[#allocation26_spill] sm:$0xff]  ;;  %v7190_v57 = vld [vmem:[#allocation31_spill] sm:$0xff] }
  0xaf   : > { %v1050_v0 = vmul.f32 %v2928_v14, %v7187_v52  ;;  %v1051_v24 = vmul.f32 %v2928_v14, %v7188_v26  ;;  %v7189_v28 = vld [vmem:[#allocation30_spill] sm:$0xff]  ;;  %v1053_v43 = vmul.f32 %v2928_v14, %v7190_v57  ;;  %v7191_v34 = vld [vmem:[#allocation35_spill] sm:$0xff]  ;;  %v7192_v12 = vld [vmem:[#allocation36_spill] sm:$0xff] }
  0xb0   : > { %v1052_v19 = vmul.f32 %v2928_v14, %v7189_v28  ;;  %v1054_v17 = vmul.f32 %v2928_v14, %v7191_v34  ;;  %v1055_v51 = vmul.f32 %v2928_v14, %v7192_v12  ;;  %v4461_v36 = vld [vmem:[#allocation2 + $0x180] sm:$0xff]  ;;  %v7194_v31 = vld [vmem:[#allocation39_spill] sm:$0xff]  ;;  %v7197_v61 = vld [vmem:[#allocation45_spill] sm:$0xff] }
  0xb1   : > { %7193 = vst [vmem:[#allocation37_spill] sm:$0xff] %v4461_v36  ;;  %v1056_v35 = vmul.f32 %v2928_v14, %v7194_v31  ;;  %v7195_v49 = vld [vmem:[#allocation40_spill] sm:$0xff]  ;;  %v1059_v52 = vmul.f32 %v2928_v14, %v7197_v61  ;;  %v7198_v21 = vld [vmem:[#allocation49_spill] sm:$0xff]  ;;  %v7199_v29 = vld [vmem:[#allocation50_spill] sm:$0xff] }
  0xb2   : > { %v1057_v59 = vmul.f32 %v2928_v14, %v7195_v49  ;;  %v7196_v48 = vld [vmem:[#allocation44_spill] sm:$0xff]  ;;  %v1060_v26 = vmul.f32 %v2928_v14, %v7198_v21  ;;  %v1061_v28 = vmul.f32 %v2928_v14, %v7199_v29  ;;  %v7200_v6 = vld [vmem:[#allocation53_spill] sm:$0xff]  ;;  %v7201_v4 = vld [vmem:[#allocation54_spill] sm:$0xff] }
  0xb3   : > { %v1058_v55 = vmul.f32 %v2928_v14, %v7196_v48  ;;  %v1062_v57 = vmul.f32 %v2928_v14, %v7200_v6  ;;  %v1063_v34 = vmul.f32 %v2928_v14, %v7201_v4  ;;  %v7202_v10 = vld [vmem:[#allocation58_spill] sm:$0xff]  ;;  %v7203_v46 = vld [vmem:[#allocation59_spill] sm:$0xff]  ;;  %v7205_v38 = vld [vmem:[#allocation64_spill] sm:$0xff]  ;;  %v1071_v6 = vmul.f32 %v2928_v14, %v4461_v36 }
  0xb4   : > { %v1064_v12 = vmul.f32 %v2928_v14, %v7202_v10  ;;  %v1065_v39 = vmul.f32 %v2928_v14, %v7203_v46  ;;  %v7204_v47 = vld [vmem:[#allocation63_spill] sm:$0xff]  ;;  %v1067_v49 = vmul.f32 %v2928_v14, %v7205_v38  ;;  %v4475_v41 = vld [vmem:[#allocation2 + $0x188] sm:$0xff]  ;;  %v7207_v48 = vld [vmem:[#allocation68_spill] sm:$0xff]  ;;  %v4483_v10 = vadd.f32 %v1041_v33, %v4343_v1 }
  0xb5   : > { %v1066_v31 = vmul.f32 %v2928_v14, %v7204_v47  ;;  %7206 = vst [vmem:[#allocation38_spill] sm:$0xff] %v4475_v41  ;;  %v1068_v61 = vmul.f32 %v2928_v14, %v7207_v48  ;;  %v7208_v15 = vld [vmem:[#allocation69_spill] sm:$0xff]  ;;  %v1072_v4 = vmul.f32 %v2928_v14, %v4475_v41  ;;  %v4486_v46 = vadd.f32 %v1042_v16, %v4348_v13  ;;  %v7229_v16 = vld [vmem:[#allocation8_spill] sm:$0xff] }
  0xb6   : > { %v1069_v21 = vmul.f32 %v2928_v14, %v7208_v15  ;;  %v7209_v58 = vld [vmem:[#allocation73_spill] sm:$0xff]  ;;  %v4489_v38 = vadd.f32 %v1043_v44, %v4352_v2  ;;  %v4492_v47 = vadd.f32 %v1044_v60, %v4356_v40  ;;  %v4495_v15 = vadd.f32 %v1045_v62, %v4360_v7  ;;  %v7233_v60 = vld [vmem:[#allocation23_spill] sm:$0xff]  ;;  %v7235_v62 = vld [vmem:[#allocation24_spill] sm:$0xff] }
  0xb7   : > { %v1070_v29 = vmul.f32 %v2928_v14, %v7209_v58  ;;  %v4498_v58 = vadd.f32 %v1046_v20, %v4363_v63  ;;  %v4501_v14 = vadd.f32 %v1047_v23, %v4366_v5  ;;  %v4504_v1 = vadd.f32 %v1048_v56, %v4369_v30  ;;  %v7231_v44 = vld [vmem:[#allocation13_spill] sm:$0xff] }
  0xb8   : > { %v4507_v13 = vadd.f32 %v1049_v11, %v4372_v50  ;;  %v4510_v2 = vadd.f32 %v1050_v0, %v4375_v3  ;;  %v4513_v40 = vadd.f32 %v1051_v24, %v4378_v42  ;;  %v4516_v7 = vadd.f32 %v1052_v19, %v4381_v18 }
  0xb9   : > { %7210 = vst [vmem:[#allocation41_spill] sm:$0xff] %v4504_v1  ;;  %v4519_v63 = vadd.f32 %v1053_v43, %v4384_v54  ;;  %v4522_v5 = vadd.f32 %v1054_v17, %v4387_v25  ;;  %v4525_v30 = vadd.f32 %v1055_v51, %v4390_v53  ;;  %v4528_v50 = vadd.f32 %v1056_v35, %v4393_v37  ;;  %v7225_v37 = vld [vmem:[#allocation7_spill] sm:$0xff] }
  0xba   : > { %7211 = vst [vmem:[#allocation42_spill] sm:$0xff] %v4507_v13  ;;  %7212 = vst [vmem:[#allocation46_spill] sm:$0xff] %v4510_v2  ;;  %v4531_v3 = vadd.f32 %v1057_v59, %v4396_v45  ;;  %v4534_v42 = vadd.f32 %v1058_v55, %v4399_v9  ;;  %v4537_v18 = vadd.f32 %v1059_v52, %v4402_v22  ;;  %v4554_v45 = vld [vmem:[%s6773_s1 + $0x5] ss:$0 sm:$0xff]  ;;  %v7227_v9 = vld [vmem:[#allocation6_spill] sm:$0xff] }
  0xbb   : > { %7213 = vst [vmem:[#allocation47_spill] sm:$0xff] %v4513_v40  ;;  %7214 = vst [vmem:[#allocation51_spill] sm:$0xff] %v4516_v7  ;;  %v4540_v54 = vadd.f32 %v1060_v26, %v4405_v32  ;;  %v4543_v25 = vadd.f32 %v1061_v28, %v4408_v8  ;;  %v4546_v53 = vadd.f32 %v1062_v57, %v4411_v27  ;;  %v7237_v35 = vld [vmem:[#allocation27_spill] sm:$0xff]  ;;  %v7239_v59 = vld [vmem:[#allocation28_spill] sm:$0xff] }
  0xbc   : > { %7215 = vst [vmem:[#allocation52_spill] sm:$0xff] %v4519_v63  ;;  %7216 = vst [vmem:[#allocation55_spill] sm:$0xff] %v4522_v5  ;;  %v4549_v33 = vadd.f32 %v1063_v34, %v7225_v37  ;;  %v4557_v22 = vadd.f32 %v1064_v12, %v7227_v9  ;;  %v4560_v32 = vadd.f32 %v1065_v39, %v7229_v16  ;;  %v7241_v55 = vld [vmem:[#allocation32_spill] sm:$0xff]  ;;  %v7243_v39 = vld [vmem:[#allocation33_spill] sm:$0xff] }
  0xbd   : > { %7217 = vst [vmem:[#allocation56_spill] sm:$0xff] %v4525_v30  ;;  %7218 = vst [vmem:[#allocation60_spill] sm:$0xff] %v4528_v50  ;;  %v4563_v8 = vadd.f32 %v1066_v31, %v7231_v44  ;;  %v4566_v27 = vadd.f32 %v1067_v49, %v7233_v60  ;;  %v4569_v20 = vadd.f32 %v1068_v61, %v7235_v62  ;;  %v7245_v31 = vld [vmem:[#allocation9_spill] sm:$0xff]  ;;  %v7246_v49 = vld [vmem:[#allocation10_spill] sm:$0xff] }
  0xbe   : > { %7219 = vst [vmem:[#allocation61_spill] sm:$0xff] %v4531_v3  ;;  %7220 = vst [vmem:[#allocation65_spill] sm:$0xff] %v4534_v42  ;;  %v4572_v23 = vadd.f32 %v1069_v21, %v7237_v35  ;;  %v4575_v56 = vadd.f32 %v1070_v29, %v7239_v59  ;;  %v4578_v11 = vadd.f32 %v1071_v6, %v7241_v55  ;;  %v7247_v61 = vld [vmem:[#allocation11_spill] sm:$0xff]  ;;  %v7248_v21 = vld [vmem:[#allocation12_spill] sm:$0xff] }
  0xbf   : > { %7221 = vst [vmem:[#allocation66_spill] sm:$0xff] %v4537_v18  ;;  %7222 = vst [vmem:[#allocation70_spill] sm:$0xff] %v4540_v54  ;;  %v4581_v52 = vadd.f32 %v1072_v4, %v7243_v39  ;;  %v1110_v0 = vmul.f32 %v4554_v45, %v7245_v31  ;;  %v1111_v26 = vmul.f32 %v4554_v45, %v7246_v49  ;;  %v7249_v29 = vld [vmem:[#allocation14_spill] sm:$0xff]  ;;  %v7250_v6 = vld [vmem:[#allocation15_spill] sm:$0xff] }
  0xc0   : > { %7223 = vst [vmem:[#allocation71_spill] sm:$0xff] %v4543_v25  ;;  %7224 = vst [vmem:[#allocation74_spill] sm:$0xff] %v4546_v53  ;;  %v1112_v24 = vmul.f32 %v4554_v45, %v7247_v61  ;;  %v1113_v28 = vmul.f32 %v4554_v45, %v7248_v21  ;;  %v1114_v19 = vmul.f32 %v4554_v45, %v7249_v29  ;;  %v7251_v4 = vld [vmem:[#allocation16_spill] sm:$0xff]  ;;  %v7252_v34 = vld [vmem:[#allocation17_spill] sm:$0xff] }
  0xc1   : > { %7226 = vst [vmem:[#allocation75_spill] sm:$0xff] %v4549_v33  ;;  %7228 = vst [vmem:[#allocation76_spill] sm:$0xff] %v4557_v22  ;;  %v1115_v57 = vmul.f32 %v4554_v45, %v7250_v6  ;;  %v4597_v43 = vmul.f32 %v4554_v45, %v7251_v4  ;;  %v4601_v17 = vmul.f32 %v4554_v45, %v7252_v34  ;;  %v7253_v12 = vld [vmem:[#allocation18_spill] sm:$0xff]  ;;  %v7254_v37 = vld [vmem:[#allocation19_spill] sm:$0xff]  ;;  %v1207_v5 = vrot.slane %v1111_v26, 1 }
  0xc2   : > { %7230 = vst [vmem:[#allocation68_spill] sm:$0xff] %v4560_v32  ;;  %7232 = vst [vmem:[#allocation7_spill] sm:$0xff] %v4563_v8  ;;  %v4605_v51 = vmul.f32 %v4554_v45, %v7253_v12  ;;  %v4609_v9 = vmul.f32 %v4554_v45, %v7254_v37  ;;  %v7255_v16 = vld [vmem:[#allocation20_spill] sm:$0xff]  ;;  %v7256_v60 = vld [vmem:[#allocation21_spill] sm:$0xff]  ;;  %v1209_v63 = vrot.slane %v1112_v24, 1  ;;  %v1211_v7 = vrot.slane %v1113_v28, 1 }
  0xc3   : > { %7234 = vst [vmem:[#allocation6_spill] sm:$0xff] %v4566_v27  ;;  %7236 = vst [vmem:[#allocation8_spill] sm:$0xff] %v4569_v20  ;;  %v4613_v44 = vmul.f32 %v4554_v45, %v7255_v16  ;;  %v4617_v62 = vmul.f32 %v4554_v45, %v7256_v60  ;;  %v7257_v35 = vld [vmem:[#allocation22_spill] sm:$0xff]  ;;  %v7258_v55 = vld [vmem:[#allocation25_spill] sm:$0xff]  ;;  %v1214_v40 = vrot.slane %v1115_v57, 1  ;;  %v1216_v28 = vrot.slane %v4597_v43, 1 }
  0xc4   : > { %7238 = vst [vmem:[#allocation13_spill] sm:$0xff] %v4572_v23  ;;  %7240 = vst [vmem:[#allocation23_spill] sm:$0xff] %v4575_v56  ;;  %v4621_v59 = vmul.f32 %v4554_v45, %v7257_v35  ;;  %v4625_v39 = vmul.f32 %v4554_v45, %v7258_v55  ;;  %v7259_v31 = vld [vmem:[#allocation29_spill] sm:$0xff]  ;;  %v7260_v61 = vld [vmem:[#allocation26_spill] sm:$0xff]  ;;  %v4770_v57 = vsel %vm644_vm3, %v1207_v5, %v1209_v63 }
  0xc5   : > { %7242 = vst [vmem:[#allocation24_spill] sm:$0xff] %v4578_v11  ;;  %7244 = vst [vmem:[#allocation27_spill] sm:$0xff] %v4581_v52  ;;  %v4629_v49 = vmul.f32 %v4554_v45, %v7259_v31  ;;  %v4633_v21 = vmul.f32 %v4554_v45, %v7260_v61  ;;  %v7261_v29 = vld [vmem:[#allocation30_spill] sm:$0xff]  ;;  %v7263_v12 = vld [vmem:[#allocation31_spill] sm:$0xff]  ;;  %v1222_v43 = vrot.slane %v4613_v44, 1 }
  0xc6   : > { %v4637_v6 = vmul.f32 %v4554_v45, %v7261_v29  ;;  %v7262_v4 = vld [vmem:[#allocation34_spill] sm:$0xff]  ;;  %v4645_v37 = vmul.f32 %v4554_v45, %v7263_v12  ;;  %v7264_v16 = vld [vmem:[#allocation35_spill] sm:$0xff]  ;;  %v7266_v31 = vld [vmem:[#allocation36_spill] sm:$0xff]  ;;  %v1227_v63 = vrot.slane %v4625_v39, 1 }
  0xc7   : > { %v4641_v34 = vmul.f32 %v4554_v45, %v7262_v4  ;;  %v4649_v60 = vmul.f32 %v4554_v45, %v7264_v16  ;;  %v7265_v35 = vld [vmem:[#allocation43_spill] sm:$0xff]  ;;  %v4657_v61 = vmul.f32 %v4554_v45, %v7266_v31  ;;  %v7268_v52 = vld [vmem:[#allocation48_spill] sm:$0xff]  ;;  %v7271_v23 = vld [vmem:[#allocation57_spill] sm:$0xff] }
  0xc8   : > { %v4653_v55 = vmul.f32 %v4554_v45, %v7265_v35  ;;  %v7267_v29 = vld [vmem:[#allocation39_spill] sm:$0xff]  ;;  %v4665_v12 = vmul.f32 %v4554_v45, %v7268_v52  ;;  %v7269_v11 = vld [vmem:[#allocation40_spill] sm:$0xff]  ;;  %v4677_v31 = vmul.f32 %v4554_v45, %v7271_v23  ;;  %v7272_v20 = vld [vmem:[#allocation45_spill] sm:$0xff] }
  0xc9   : > { %v4661_v4 = vmul.f32 %v4554_v45, %v7267_v29  ;;  %v4669_v16 = vmul.f32 %v4554_v45, %v7269_v11  ;;  %v7270_v56 = vld [vmem:[#allocation44_spill] sm:$0xff]  ;;  %v4681_v29 = vmul.f32 %v4554_v45, %v7272_v20  ;;  %v7273_v27 = vld [vmem:[#allocation49_spill] sm:$0xff]  ;;  %v7274_v8 = vld [vmem:[#allocation62_spill] sm:$0xff] }
  0xca   : > { %v4673_v35 = vmul.f32 %v4554_v45, %v7270_v56  ;;  %v4685_v52 = vmul.f32 %v4554_v45, %v7273_v27  ;;  %v4689_v11 = vmul.f32 %v4554_v45, %v7274_v8  ;;  %v7275_v32 = vld [vmem:[#allocation50_spill] sm:$0xff]  ;;  %v7276_v22 = vld [vmem:[#allocation53_spill] sm:$0xff]  ;;  %v7277_v33 = vld [vmem:[#allocation67_spill] sm:$0xff]  ;;  %v1239_v44 = vrot.slane %v4653_v55, 1 }
  0xcb   : > { %v4693_v56 = vmul.f32 %v4554_v45, %v7275_v32  ;;  %v4697_v23 = vmul.f32 %v4554_v45, %v7276_v22  ;;  %v4701_v20 = vmul.f32 %v4554_v45, %v7277_v33  ;;  %v7278_v53 = vld [vmem:[#allocation54_spill] sm:$0xff]  ;;  %v7280_v54 = vld [vmem:[#allocation72_spill] sm:$0xff]  ;;  %v7281_v18 = vld [vmem:[#allocation59_spill] sm:$0xff]  ;;  %v1249_v55 = vrot.slane %v4677_v31, 1 }
  0xcc   : > { %v4705_v27 = vmul.f32 %v4554_v45, %v7278_v53  ;;  %v7279_v25 = vld [vmem:[#allocation58_spill] sm:$0xff]  ;;  %v4713_v32 = vmul.f32 %v4554_v45, %v7280_v54  ;;  %v4717_v22 = vmul.f32 %v4554_v45, %v7281_v18  ;;  %v7282_v42 = vld [vmem:[#allocation63_spill] sm:$0xff]  ;;  %v7283_v3 = vld [vmem:[#allocation77_spill] sm:$0xff]  ;;  %v1206_v54 = vrot.slane %v1110_v0, 1 }
  0xcd   : > { %v4709_v8 = vmul.f32 %v4554_v45, %v7279_v25  ;;  %v4721_v33 = vmul.f32 %v4554_v45, %v7282_v42  ;;  %v4725_v53 = vmul.f32 %v4554_v45, %v7283_v3  ;;  %v4727_v50 = vld [vmem:[#allocation2 + $0x190] sm:$0x3]  ;;  %v7285_v25 = vld [vmem:[#allocation64_spill] sm:$0xff]  ;;  %v4735_v18 = vmul.f32 %v4554_v45, %v7207_v48  ;;  %v7287_v13 = vld [vmem:[#allocation69_spill] sm:$0xff] }
  0xce   : > { %7284 = vst [vmem:[#allocation28_spill] sm:$0xff] %v4727_v50  ;;  %v4731_v30 = vmul.f32 %v4554_v45, %v7285_v25  ;;  %v1212_v42 = vrot.slane %v1114_v19, 1  ;;  %v7286_v2 = vld [vmem:[#allocation78_spill] sm:$0xff]  ;;  %v4743_v1 = vmul.f32 %v4554_v45, %v7287_v13  ;;  %v7288_v25 = vld [vmem:[#allocation73_spill] sm:$0xff]  ;;  %v7289_v26 = vld [vmem:[#allocation79_spill] sm:$0xff]  ;;  %v4755_v48 = vmul.f32 %v4554_v45, %v4461_v36 }
  0xcf   : > { %v4739_v3 = vmul.f32 %v4554_v45, %v7286_v2  ;;  %v4747_v0 = vmul.f32 %v4554_v45, %v7288_v25  ;;  %v4751_v24 = vmul.f32 %v4554_v45, %v7289_v26  ;;  %v4759_v2 = vmul.f32 %v4554_v45, %v4475_v41 }
  0xd0   : > { %v4763_v13 = vmul.f32 %v4554_v45, %v4727_v50  ;;  %v4767_v19 = vsel %vm644_vm3, %v1206_v54, %v1207_v5  ;;  %v1217_v25 = vrot.slane %v4601_v17, 1  ;;  %v1219_v26 = vrot.slane %v4605_v51, 1 }
  0xd1   : > { %v4775_v36 = vsel %vm644_vm3, %v1211_v7, %v1212_v42  ;;  %v4778_v41 = vsel %vm644_vm3, %v1212_v42, %v1214_v40  ;;  %v1221_v45 = vrot.slane %v4609_v9, 1  ;;  %v1224_v54 = vrot.slane %v4617_v62, 1 }
  0xd2   : > { %v1226_v50 = vrot.slane %v4621_v59, 1  ;;  %v1229_v5 = vrot.slane %v4629_v49, 1  ;;  %v1231_v17 = vrot.slane %v4633_v21, 1  ;;  %v1232_v7 = vrot.slane %v4637_v6, 1 }
  0xd3   : > { %v1234_v51 = vrot.slane %v4641_v34, 1  ;;  %v1236_v40 = vrot.slane %v4645_v37, 1  ;;  %v1237_v9 = vrot.slane %v4649_v60, 1  ;;  %v1241_v62 = vrot.slane %v4657_v61, 1 }
  0xd4   : > { %v1242_v59 = vrot.slane %v4661_v4, 1  ;;  %v1218_v39 = vsel %vm644_vm3, %v1216_v28, %v1217_v25  ;;  %v1220_v49 = vsel %vm644_vm3, %v1217_v25, %v1219_v26  ;;  %v1223_v21 = vsel %vm644_vm3, %v1221_v45, %v1222_v43 }
  0xd5   : > { %v1244_v6 = vrot.slane %v4665_v12, 1  ;;  %v1225_v34 = vsel %vm644_vm3, %v1222_v43, %v1224_v54  ;;  %v1246_v37 = vrot.slane %v4669_v16, 1  ;;  %v1247_v60 = vrot.slane %v4673_v35, 1 }
  0xd6   : > { %v1228_v61 = vsel %vm644_vm3, %v1226_v50, %v1227_v63  ;;  %v1230_v4 = vsel %vm644_vm3, %v1227_v63, %v1229_v5  ;;  %v1233_v42 = vsel %vm644_vm3, %v1231_v17, %v1232_v7  ;;  %v1235_v28 = vsel %vm644_vm3, %v1232_v7, %v1234_v51 }
  0xd7   : > { %v1238_v25 = vsel %vm644_vm3, %v1236_v40, %v1237_v9  ;;  %v1240_v12 = vsel %vm644_vm3, %v1237_v9, %v1239_v44  ;;  %v1243_v26 = vsel %vm644_vm3, %v1241_v62, %v1242_v59  ;;  %v1251_v16 = vrot.slane %v4681_v29, 1 }
  0xd8   : > { %v1245_v35 = vsel %vm644_vm3, %v1242_v59, %v1244_v6  ;;  %v1252_v31 = vrot.slane %v4685_v52, 1  ;;  %v1254_v50 = vrot.slane %v4689_v11, 1  ;;  %v1256_v45 = vrot.slane %v4693_v56, 1 }
  0xd9   : > { %v1248_v43 = vsel %vm644_vm3, %v1246_v37, %v1247_v60  ;;  %v1250_v54 = vsel %vm644_vm3, %v1247_v60, %v1249_v55  ;;  %v1257_v63 = vrot.slane %v4697_v23, 1  ;;  %v1259_v5 = vrot.slane %v4701_v20, 1 }
  0xda   : > { %v1261_v17 = vrot.slane %v4705_v27, 1  ;;  %v1262_v29 = vrot.slane %v4709_v8, 1  ;;  %v1264_v7 = vrot.slane %v4713_v32, 1  ;;  %v1266_v52 = vrot.slane %v4717_v22, 1 }
  0xdb   : > { %v1267_v11 = vrot.slane %v4721_v33, 1  ;;  %v1269_v56 = vrot.slane %v4725_v53, 1  ;;  %v1271_v51 = vrot.slane %v4731_v30, 1  ;;  %v1272_v40 = vrot.slane %v4735_v18, 1 }
  0xdc   : > { %v1274_v23 = vrot.slane %v4739_v3, 1  ;;  %v1276_v20 = vrot.slane %v4743_v1, 1  ;;  %v1277_v27 = vrot.slane %v4747_v0, 1  ;;  %v1279_v8 = vrot.slane %v4751_v24, 1 }
  0xdd   : > { %v1253_v32 = vsel %vm644_vm3, %v1251_v16, %v1252_v31  ;;  %v1255_v22 = vsel %vm644_vm3, %v1252_v31, %v1254_v50  ;;  %v1281_v33 = vrot.slane %v4755_v48, 1  ;;  %v1282_v53 = vrot.slane %v4759_v2, 1  ;;  %v7294_v31 = vld [vmem:[#allocation46_spill] sm:$0xff] }
  0xde   : > { %v1258_v30 = vsel %vm644_vm3, %v1256_v45, %v1257_v63  ;;  %v1260_v18 = vsel %vm644_vm3, %v1257_v63, %v1259_v5  ;;  %v1263_v3 = vsel %vm644_vm3, %v1261_v17, %v1262_v29  ;;  %v1284_v1 = vrot.slane %v4763_v13, 1 }
  0xdf   : > { %v1265_v0 = vsel %vm644_vm3, %v1262_v29, %v1264_v7  ;;  %v1268_v24 = vsel %vm644_vm3, %v1266_v52, %v1267_v11  ;;  %v1270_v9 = vsel %vm644_vm3, %v1267_v11, %v1269_v56  ;;  %v1273_v44 = vsel %vm644_vm3, %v1271_v51, %v1272_v40 }
  0xe0   : > { %v1275_v48 = vsel %vm644_vm3, %v1272_v40, %v1274_v23  ;;  %v1278_v2 = vsel %vm644_vm3, %v1276_v20, %v1277_v27  ;;  %v1280_v62 = vsel %vm644_vm3, %v1277_v27, %v1279_v8  ;;  %v4847_v59 = vadd.f32 %v4767_v19, %v4483_v10  ;;  %v7324_v40 = vld [vmem:[#allocation68_spill] sm:$0xff]  ;;  %v7326_v20 = vld [vmem:[#allocation7_spill] sm:$0xff]  ;;  %v7328_v8 = vld [vmem:[#allocation6_spill] sm:$0xff] }
  0xe1   : > { %v1283_v13 = vsel %vm644_vm3, %v1281_v33, %v1282_v53  ;;  %v4852_v6 = vadd.f32 %v4770_v57, %v4486_v46  ;;  %v4856_v37 = vadd.f32 %v4775_v36, %v4489_v38  ;;  %v4860_v60 = vadd.f32 %v4778_v41, %v4492_v47  ;;  %v7290_v46 = vld [vmem:[#allocation41_spill] sm:$0xff]  ;;  %v7292_v38 = vld [vmem:[#allocation42_spill] sm:$0xff]  ;;  %v7296_v47 = vld [vmem:[#allocation47_spill] sm:$0xff] }
  0xe2   : > { %v1285_v55 = vsel %vm644_vm3, %v1282_v53, %v1284_v1  ;;  %v4864_v16 = vadd.f32 %v1218_v39, %v4495_v15  ;;  %v4867_v10 = vadd.f32 %v1220_v49, %v4498_v58  ;;  %v4870_v19 = vadd.f32 %v1223_v21, %v4501_v14  ;;  %v7298_v15 = vld [vmem:[#allocation51_spill] sm:$0xff]  ;;  %v7300_v58 = vld [vmem:[#allocation52_spill] sm:$0xff]  ;;  %v7332_v53 = vld [vmem:[#allocation13_spill] sm:$0xff] }
  0xe3   : > { %v4873_v57 = vadd.f32 %v1225_v34, %v7290_v46  ;;  %v4876_v36 = vadd.f32 %v1228_v61, %v7292_v38  ;;  %v4879_v41 = vadd.f32 %v1230_v4, %v7294_v31  ;;  %v4882_v50 = vadd.f32 %v1233_v42, %v7296_v47  ;;  %v7302_v14 = vld [vmem:[#allocation55_spill] sm:$0xff]  ;;  %v7304_v34 = vld [vmem:[#allocation56_spill] sm:$0xff]  ;;  %v7308_v4 = vld [vmem:[#allocation61_spill] sm:$0xff] }
  0xe4   : > { %v4885_v39 = vadd.f32 %v1235_v28, %v7298_v15  ;;  %v4888_v49 = vadd.f32 %v1238_v25, %v7300_v58  ;;  %v4891_v21 = vadd.f32 %v1240_v12, %v7302_v14  ;;  %v4894_v45 = vadd.f32 %v1243_v26, %v7304_v34  ;;  %v7306_v61 = vld [vmem:[#allocation60_spill] sm:$0xff]  ;;  %v7310_v42 = vld [vmem:[#allocation65_spill] sm:$0xff]  ;;  %v7312_v28 = vld [vmem:[#allocation66_spill] sm:$0xff] }
  0xe5   : > { %7291 = vst [vmem:[#allocation32_spill] sm:$0xff] %v4873_v57  ;;  %7293 = vst [vmem:[#allocation33_spill] sm:$0xff] %v4876_v36  ;;  %v4897_v63 = vadd.f32 %v1245_v35, %v7306_v61  ;;  %v4900_v5 = vadd.f32 %v1248_v43, %v7308_v4  ;;  %v4903_v17 = vadd.f32 %v1250_v54, %v7310_v42  ;;  %v7314_v25 = vld [vmem:[#allocation70_spill] sm:$0xff]  ;;  %v7316_v12 = vld [vmem:[#allocation71_spill] sm:$0xff] }
  0xe6   : > { %7295 = vst [vmem:[#allocation9_spill] sm:$0xff] %v4879_v41  ;;  %7297 = vst [vmem:[#allocation10_spill] sm:$0xff] %v4882_v50  ;;  %v4906_v29 = vadd.f32 %v1253_v32, %v7312_v28  ;;  %v4909_v7 = vadd.f32 %v1255_v22, %v7314_v25  ;;  %v4912_v52 = vadd.f32 %v1258_v30, %v7316_v12  ;;  %v7318_v26 = vld [vmem:[#allocation74_spill] sm:$0xff]  ;;  %v7320_v35 = vld [vmem:[#allocation75_spill] sm:$0xff] }
  0xe7   : > { %7299 = vst [vmem:[#allocation11_spill] sm:$0xff] %v4885_v39  ;;  %7301 = vst [vmem:[#allocation12_spill] sm:$0xff] %v4888_v49  ;;  %v4915_v11 = vadd.f32 %v1260_v18, %v7318_v26  ;;  %v4918_v56 = vadd.f32 %v1263_v3, %v7320_v35  ;;  %v4923_v43 = vld [vmem:[%s6773_s1 + $0x6] ss:$0 sm:$0xff]  ;;  %v4929_v23 = vadd.f32 %v1268_v24, %v7324_v40  ;;  %v7334_v18 = vld [vmem:[#allocation23_spill] sm:$0xff] }
  0xe8   : > { %7303 = vst [vmem:[#allocation14_spill] sm:$0xff] %v4891_v21  ;;  %7305 = vst [vmem:[#allocation15_spill] sm:$0xff] %v4894_v45  ;;  %v7322_v54 = vld [vmem:[#allocation76_spill] sm:$0xff]  ;;  %v4932_v27 = vadd.f32 %v1270_v9, %v7326_v20  ;;  %v4935_v32 = vadd.f32 %v1273_v44, %v7328_v8  ;;  %v4941_v30 = vadd.f32 %v1278_v2, %v7332_v53  ;;  %v7338_v24 = vld [vmem:[#allocation27_spill] sm:$0xff] }
  0xe9   : > { %7307 = vst [vmem:[#allocation16_spill] sm:$0xff] %v4897_v63  ;;  %7309 = vst [vmem:[#allocation17_spill] sm:$0xff] %v4900_v5  ;;  %v4926_v51 = vadd.f32 %v1265_v0, %v7322_v54  ;;  %v7330_v22 = vld [vmem:[#allocation8_spill] sm:$0xff]  ;;  %v4944_v3 = vadd.f32 %v1280_v62, %v7334_v18  ;;  %v4950_v46 = vadd.f32 %v1285_v55, %v7338_v24  ;;  %v3115_v9 = vld [vmem:[#allocation2 + $0x18] sm:$0xff] }
  0xea   : > { %7311 = vst [vmem:[#allocation18_spill] sm:$0xff] %v4903_v17  ;;  %7313 = vst [vmem:[#allocation19_spill] sm:$0xff] %v4906_v29  ;;  %v4938_v33 = vadd.f32 %v1275_v48, %v7330_v22  ;;  %v7336_v1 = vld [vmem:[#allocation24_spill] sm:$0xff]  ;;  %v4953_v38 = vmul.f32 %v3115_v9, %v4923_v43  ;;  %v3117_v31 = vld [vmem:[#allocation2 + $0x28] sm:$0x3] }
  0xeb   : > { %7315 = vst [vmem:[#allocation20_spill] sm:$0xff] %v4909_v7  ;;  %7317 = vst [vmem:[#allocation21_spill] sm:$0xff] %v4912_v52  ;;  %v4947_v0 = vadd.f32 %v1283_v13, %v7336_v1  ;;  %v3116_v44 = vld [vmem:[#allocation2 + $0x20] sm:$0xff]  ;;  %v4959_v2 = vmul.f32 %v3117_v31, %v4923_v43  ;;  %v4961_v62 = vld [vmem:[#allocation2 + $0x30] sm:$0xff] }
  0xec   : > { %7319 = vst [vmem:[#allocation22_spill] sm:$0xff] %v4915_v11  ;;  %7321 = vst [vmem:[#allocation25_spill] sm:$0xff] %v4918_v56  ;;  %v4956_v48 = vmul.f32 %v3116_v44, %v4923_v43  ;;  %v4965_v13 = vmul.f32 %v4961_v62, %v4923_v43  ;;  %v4967_v55 = vld [vmem:[#allocation2 + $0x38] sm:$0xff]  ;;  %v4973_v15 = vld [vmem:[#allocation2 + $0x40] sm:$0x3] }
  0xed   : > { %7323 = vst [vmem:[#allocation29_spill] sm:$0xff] %v4926_v51  ;;  %7325 = vst [vmem:[#allocation26_spill] sm:$0xff] %v4929_v23  ;;  %v4971_v47 = vmul.f32 %v4967_v55, %v4923_v43  ;;  %v4977_v58 = vmul.f32 %v4973_v15, %v4923_v43  ;;  %v4979_v14 = vld [vmem:[#allocation2 + $0x48] sm:$0xff]  ;;  %v4985_v61 = vld [vmem:[#allocation2 + $0x50] sm:$0xff]  ;;  %v1454_v17 = vrot.slane %v4959_v2, 2 }
  0xee   : > { %7327 = vst [vmem:[#allocation30_spill] sm:$0xff] %v4932_v27  ;;  %7329 = vst [vmem:[#allocation34_spill] sm:$0xff] %v4935_v32  ;;  %v4983_v34 = vmul.f32 %v4979_v14, %v4923_v43  ;;  %v4989_v4 = vmul.f32 %v4985_v61, %v4923_v43  ;;  %v4991_v42 = vld [vmem:[#allocation2 + $0x58] sm:$0x3]  ;;  %v4997_v25 = vld [vmem:[#allocation2 + $0x60] sm:$0xff]  ;;  %v1452_v29 = vrot.slane %v4956_v48, 2 }
  0xef   : > { %7331 = vst [vmem:[#allocation31_spill] sm:$0xff] %v4938_v33  ;;  %7333 = vst [vmem:[#allocation35_spill] sm:$0xff] %v4941_v30  ;;  %v4995_v28 = vmul.f32 %v4991_v42, %v4923_v43  ;;  %v5001_v12 = vmul.f32 %v4997_v25, %v4923_v43  ;;  %v5003_v26 = vld [vmem:[#allocation2 + $0x68] sm:$0xff]  ;;  %v5009_v54 = vld [vmem:[#allocation2 + $0x70] sm:$0x3]  ;;  %v1457_v63 = vrot.slane %v4971_v47, 2 }
  0xf0   : > { %7335 = vst [vmem:[#allocation43_spill] sm:$0xff] %v4944_v3  ;;  %7337 = vst [vmem:[#allocation36_spill] sm:$0xff] %v4947_v0  ;;  %v5007_v35 = vmul.f32 %v5003_v26, %v4923_v43  ;;  %v5013_v40 = vmul.f32 %v5009_v54, %v4923_v43  ;;  %v5015_v20 = vld [vmem:[#allocation2 + $0x78] sm:$0xff]  ;;  %v5021_v22 = vld [vmem:[#allocation2 + $0x80] sm:$0xff]  ;;  %v1459_v45 = vrot.slane %v4977_v58, 2  ;;  %v1462_v36 = vrot.slane %v4989_v4, 2 }
  0xf1   : > { %7339 = vst [vmem:[#allocation39_spill] sm:$0xff] %v4950_v46  ;;  %7340 = vst [vmem:[#allocation48_spill] sm:$0xff] %v4961_v62  ;;  %v5019_v8 = vmul.f32 %v5015_v20, %v4923_v43  ;;  %v5025_v53 = vmul.f32 %v5021_v22, %v4923_v43  ;;  %v5027_v18 = vld [vmem:[#allocation2 + $0x88] sm:$0x3]  ;;  %v5033_v24 = vld [vmem:[#allocation2 + $0x90] sm:$0xff] }
  0xf2   : > { %7341 = vst [vmem:[#allocation40_spill] sm:$0xff] %v4967_v55  ;;  %7342 = vst [vmem:[#allocation44_spill] sm:$0xff] %v4973_v15  ;;  %v5031_v1 = vmul.f32 %v5027_v18, %v4923_v43  ;;  %v5037_v9 = vmul.f32 %v5033_v24, %v4923_v43  ;;  %v5039_v44 = vld [vmem:[#allocation2 + $0x98] sm:$0xff]  ;;  %v5201_v48 = vld [vmem:[#allocation2 + $0x168] sm:$0xff] }
  0xf3   : > { %7343 = vst [vmem:[#allocation57_spill] sm:$0xff] %v4979_v14  ;;  %7344 = vst [vmem:[#allocation45_spill] sm:$0xff] %v4985_v61  ;;  %v5043_v31 = vmul.f32 %v5039_v44, %v4923_v43  ;;  %v5205_v2 = vmul.f32 %v5201_v48, %v4923_v43  ;;  %v5213_v47 = vld [vmem:[#allocation2 + $0x178] sm:$0x3]  ;;  %v7383_v49 = vld [vmem:[#allocation38_spill] sm:$0xff] }
  0xf4   : > { %7345 = vst [vmem:[#allocation49_spill] sm:$0xff] %v4991_v42  ;;  %7346 = vst [vmem:[#allocation62_spill] sm:$0xff] %v4997_v25  ;;  %v5217_v58 = vmul.f32 %v5213_v47, %v4923_v43  ;;  %v7384_v39 = vld [vmem:[#allocation28_spill] sm:$0xff]  ;;  %v1476_v4 = vrot.slane %v5037_v9, 2 }
  0xf5   : > { %7347 = vst [vmem:[#allocation50_spill] sm:$0xff] %v5003_v26  ;;  %7348 = vst [vmem:[#allocation53_spill] sm:$0xff] %v5009_v54  ;;  %v5045_v54 = vld [vmem:[#allocation2 + $0xa0] sm:$0x3]  ;;  %v5229_v50 = vmul.f32 %v4923_v43, %v7384_v39  ;;  %v1471_v39 = vrot.slane %v5019_v8, 2 }
  0xf6   : > { %7349 = vst [vmem:[#allocation67_spill] sm:$0xff] %v5015_v20  ;;  %7350 = vst [vmem:[#allocation54_spill] sm:$0xff] %v5021_v22  ;;  %v5049_v42 = vmul.f32 %v5045_v54, %v4923_v43 }
  0xf7   : > { %7351 = vst [vmem:[#allocation58_spill] sm:$0xff] %v5027_v18  ;;  %7352 = vst [vmem:[#allocation72_spill] sm:$0xff] %v5033_v24  ;;  %v5051_v18 = vld [vmem:[#allocation2 + $0xa8] sm:$0xff]  ;;  %v5057_v24 = vld [vmem:[#allocation2 + $0xb0] sm:$0xff] }
  0xf8   : > { %7353 = vst [vmem:[#allocation59_spill] sm:$0xff] %v5039_v44  ;;  %7354 = vst [vmem:[#allocation63_spill] sm:$0xff] %v5045_v54  ;;  %v5055_v15 = vmul.f32 %v5051_v18, %v4923_v43  ;;  %v5061_v22 = vmul.f32 %v5057_v24, %v4923_v43  ;;  %v5063_v44 = vld [vmem:[#allocation2 + $0xb8] sm:$0x3]  ;;  %v5069_v54 = vld [vmem:[#allocation2 + $0xc0] sm:$0xff] }
  0xf9   : > { %7355 = vst [vmem:[#allocation77_spill] sm:$0xff] %v5051_v18  ;;  %7356 = vst [vmem:[#allocation64_spill] sm:$0xff] %v5057_v24  ;;  %v5067_v20 = vmul.f32 %v5063_v44, %v4923_v43  ;;  %v5073_v26 = vmul.f32 %v5069_v54, %v4923_v43  ;;  %v5075_v18 = vld [vmem:[#allocation2 + $0xc8] sm:$0xff]  ;;  %v5081_v24 = vld [vmem:[#allocation2 + $0xd0] sm:$0x3] }
  0xfa   : > { %7357 = vst [vmem:[#allocation78_spill] sm:$0xff] %v5063_v44  ;;  %7358 = vst [vmem:[#allocation69_spill] sm:$0xff] %v5069_v54  ;;  %v5079_v25 = vmul.f32 %v5075_v18, %v4923_v43  ;;  %v5085_v61 = vmul.f32 %v5081_v24, %v4923_v43  ;;  %v5087_v44 = vld [vmem:[#allocation2 + $0xd8] sm:$0xff]  ;;  %v5093_v54 = vld [vmem:[#allocation2 + $0xe0] sm:$0xff] }
  0xfb   : > { %7359 = vst [vmem:[#allocation73_spill] sm:$0xff] %v5075_v18  ;;  %7360 = vst [vmem:[#allocation79_spill] sm:$0xff] %v5081_v24  ;;  %v5091_v14 = vmul.f32 %v5087_v44, %v4923_v43  ;;  %v5097_v55 = vmul.f32 %v5093_v54, %v4923_v43  ;;  %v5099_v18 = vld [vmem:[#allocation2 + $0xe8] sm:$0x3]  ;;  %v5105_v24 = vld [vmem:[#allocation2 + $0xf0] sm:$0xff] }
  0xfc   : > { %7361 = vst [vmem:[#allocation41_spill] sm:$0xff] %v5087_v44  ;;  %7362 = vst [vmem:[#allocation42_spill] sm:$0xff] %v5093_v54  ;;  %v5103_v62 = vmul.f32 %v5099_v18, %v4923_v43  ;;  %v5109_v46 = vmul.f32 %v5105_v24, %v4923_v43  ;;  %v5111_v44 = vld [vmem:[#allocation2 + $0xf8] sm:$0xff]  ;;  %v5117_v54 = vld [vmem:[#allocation2 + $0x100] sm:$0x3]  ;;  %v1489_v9 = vrot.slane %v5085_v61, 2 }
  0xfd   : > { %7363 = vst [vmem:[#allocation46_spill] sm:$0xff] %v5099_v18  ;;  %7364 = vst [vmem:[#allocation47_spill] sm:$0xff] %v5105_v24  ;;  %v5115_v0 = vmul.f32 %v5111_v44, %v4923_v43  ;;  %v5121_v3 = vmul.f32 %v5117_v54, %v4923_v43  ;;  %v5123_v18 = vld [vmem:[#allocation2 + $0x108] sm:$0xff]  ;;  %v5129_v24 = vld [vmem:[#allocation2 + $0x110] sm:$0xff] }
  0xfe   : > { %7365 = vst [vmem:[#allocation51_spill] sm:$0xff] %v5111_v44  ;;  %7366 = vst [vmem:[#allocation52_spill] sm:$0xff] %v5117_v54  ;;  %v5127_v30 = vmul.f32 %v5123_v18, %v4923_v43  ;;  %v5133_v33 = vmul.f32 %v5129_v24, %v4923_v43  ;;  %v5135_v44 = vld [vmem:[#allocation2 + $0x118] sm:$0x3]  ;;  %v5141_v54 = vld [vmem:[#allocation2 + $0x120] sm:$0xff] }
  0xff   : > { %7367 = vst [vmem:[#allocation55_spill] sm:$0xff] %v5123_v18  ;;  %7368 = vst [vmem:[#allocation56_spill] sm:$0xff] %v5129_v24  ;;  %v5139_v32 = vmul.f32 %v5135_v44, %v4923_v43  ;;  %v5145_v27 = vmul.f32 %v5141_v54, %v4923_v43  ;;  %v5147_v18 = vld [vmem:[#allocation2 + $0x128] sm:$0xff]  ;;  %v5153_v24 = vld [vmem:[#allocation2 + $0x130] sm:$0x3] }
 0x100   : > { %7369 = vst [vmem:[#allocation60_spill] sm:$0xff] %v5135_v44  ;;  %7370 = vst [vmem:[#allocation61_spill] sm:$0xff] %v5141_v54  ;;  %v5151_v23 = vmul.f32 %v5147_v18, %v4923_v43  ;;  %v5157_v51 = vmul.f32 %v5153_v24, %v4923_v43  ;;  %v5159_v44 = vld [vmem:[#allocation2 + $0x138] sm:$0xff]  ;;  %v5165_v54 = vld [vmem:[#allocation2 + $0x140] sm:$0xff] }
 0x101   : > { %7371 = vst [vmem:[#allocation65_spill] sm:$0xff] %v5147_v18  ;;  %7372 = vst [vmem:[#allocation66_spill] sm:$0xff] %v5153_v24  ;;  %v5163_v56 = vmul.f32 %v5159_v44, %v4923_v43  ;;  %v5169_v11 = vmul.f32 %v5165_v54, %v4923_v43  ;;  %v5171_v18 = vld [vmem:[#allocation2 + $0x148] sm:$0x3]  ;;  %v5177_v24 = vld [vmem:[#allocation2 + $0x150] sm:$0xff] }
 0x102   : > { %7373 = vst [vmem:[#allocation70_spill] sm:$0xff] %v5159_v44  ;;  %7374 = vst [vmem:[#allocation71_spill] sm:$0xff] %v5165_v54  ;;  %v5175_v52 = vmul.f32 %v5171_v18, %v4923_v43  ;;  %v5181_v7 = vmul.f32 %v5177_v24, %v4923_v43  ;;  %v1451_v44 = vrot.slane %v4953_v38, 2  ;;  %v5186_v54 = vld [vmem:[#allocation2 + $0x158] sm:$0xff] }
 0x103   : > { %7375 = vst [vmem:[#allocation74_spill] sm:$0xff] %v5171_v18  ;;  %7376 = vst [vmem:[#allocation75_spill] sm:$0xff] %v5177_v24  ;;  %v5190_v5 = vmul.f32 %v5186_v54, %v4923_v43  ;;  %v1456_v18 = vrot.slane %v4965_v13, 2  ;;  %v5195_v24 = vld [vmem:[#allocation2 + $0x160] sm:$0x3] }
 0x104   : > { %7377 = vst [vmem:[#allocation76_spill] sm:$0xff] %v5186_v54  ;;  %7378 = vst [vmem:[#allocation68_spill] sm:$0xff] %v5195_v24  ;;  %v5199_v38 = vmul.f32 %v5195_v24, %v4923_v43  ;;  %v5207_v54 = vld [vmem:[#allocation2 + $0x170] sm:$0xff]  ;;  %v7382_v24 = vld [vmem:[#allocation37_spill] sm:$0xff]  ;;  %v5233_v41 = vsel %vm890_vm4, %v1451_v44, %v1452_v29  ;;  %v1469_v44 = vrot.slane %v5013_v40, 2  ;;  %v1487_v40 = vrot.slane %v5079_v25, 2 }
 0x105   : > { %7379 = vst [vmem:[#allocation7_spill] sm:$0xff] %v5201_v48  ;;  %7380 = vst [vmem:[#allocation6_spill] sm:$0xff] %v5207_v54  ;;  %v5211_v13 = vmul.f32 %v5207_v54, %v4923_v43  ;;  %v5221_v21 = vmul.f32 %v4923_v43, %v7382_v24  ;;  %v5225_v48 = vmul.f32 %v4923_v43, %v7383_v49  ;;  %v1461_v54 = vrot.slane %v4983_v34, 2 }
 0x106   : > { %7381 = vst [vmem:[#allocation8_spill] sm:$0xff] %v5213_v47  ;;  %v5236_v47 = vsel %vm890_vm4, %v1452_v29, %v1454_v17  ;;  %v1464_v24 = vrot.slane %v4995_v28, 2  ;;  %v5241_v57 = vsel %vm890_vm4, %v1456_v18, %v1457_v63  ;;  %v5244_v49 = vsel %vm890_vm4, %v1457_v63, %v1459_v45 }
 0x107   : > { %v1466_v43 = vrot.slane %v5001_v12, 2  ;;  %v1467_v34 = vrot.slane %v5007_v35, 2  ;;  %v1472_v17 = vrot.slane %v5025_v53, 2  ;;  %v1474_v29 = vrot.slane %v5031_v1, 2 }
 0x108   : > { %v1477_v28 = vrot.slane %v5043_v31, 2  ;;  %v1479_v18 = vrot.slane %v5049_v42, 2  ;;  %v1481_v45 = vrot.slane %v5055_v15, 2  ;;  %v1482_v63 = vrot.slane %v5061_v22, 2 }
 0x109   : > { %v1484_v12 = vrot.slane %v5067_v20, 2  ;;  %v1486_v35 = vrot.slane %v5073_v26, 2  ;;  %v1463_v8 = vsel %vm890_vm4, %v1461_v54, %v1462_v36  ;;  %v1465_v53 = vsel %vm890_vm4, %v1462_v36, %v1464_v24 }
 0x10a   : > { %v1468_v1 = vsel %vm890_vm4, %v1466_v43, %v1467_v34  ;;  %v1470_v42 = vsel %vm890_vm4, %v1467_v34, %v1469_v44  ;;  %v1491_v15 = vrot.slane %v5091_v14, 2  ;;  %v1492_v22 = vrot.slane %v5097_v55, 2 }
 0x10b   : > { %v1494_v20 = vrot.slane %v5103_v62, 2  ;;  %v1473_v26 = vsel %vm890_vm4, %v1471_v39, %v1472_v17  ;;  %v1475_v25 = vsel %vm890_vm4, %v1472_v17, %v1474_v29  ;;  %v1478_v54 = vsel %vm890_vm4, %v1476_v4, %v1477_v28 }
 0x10c   : > { %v1480_v36 = vsel %vm890_vm4, %v1477_v28, %v1479_v18  ;;  %v1483_v24 = vsel %vm890_vm4, %v1481_v45, %v1482_v63  ;;  %v1485_v61 = vsel %vm890_vm4, %v1482_v63, %v1484_v12  ;;  %v1488_v31 = vsel %vm890_vm4, %v1486_v35, %v1487_v40 }
 0x10d   : > { %v1496_v14 = vrot.slane %v5109_v46, 2  ;;  %v1490_v55 = vsel %vm890_vm4, %v1487_v40, %v1489_v9  ;;  %v1497_v62 = vrot.slane %v5115_v0, 2  ;;  %v1499_v39 = vrot.slane %v5121_v3, 2 }
 0x10e   : > { %v1501_v43 = vrot.slane %v5127_v30, 2  ;;  %v1493_v34 = vsel %vm890_vm4, %v1491_v15, %v1492_v22  ;;  %v1495_v44 = vsel %vm890_vm4, %v1492_v22, %v1494_v20  ;;  %v1502_v17 = vrot.slane %v5133_v33, 2 }
 0x10f   : > { %v1504_v29 = vrot.slane %v5139_v32, 2  ;;  %v1506_v4 = vrot.slane %v5145_v27, 2  ;;  %v1507_v46 = vrot.slane %v5151_v23, 2  ;;  %v1509_v28 = vrot.slane %v5157_v51, 2 }
 0x110   : > { %v1511_v0 = vrot.slane %v5163_v56, 2  ;;  %v1512_v3 = vrot.slane %v5169_v11, 2  ;;  %v1514_v30 = vrot.slane %v5175_v52, 2  ;;  %v1516_v18 = vrot.slane %v5181_v7, 2 }
 0x111   : > { %v1517_v45 = vrot.slane %v5190_v5, 2  ;;  %v1519_v33 = vrot.slane %v5199_v38, 2  ;;  %v1521_v32 = vrot.slane %v5205_v2, 2  ;;  %v1522_v27 = vrot.slane %v5211_v13, 2 }
 0x112   : > { %v1524_v23 = vrot.slane %v5217_v58, 2  ;;  %v1498_v51 = vsel %vm890_vm4, %v1496_v14, %v1497_v62  ;;  %v1500_v56 = vsel %vm890_vm4, %v1497_v62, %v1499_v39  ;;  %v1526_v11 = vrot.slane %v5221_v21, 2  ;;  %v7387_v62 = vld [vmem:[#allocation9_spill] sm:$0xff] }
 0x113   : > { %v1527_v52 = vrot.slane %v5225_v48, 2  ;;  %v1503_v7 = vsel %vm890_vm4, %v1501_v43, %v1502_v17  ;;  %v1505_v5 = vsel %vm890_vm4, %v1502_v17, %v1504_v29  ;;  %v1508_v38 = vsel %vm890_vm4, %v1506_v4, %v1507_v46 }
 0x114   : > { %v1529_v2 = vrot.slane %v5229_v50, 2  ;;  %v1510_v13 = vsel %vm890_vm4, %v1507_v46, %v1509_v28  ;;  %v1513_v58 = vsel %vm890_vm4, %v1511_v0, %v1512_v3  ;;  %v1515_v63 = vsel %vm890_vm4, %v1512_v3, %v1514_v30 }
 0x115   : > { %v1518_v12 = vsel %vm890_vm4, %v1516_v18, %v1517_v45  ;;  %v1520_v21 = vsel %vm890_vm4, %v1517_v45, %v1519_v33  ;;  %v1523_v48 = vsel %vm890_vm4, %v1521_v32, %v1522_v27  ;;  %v1525_v35 = vsel %vm890_vm4, %v1522_v27, %v1524_v23  ;;  %v7404_v45 = vld [vmem:[#allocation26_spill] sm:$0xff] }
 0x116   : > { %v5313_v40 = vadd.f32 %v5233_v41, %v4847_v59  ;;  %v1528_v50 = vsel %vm890_vm4, %v1526_v11, %v1527_v52  ;;  %v5318_v9 = vadd.f32 %v5236_v47, %v4852_v6  ;;  %v5322_v15 = vadd.f32 %v5241_v57, %v4856_v37  ;;  %v7385_v6 = vld [vmem:[#allocation32_spill] sm:$0xff]  ;;  %v7386_v37 = vld [vmem:[#allocation33_spill] sm:$0xff]  ;;  %v7406_v32 = vld [vmem:[#allocation30_spill] sm:$0xff] }
 0x117   : > { %v5326_v22 = vadd.f32 %v5244_v49, %v4860_v60  ;;  %v1530_v20 = vsel %vm890_vm4, %v1527_v52, %v1529_v2  ;;  %v5330_v14 = vadd.f32 %v1463_v8, %v4864_v16  ;;  %v5333_v59 = vadd.f32 %v1465_v53, %v4867_v10  ;;  %v7388_v49 = vld [vmem:[#allocation10_spill] sm:$0xff]  ;;  %v7389_v16 = vld [vmem:[#allocation11_spill] sm:$0xff]  ;;  %v7390_v10 = vld [vmem:[#allocation12_spill] sm:$0xff] }
 0x118   : > { %v5336_v41 = vadd.f32 %v1468_v1, %v4870_v19  ;;  %v5339_v47 = vadd.f32 %v1470_v42, %v7385_v6  ;;  %v5342_v57 = vadd.f32 %v1473_v26, %v7386_v37  ;;  %v5345_v60 = vadd.f32 %v1475_v25, %v7387_v62  ;;  %v7391_v19 = vld [vmem:[#allocation14_spill] sm:$0xff]  ;;  %v7392_v42 = vld [vmem:[#allocation15_spill] sm:$0xff]  ;;  %v7393_v26 = vld [vmem:[#allocation16_spill] sm:$0xff] }
 0x119   : > { %v5348_v39 = vadd.f32 %v1478_v54, %v7388_v49  ;;  %v5351_v8 = vadd.f32 %v1480_v36, %v7389_v16  ;;  %v5354_v53 = vadd.f32 %v1483_v24, %v7390_v10  ;;  %v5357_v1 = vadd.f32 %v1485_v61, %v7391_v19  ;;  %v7394_v25 = vld [vmem:[#allocation17_spill] sm:$0xff]  ;;  %v7395_v54 = vld [vmem:[#allocation18_spill] sm:$0xff]  ;;  %v7396_v36 = vld [vmem:[#allocation19_spill] sm:$0xff] }
 0x11a   : > { %v5360_v43 = vadd.f32 %v1488_v31, %v7392_v42  ;;  %v5363_v17 = vadd.f32 %v1490_v55, %v7393_v26  ;;  %v5366_v29 = vadd.f32 %v1493_v34, %v7394_v25  ;;  %v5369_v4 = vadd.f32 %v1495_v44, %v7395_v54  ;;  %v7397_v24 = vld [vmem:[#allocation20_spill] sm:$0xff]  ;;  %v7398_v61 = vld [vmem:[#allocation21_spill] sm:$0xff]  ;;  %v7399_v31 = vld [vmem:[#allocation22_spill] sm:$0xff] }
 0x11b   : > { %v5372_v46 = vadd.f32 %v1498_v51, %v7396_v36  ;;  %v5375_v28 = vadd.f32 %v1500_v56, %v7397_v24  ;;  %v5378_v0 = vadd.f32 %v1503_v7, %v7398_v61  ;;  %v5381_v3 = vadd.f32 %v1505_v5, %v7399_v31  ;;  %v7400_v55 = vld [vmem:[#allocation25_spill] sm:$0xff]  ;;  %v7408_v23 = vld [vmem:[#allocation34_spill] sm:$0xff]  ;;  %v7410_v56 = vld [vmem:[#allocation31_spill] sm:$0xff] }
 0x11c   : > { %v5384_v30 = vadd.f32 %v1508_v38, %v7400_v55  ;;  %v2934_v34 = vld [vmem:[%s6773_s1 + $0x8] ss:$0 sm:$0xff]  ;;  %v5393_v33 = vadd.f32 %v1513_v58, %v7404_v45  ;;  %v5396_v27 = vadd.f32 %v1515_v63, %v7406_v32  ;;  %v5399_v51 = vadd.f32 %v1518_v12, %v7408_v23  ;;  %v7412_v52 = vld [vmem:[#allocation35_spill] sm:$0xff]  ;;  %v7416_v2 = vld [vmem:[#allocation36_spill] sm:$0xff] }
 0x11d   : > { %v7402_v44 = vld [vmem:[#allocation29_spill] sm:$0xff]  ;;  %v5402_v11 = vadd.f32 %v1520_v21, %v7410_v56  ;;  %v5405_v7 = vadd.f32 %v1523_v48, %v7412_v52  ;;  %v7414_v5 = vld [vmem:[#allocation43_spill] sm:$0xff]  ;;  %v7420_v63 = vld [vmem:[#allocation48_spill] sm:$0xff] }
 0x11e   : > { %7401 = vst [vmem:[#allocation13_spill] sm:$0xff] %v5384_v30  ;;  %v5390_v18 = vadd.f32 %v1510_v13, %v7402_v44  ;;  %7405 = vst [vmem:[#allocation24_spill] sm:$0xff] %v5393_v33  ;;  %v5408_v38 = vadd.f32 %v1525_v35, %v7414_v5  ;;  %v5411_v13 = vadd.f32 %v1528_v50, %v7416_v2  ;;  %v7418_v58 = vld [vmem:[#allocation39_spill] sm:$0xff]  ;;  %v7421_v62 = vld [vmem:[#allocation40_spill] sm:$0xff] }
 0x11f   : > { %7407 = vst [vmem:[#allocation27_spill] sm:$0xff] %v5396_v27  ;;  %7409 = vst [vmem:[#allocation32_spill] sm:$0xff] %v5399_v51  ;;  %v5414_v6 = vadd.f32 %v1530_v20, %v7418_v58  ;;  %v1601_v37 = vmul.f32 %v7420_v63, %v2934_v34  ;;  %v1602_v12 = vmul.f32 %v7421_v62, %v2934_v34  ;;  %v7422_v49 = vld [vmem:[#allocation57_spill] sm:$0xff]  ;;  %v7424_v19 = vld [vmem:[#allocation62_spill] sm:$0xff] }
 0x120   : > { %7403 = vst [vmem:[#allocation23_spill] sm:$0xff] %v5390_v18  ;;  %7411 = vst [vmem:[#allocation33_spill] sm:$0xff] %v5402_v11  ;;  %v1603_v16 = vmul.f32 %v7422_v49, %v2934_v34  ;;  %v7423_v21 = vld [vmem:[#allocation45_spill] sm:$0xff]  ;;  %v1605_v48 = vmul.f32 %v7424_v19, %v2934_v34  ;;  %v7425_v42 = vld [vmem:[#allocation50_spill] sm:$0xff] }
 0x121   : > { %7413 = vst [vmem:[#allocation9_spill] sm:$0xff] %v5405_v7  ;;  %7415 = vst [vmem:[#allocation10_spill] sm:$0xff] %v5408_v38  ;;  %v1604_v10 = vmul.f32 %v7423_v21, %v2934_v34  ;;  %v1606_v26 = vmul.f32 %v7425_v42, %v2934_v34  ;;  %v7426_v35 = vld [vmem:[#allocation67_spill] sm:$0xff]  ;;  %v7427_v54 = vld [vmem:[#allocation54_spill] sm:$0xff] }
 0x122   : > { %7417 = vst [vmem:[#allocation11_spill] sm:$0xff] %v5411_v13  ;;  %7419 = vst [vmem:[#allocation12_spill] sm:$0xff] %v5414_v6  ;;  %v1607_v25 = vmul.f32 %v7426_v35, %v2934_v34  ;;  %v1608_v50 = vmul.f32 %v7427_v54, %v2934_v34  ;;  %v7428_v36 = vld [vmem:[#allocation72_spill] sm:$0xff]  ;;  %v7429_v20 = vld [vmem:[#allocation59_spill] sm:$0xff] }
 0x123   : > { %v1609_v24 = vmul.f32 %v7428_v36, %v2934_v34  ;;  %v1610_v61 = vmul.f32 %v7429_v20, %v2934_v34  ;;  %v7430_v31 = vld [vmem:[#allocation77_spill] sm:$0xff]  ;;  %v7431_v44 = vld [vmem:[#allocation64_spill] sm:$0xff]  ;;  %v5431_v58 = vld [vmem:[#allocation2 + $0x198] sm:$0xff] }
 0x124   : > { %v1611_v55 = vmul.f32 %v7430_v31, %v2934_v34  ;;  %v1612_v45 = vmul.f32 %v7431_v44, %v2934_v34  ;;  %v7432_v32 = vld [vmem:[#allocation69_spill] sm:$0xff]  ;;  %7435 = vst [vmem:[#allocation14_spill] sm:$0xff] %v5431_v58  ;;  %v7436_v42 = vld [vmem:[#allocation42_spill] sm:$0xff]  ;;  %v7437_v19 = vld [vmem:[#allocation47_spill] sm:$0xff] }
 0x125   : > { %v1613_v23 = vmul.f32 %v7432_v32, %v2934_v34  ;;  %v7433_v56 = vld [vmem:[#allocation73_spill] sm:$0xff]  ;;  %v1616_v35 = vmul.f32 %v7436_v42, %v2934_v34  ;;  %v1617_v54 = vmul.f32 %v7437_v19, %v2934_v34  ;;  %v7438_v21 = vld [vmem:[#allocation51_spill] sm:$0xff]  ;;  %v7440_v62 = vld [vmem:[#allocation56_spill] sm:$0xff] }
 0x126   : > { %v1614_v52 = vmul.f32 %v7433_v56, %v2934_v34  ;;  %v7434_v5 = vld [vmem:[#allocation41_spill] sm:$0xff]  ;;  %v1618_v36 = vmul.f32 %v7438_v21, %v2934_v34  ;;  %v7439_v49 = vld [vmem:[#allocation55_spill] sm:$0xff]  ;;  %v1620_v31 = vmul.f32 %v7440_v62, %v2934_v34  ;;  %v7443_v13 = vld [vmem:[#allocation70_spill] sm:$0xff] }
 0x127   : > { %v1615_v2 = vmul.f32 %v7434_v5, %v2934_v34  ;;  %v1619_v20 = vmul.f32 %v7439_v49, %v2934_v34  ;;  %v7441_v63 = vld [vmem:[#allocation61_spill] sm:$0xff]  ;;  %v1623_v56 = vmul.f32 %v7443_v13, %v2934_v34  ;;  %v7444_v38 = vld [vmem:[#allocation71_spill] sm:$0xff]  ;;  %v7446_v51 = vld [vmem:[#allocation76_spill] sm:$0xff] }
 0x128   : > { %v1621_v44 = vmul.f32 %v7441_v63, %v2934_v34  ;;  %v7442_v6 = vld [vmem:[#allocation65_spill] sm:$0xff]  ;;  %v1624_v5 = vmul.f32 %v7444_v38, %v2934_v34  ;;  %v7445_v7 = vld [vmem:[#allocation75_spill] sm:$0xff]  ;;  %v1626_v42 = vmul.f32 %v7446_v51, %v2934_v34  ;;  %v5445_v33 = vld [vmem:[#allocation2 + $0x1a0] sm:$0xff]  ;;  %v5453_v38 = vadd.f32 %v1601_v37, %v5313_v40 }
 0x129   : > { %v1622_v32 = vmul.f32 %v7442_v6, %v2934_v34  ;;  %v1625_v11 = vmul.f32 %v7445_v7, %v2934_v34  ;;  %v7447_v27 = vld [vmem:[#allocation7_spill] sm:$0xff]  ;;  %7448 = vst [vmem:[#allocation15_spill] sm:$0xff] %v5445_v33  ;;  %v7449_v21 = vld [vmem:[#allocation6_spill] sm:$0xff]  ;;  %v7450_v18 = vld [vmem:[#allocation37_spill] sm:$0xff]  ;;  %v1631_v6 = vmul.f32 %v2934_v34, %v5431_v58  ;;  %v1632_v13 = vmul.f32 %v2934_v34, %v5445_v33 }
 0x12a   : > { %v1627_v19 = vmul.f32 %v7447_v27, %v2934_v34  ;;  %v1628_v49 = vmul.f32 %v7449_v21, %v2934_v34  ;;  %v1629_v62 = vmul.f32 %v2934_v34, %v7450_v18  ;;  %v7451_v30 = vld [vmem:[#allocation38_spill] sm:$0xff]  ;;  %v5456_v7 = vadd.f32 %v1602_v12, %v5318_v9  ;;  %v7471_v12 = vld [vmem:[#allocation24_spill] sm:$0xff] }
 0x12b   : > { %v1630_v63 = vmul.f32 %v2934_v34, %v7451_v30  ;;  %v5459_v27 = vadd.f32 %v1603_v16, %v5322_v15  ;;  %v5462_v51 = vadd.f32 %v1604_v10, %v5326_v22  ;;  %v5465_v18 = vadd.f32 %v1605_v48, %v5330_v14  ;;  %v7473_v16 = vld [vmem:[#allocation27_spill] sm:$0xff]  ;;  %v7475_v10 = vld [vmem:[#allocation32_spill] sm:$0xff]  ;;  %v7477_v48 = vld [vmem:[#allocation33_spill] sm:$0xff] }
 0x12c   : > { %v5468_v30 = vadd.f32 %v1606_v26, %v5333_v59  ;;  %v5471_v34 = vadd.f32 %v1607_v25, %v5336_v41  ;;  %v5474_v40 = vadd.f32 %v1608_v50, %v5339_v47  ;;  %v5477_v9 = vadd.f32 %v1609_v24, %v5342_v57 }
 0x12d   : > { %v5480_v15 = vadd.f32 %v1610_v61, %v5345_v60  ;;  %v5483_v22 = vadd.f32 %v1611_v55, %v5348_v39  ;;  %v5486_v14 = vadd.f32 %v1612_v45, %v5351_v8  ;;  %v5489_v59 = vadd.f32 %v1613_v23, %v5354_v53 }
 0x12e   : > { %7452 = vst [vmem:[#allocation16_spill] sm:$0xff] %v5474_v40  ;;  %7453 = vst [vmem:[#allocation17_spill] sm:$0xff] %v5477_v9  ;;  %v5492_v41 = vadd.f32 %v1614_v52, %v5357_v1  ;;  %v5495_v47 = vadd.f32 %v1615_v2, %v5360_v43  ;;  %v5498_v57 = vadd.f32 %v1616_v35, %v5363_v17  ;;  %v7467_v17 = vld [vmem:[#allocation13_spill] sm:$0xff] }
 0x12f   : > { %7454 = vst [vmem:[#allocation18_spill] sm:$0xff] %v5480_v15  ;;  %7455 = vst [vmem:[#allocation19_spill] sm:$0xff] %v5483_v22  ;;  %v5501_v60 = vadd.f32 %v1617_v54, %v5366_v29  ;;  %v5504_v39 = vadd.f32 %v1618_v36, %v5369_v4  ;;  %v5507_v8 = vadd.f32 %v1619_v20, %v5372_v46  ;;  %v5524_v29 = vld [vmem:[%s6773_s1 + $0x9] ss:$0 sm:$0xff]  ;;  %v7469_v4 = vld [vmem:[#allocation23_spill] sm:$0xff] }
 0x130   : > { %7456 = vst [vmem:[#allocation20_spill] sm:$0xff] %v5486_v14  ;;  %7457 = vst [vmem:[#allocation21_spill] sm:$0xff] %v5489_v59  ;;  %v5510_v53 = vadd.f32 %v1620_v31, %v5375_v28  ;;  %v5513_v1 = vadd.f32 %v1621_v44, %v5378_v0  ;;  %v5516_v43 = vadd.f32 %v1622_v32, %v5381_v3  ;;  %v7479_v35 = vld [vmem:[#allocation9_spill] sm:$0xff]  ;;  %v7481_v54 = vld [vmem:[#allocation10_spill] sm:$0xff] }
 0x131   : > { %7458 = vst [vmem:[#allocation22_spill] sm:$0xff] %v5492_v41  ;;  %7459 = vst [vmem:[#allocation25_spill] sm:$0xff] %v5495_v47  ;;  %v5519_v37 = vadd.f32 %v1623_v56, %v7467_v17  ;;  %v5527_v46 = vadd.f32 %v1624_v5, %v7469_v4  ;;  %v5530_v28 = vadd.f32 %v1625_v11, %v7471_v12  ;;  %v7483_v36 = vld [vmem:[#allocation11_spill] sm:$0xff]  ;;  %v7485_v11 = vld [vmem:[#allocation12_spill] sm:$0xff] }
 0x132   : > { %7460 = vst [vmem:[#allocation29_spill] sm:$0xff] %v5498_v57  ;;  %7461 = vst [vmem:[#allocation26_spill] sm:$0xff] %v5501_v60  ;;  %v5533_v0 = vadd.f32 %v1626_v42, %v7473_v16  ;;  %v5536_v3 = vadd.f32 %v1627_v19, %v7475_v10  ;;  %v5539_v26 = vadd.f32 %v1628_v49, %v7477_v48  ;;  %v7487_v42 = vld [vmem:[#allocation48_spill] sm:$0xff]  ;;  %v7494_v56 = vld [vmem:[#allocation50_spill] sm:$0xff] }
 0x133   : > { %7462 = vst [vmem:[#allocation30_spill] sm:$0xff] %v5504_v39  ;;  %7463 = vst [vmem:[#allocation34_spill] sm:$0xff] %v5507_v8  ;;  %v5542_v25 = vadd.f32 %v1629_v62, %v7479_v35  ;;  %v5545_v50 = vadd.f32 %v1630_v63, %v7481_v54  ;;  %v5548_v24 = vadd.f32 %v1631_v6, %v7483_v36  ;;  %v7488_v19 = vld [vmem:[#allocation40_spill] sm:$0xff]  ;;  %v7490_v62 = vld [vmem:[#allocation57_spill] sm:$0xff] }
 0x134   : > { %7464 = vst [vmem:[#allocation31_spill] sm:$0xff] %v5510_v53  ;;  %7465 = vst [vmem:[#allocation35_spill] sm:$0xff] %v5513_v1  ;;  %v5551_v20 = vadd.f32 %v1632_v13, %v7485_v11  ;;  %v1670_v61 = vmul.f32 %v7487_v42, %v5524_v29  ;;  %v1671_v31 = vmul.f32 %v7488_v19, %v5524_v29  ;;  %v7489_v49 = vld [vmem:[#allocation44_spill] sm:$0xff]  ;;  %v7491_v63 = vld [vmem:[#allocation45_spill] sm:$0xff] }
 0x135   : > { %7466 = vst [vmem:[#allocation43_spill] sm:$0xff] %v5516_v43  ;;  %7468 = vst [vmem:[#allocation36_spill] sm:$0xff] %v5519_v37  ;;  %v1672_v55 = vmul.f32 %v7489_v49, %v5524_v29  ;;  %v1673_v44 = vmul.f32 %v7490_v62, %v5524_v29  ;;  %v1674_v45 = vmul.f32 %v7491_v63, %v5524_v29  ;;  %v7492_v6 = vld [vmem:[#allocation49_spill] sm:$0xff]  ;;  %v7493_v13 = vld [vmem:[#allocation62_spill] sm:$0xff] }
 0x136   : > { %7470 = vst [vmem:[#allocation39_spill] sm:$0xff] %v5527_v46  ;;  %7472 = vst [vmem:[#allocation13_spill] sm:$0xff] %v5530_v28  ;;  %v1675_v32 = vmul.f32 %v7492_v6, %v5524_v29  ;;  %v5567_v23 = vmul.f32 %v7493_v13, %v5524_v29  ;;  %v5571_v52 = vmul.f32 %v7494_v56, %v5524_v29  ;;  %v7495_v5 = vld [vmem:[#allocation53_spill] sm:$0xff]  ;;  %v7496_v17 = vld [vmem:[#allocation67_spill] sm:$0xff]  ;;  %v1767_v41 = vrot.slane %v1671_v31, 1 }
 0x137   : > { %7474 = vst [vmem:[#allocation23_spill] sm:$0xff] %v5533_v0  ;;  %7476 = vst [vmem:[#allocation24_spill] sm:$0xff] %v5536_v3  ;;  %v5575_v2 = vmul.f32 %v7495_v5, %v5524_v29  ;;  %v5579_v4 = vmul.f32 %v7496_v17, %v5524_v29  ;;  %v7497_v12 = vld [vmem:[#allocation54_spill] sm:$0xff]  ;;  %v7499_v35 = vld [vmem:[#allocation72_spill] sm:$0xff]  ;;  %v1769_v59 = vrot.slane %v1672_v55, 1  ;;  %v1771_v14 = vrot.slane %v1673_v44, 1 }
 0x138   : > { %7478 = vst [vmem:[#allocation27_spill] sm:$0xff] %v5539_v26  ;;  %7480 = vst [vmem:[#allocation32_spill] sm:$0xff] %v5542_v25  ;;  %v5583_v16 = vmul.f32 %v7497_v12, %v5524_v29  ;;  %v7498_v10 = vld [vmem:[#allocation58_spill] sm:$0xff]  ;;  %v5591_v54 = vmul.f32 %v7499_v35, %v5524_v29  ;;  %v7500_v36 = vld [vmem:[#allocation59_spill] sm:$0xff]  ;;  %v1774_v22 = vrot.slane %v1675_v32, 1  ;;  %v5725_v44 = vmul.f32 %v5524_v29, %v5431_v58 }
 0x139   : > { %7482 = vst [vmem:[#allocation33_spill] sm:$0xff] %v5545_v50  ;;  %7484 = vst [vmem:[#allocation9_spill] sm:$0xff] %v5548_v24  ;;  %v5587_v48 = vmul.f32 %v7498_v10, %v5524_v29  ;;  %v5595_v11 = vmul.f32 %v7500_v36, %v5524_v29  ;;  %v7501_v5 = vld [vmem:[#allocation63_spill] sm:$0xff]  ;;  %v7502_v56 = vld [vmem:[#allocation77_spill] sm:$0xff]  ;;  %v1776_v32 = vrot.slane %v5567_v23, 1  ;;  %v1779_v58 = vrot.slane %v5575_v2, 1 }
 0x13a   : > { %7486 = vst [vmem:[#allocation10_spill] sm:$0xff] %v5551_v20  ;;  %v5599_v17 = vmul.f32 %v7501_v5, %v5524_v29  ;;  %v5603_v12 = vmul.f32 %v7502_v56, %v5524_v29  ;;  %v7503_v13 = vld [vmem:[#allocation64_spill] sm:$0xff]  ;;  %v7504_v6 = vld [vmem:[#allocation78_spill] sm:$0xff]  ;;  %v7505_v63 = vld [vmem:[#allocation69_spill] sm:$0xff]  ;;  %v1782_v23 = vrot.slane %v5583_v16, 1 }
 0x13b   : > { %v5607_v10 = vmul.f32 %v7503_v13, %v5524_v29  ;;  %v5611_v35 = vmul.f32 %v7504_v6, %v5524_v29  ;;  %v5615_v36 = vmul.f32 %v7505_v63, %v5524_v29  ;;  %v7506_v62 = vld [vmem:[#allocation73_spill] sm:$0xff]  ;;  %v7507_v49 = vld [vmem:[#allocation79_spill] sm:$0xff]  ;;  %v7509_v42 = vld [vmem:[#allocation42_spill] sm:$0xff] }
 0x13c   : > { %v5619_v5 = vmul.f32 %v7506_v62, %v5524_v29  ;;  %v5623_v56 = vmul.f32 %v7507_v49, %v5524_v29  ;;  %v7508_v19 = vld [vmem:[#allocation41_spill] sm:$0xff]  ;;  %v5631_v6 = vmul.f32 %v7509_v42, %v5524_v29  ;;  %v7510_v20 = vld [vmem:[#allocation46_spill] sm:$0xff]  ;;  %v7511_v24 = vld [vmem:[#allocation47_spill] sm:$0xff] }
 0x13d   : > { %v5627_v13 = vmul.f32 %v7508_v19, %v5524_v29  ;;  %v5635_v63 = vmul.f32 %v7510_v20, %v5524_v29  ;;  %v5639_v62 = vmul.f32 %v7511_v24, %v5524_v29  ;;  %v7512_v50 = vld [vmem:[#allocation51_spill] sm:$0xff]  ;;  %v7513_v25 = vld [vmem:[#allocation52_spill] sm:$0xff]  ;;  %v7517_v28 = vld [vmem:[#allocation61_spill] sm:$0xff]  ;;  %v1794_v2 = vrot.slane %v5611_v35, 1 }
 0x13e   : > { %v5643_v49 = vmul.f32 %v7512_v50, %v5524_v29  ;;  %v5647_v19 = vmul.f32 %v7513_v25, %v5524_v29  ;;  %v7514_v26 = vld [vmem:[#allocation55_spill] sm:$0xff]  ;;  %v7515_v3 = vld [vmem:[#allocation56_spill] sm:$0xff]  ;;  %v5663_v50 = vmul.f32 %v7517_v28, %v5524_v29  ;;  %v7518_v46 = vld [vmem:[#allocation65_spill] sm:$0xff] }
 0x13f   : > { %v5651_v42 = vmul.f32 %v7514_v26, %v5524_v29  ;;  %v5655_v20 = vmul.f32 %v7515_v3, %v5524_v29  ;;  %v7516_v0 = vld [vmem:[#allocation60_spill] sm:$0xff]  ;;  %v5667_v25 = vmul.f32 %v7518_v46, %v5524_v29  ;;  %v7519_v37 = vld [vmem:[#allocation66_spill] sm:$0xff]  ;;  %v7521_v1 = vld [vmem:[#allocation71_spill] sm:$0xff]  ;;  %v1801_v16 = vrot.slane %v5627_v13, 1 }
 0x140   : > { %v5659_v24 = vmul.f32 %v7516_v0, %v5524_v29  ;;  %v5671_v26 = vmul.f32 %v7519_v37, %v5524_v29  ;;  %v7520_v43 = vld [vmem:[#allocation70_spill] sm:$0xff]  ;;  %v5679_v0 = vmul.f32 %v7521_v1, %v5524_v29  ;;  %v7523_v8 = vld [vmem:[#allocation75_spill] sm:$0xff]  ;;  %v7524_v39 = vld [vmem:[#allocation76_spill] sm:$0xff] }
 0x141   : > { %v5675_v3 = vmul.f32 %v7520_v43, %v5524_v29  ;;  %v7522_v53 = vld [vmem:[#allocation74_spill] sm:$0xff]  ;;  %v5687_v46 = vmul.f32 %v7523_v8, %v5524_v29  ;;  %v5691_v37 = vmul.f32 %v7524_v39, %v5524_v29  ;;  %v7525_v60 = vld [vmem:[#allocation68_spill] sm:$0xff]  ;;  %v5697_v57 = vld [vmem:[#allocation2 + $0x1a8] sm:$0x3]  ;;  %v5705_v8 = vmul.f32 %v7449_v21, %v5524_v29 }
 0x142   : > { %v5683_v28 = vmul.f32 %v7522_v53, %v5524_v29  ;;  %v5695_v43 = vmul.f32 %v7525_v60, %v5524_v29  ;;  %7526 = vst [vmem:[#allocation11_spill] sm:$0xff] %v5697_v57  ;;  %v7527_v1 = vld [vmem:[#allocation7_spill] sm:$0xff]  ;;  %v1766_v53 = vrot.slane %v1670_v61, 1  ;;  %v1772_v39 = vrot.slane %v1674_v45, 1  ;;  %v7528_v15 = vld [vmem:[#allocation8_spill] sm:$0xff]  ;;  %v7529_v9 = vld [vmem:[#allocation37_spill] sm:$0xff] }
 0x143   : > { %v5701_v47 = vmul.f32 %v7527_v1, %v5524_v29  ;;  %v5709_v60 = vmul.f32 %v7528_v15, %v5524_v29  ;;  %v5713_v40 = vmul.f32 %v5524_v29, %v7529_v9  ;;  %v7530_v1 = vld [vmem:[#allocation38_spill] sm:$0xff]  ;;  %v7531_v31 = vld [vmem:[#allocation28_spill] sm:$0xff]  ;;  %v5729_v45 = vmul.f32 %v5524_v29, %v5445_v33 }
 0x144   : > { %v5717_v61 = vmul.f32 %v5524_v29, %v7530_v1  ;;  %v5721_v55 = vmul.f32 %v5524_v29, %v7531_v31  ;;  %v5733_v9 = vmul.f32 %v5524_v29, %v5697_v57  ;;  %v5737_v1 = vsel %vm644_vm3, %v1766_v53, %v1767_v41 }
 0x145   : > { %v5740_v31 = vsel %vm644_vm3, %v1767_v41, %v1769_v59  ;;  %v1777_v15 = vrot.slane %v5571_v52, 1  ;;  %v5745_v21 = vsel %vm644_vm3, %v1771_v14, %v1772_v39  ;;  %v5748_v33 = vsel %vm644_vm3, %v1772_v39, %v1774_v22 }
 0x146   : > { %v1781_v29 = vrot.slane %v5579_v4, 1  ;;  %v1784_v53 = vrot.slane %v5587_v48, 1  ;;  %v1786_v57 = vrot.slane %v5591_v54, 1  ;;  %v1787_v59 = vrot.slane %v5595_v11, 1 }
 0x147   : > { %v1789_v41 = vrot.slane %v5599_v17, 1  ;;  %v1791_v52 = vrot.slane %v5603_v12, 1  ;;  %v1792_v14 = vrot.slane %v5607_v10, 1  ;;  %v1796_v22 = vrot.slane %v5615_v36, 1 }
 0x148   : > { %v1797_v39 = vrot.slane %v5619_v5, 1  ;;  %v1799_v4 = vrot.slane %v5623_v56, 1  ;;  %v1802_v48 = vrot.slane %v5631_v6, 1  ;;  %v1778_v54 = vsel %vm644_vm3, %v1776_v32, %v1777_v15 }
 0x149   : > { %v1780_v17 = vsel %vm644_vm3, %v1777_v15, %v1779_v58  ;;  %v1783_v12 = vsel %vm644_vm3, %v1781_v29, %v1782_v23  ;;  %v1804_v10 = vrot.slane %v5635_v63, 1  ;;  %v1785_v35 = vsel %vm644_vm3, %v1782_v23, %v1784_v53 }
 0x14a   : > { %v1806_v36 = vrot.slane %v5639_v62, 1  ;;  %v1807_v5 = vrot.slane %v5643_v49, 1  ;;  %v1809_v56 = vrot.slane %v5647_v19, 1  ;;  %v1788_v13 = vsel %vm644_vm3, %v1786_v57, %v1787_v59 }
 0x14b   : > { %v1790_v6 = vsel %vm644_vm3, %v1787_v59, %v1789_v41  ;;  %v1793_v11 = vsel %vm644_vm3, %v1791_v52, %v1792_v14  ;;  %v1795_v58 = vsel %vm644_vm3, %v1792_v14, %v1794_v2  ;;  %v1798_v15 = vsel %vm644_vm3, %v1796_v22, %v1797_v39 }
 0x14c   : > { %v1800_v63 = vsel %vm644_vm3, %v1797_v39, %v1799_v4  ;;  %v1803_v32 = vsel %vm644_vm3, %v1801_v16, %v1802_v48  ;;  %v1811_v62 = vrot.slane %v5651_v42, 1  ;;  %v1805_v49 = vsel %vm644_vm3, %v1802_v48, %v1804_v10 }
 0x14d   : > { %v1812_v19 = vrot.slane %v5655_v20, 1  ;;  %v1814_v57 = vrot.slane %v5659_v24, 1  ;;  %v1816_v29 = vrot.slane %v5663_v50, 1  ;;  %v1808_v23 = vsel %vm644_vm3, %v1806_v36, %v1807_v5 }
 0x14e   : > { %v1810_v53 = vsel %vm644_vm3, %v1807_v5, %v1809_v56  ;;  %v1817_v59 = vrot.slane %v5667_v25, 1  ;;  %v1819_v41 = vrot.slane %v5671_v26, 1  ;;  %v1821_v52 = vrot.slane %v5675_v3, 1 }
 0x14f   : > { %v1822_v42 = vrot.slane %v5679_v0, 1  ;;  %v1824_v14 = vrot.slane %v5683_v28, 1  ;;  %v1826_v20 = vrot.slane %v5687_v46, 1  ;;  %v1827_v24 = vrot.slane %v5691_v37, 1 }
 0x150   : > { %v1829_v50 = vrot.slane %v5695_v43, 1  ;;  %v1831_v2 = vrot.slane %v5701_v47, 1  ;;  %v1832_v22 = vrot.slane %v5705_v8, 1  ;;  %v1834_v25 = vrot.slane %v5709_v60, 1 }
 0x151   : > { %v1836_v26 = vrot.slane %v5713_v40, 1  ;;  %v1837_v3 = vrot.slane %v5717_v61, 1  ;;  %v1839_v0 = vrot.slane %v5721_v55, 1  ;;  %v1813_v28 = vsel %vm644_vm3, %v1811_v62, %v1812_v19 }
 0x152   : > { %v1815_v46 = vsel %vm644_vm3, %v1812_v19, %v1814_v57  ;;  %v1841_v37 = vrot.slane %v5725_v44, 1  ;;  %v1842_v43 = vrot.slane %v5729_v45, 1  ;;  %v1818_v47 = vsel %vm644_vm3, %v1816_v29, %v1817_v59  ;;  %v7537_v19 = vld [vmem:[#allocation18_spill] sm:$0xff] }
 0x153   : > { %v1820_v8 = vsel %vm644_vm3, %v1817_v59, %v1819_v41  ;;  %v1823_v60 = vsel %vm644_vm3, %v1821_v52, %v1822_v42  ;;  %v1844_v40 = vrot.slane %v5733_v9, 1  ;;  %v1825_v61 = vsel %vm644_vm3, %v1822_v42, %v1824_v14 }
 0x154   : > { %v1828_v55 = vsel %vm644_vm3, %v1826_v20, %v1827_v24  ;;  %v1830_v39 = vsel %vm644_vm3, %v1827_v24, %v1829_v50  ;;  %v1833_v4 = vsel %vm644_vm3, %v1831_v2, %v1832_v22  ;;  %v1835_v44 = vsel %vm644_vm3, %v1832_v22, %v1834_v25  ;;  %v7567_v22 = vld [vmem:[#allocation13_spill] sm:$0xff] }
 0x155   : > { %v1838_v45 = vsel %vm644_vm3, %v1836_v26, %v1837_v3  ;;  %v1840_v16 = vsel %vm644_vm3, %v1837_v3, %v1839_v0  ;;  %v5817_v48 = vadd.f32 %v5737_v1, %v5453_v38  ;;  %v1843_v9 = vsel %vm644_vm3, %v1841_v37, %v1842_v43  ;;  %v7569_v26 = vld [vmem:[#allocation23_spill] sm:$0xff]  ;;  %v7571_v0 = vld [vmem:[#allocation24_spill] sm:$0xff] }
 0x156   : > { %v5822_v10 = vadd.f32 %v5740_v31, %v5456_v7  ;;  %v5826_v36 = vadd.f32 %v5745_v21, %v5459_v27  ;;  %v5830_v5 = vadd.f32 %v5748_v33, %v5462_v51  ;;  %v1845_v56 = vsel %vm644_vm3, %v1842_v43, %v1844_v40  ;;  %v7533_v7 = vld [vmem:[#allocation16_spill] sm:$0xff]  ;;  %v7535_v27 = vld [vmem:[#allocation17_spill] sm:$0xff]  ;;  %v7539_v51 = vld [vmem:[#allocation19_spill] sm:$0xff] }
 0x157   : > { %v5834_v62 = vadd.f32 %v1778_v54, %v5465_v18  ;;  %v5837_v38 = vadd.f32 %v1780_v17, %v5468_v30  ;;  %v5840_v1 = vadd.f32 %v1783_v12, %v5471_v34  ;;  %v5843_v31 = vadd.f32 %v1785_v35, %v7533_v7  ;;  %v7541_v18 = vld [vmem:[#allocation20_spill] sm:$0xff]  ;;  %v7543_v30 = vld [vmem:[#allocation21_spill] sm:$0xff]  ;;  %v7545_v34 = vld [vmem:[#allocation22_spill] sm:$0xff] }
 0x158   : > { %v5846_v21 = vadd.f32 %v1788_v13, %v7535_v27  ;;  %v5849_v33 = vadd.f32 %v1790_v6, %v7537_v19  ;;  %v5852_v57 = vadd.f32 %v1793_v11, %v7539_v51  ;;  %v5855_v54 = vadd.f32 %v1795_v58, %v7541_v18  ;;  %v7547_v35 = vld [vmem:[#allocation25_spill] sm:$0xff]  ;;  %v7551_v6 = vld [vmem:[#allocation26_spill] sm:$0xff]  ;;  %v7575_v43 = vld [vmem:[#allocation32_spill] sm:$0xff] }
 0x159   : > { %7532 = vst [vmem:[#allocation12_spill] sm:$0xff] %v5840_v1  ;;  %7534 = vst [vmem:[#allocation37_spill] sm:$0xff] %v5843_v31  ;;  %v5858_v17 = vadd.f32 %v1798_v15, %v7543_v30  ;;  %v5861_v12 = vadd.f32 %v1800_v63, %v7545_v34  ;;  %v5864_v29 = vadd.f32 %v1803_v32, %v7547_v35  ;;  %v7549_v13 = vld [vmem:[#allocation29_spill] sm:$0xff]  ;;  %v7553_v11 = vld [vmem:[#allocation30_spill] sm:$0xff] }
 0x15a   : > { %7536 = vst [vmem:[#allocation38_spill] sm:$0xff] %v5846_v21  ;;  %7538 = vst [vmem:[#allocation28_spill] sm:$0xff] %v5849_v33  ;;  %v5867_v59 = vadd.f32 %v1805_v49, %v7549_v13  ;;  %v5870_v41 = vadd.f32 %v1808_v23, %v7551_v6  ;;  %v5873_v52 = vadd.f32 %v1810_v53, %v7553_v11  ;;  %v7555_v58 = vld [vmem:[#allocation34_spill] sm:$0xff]  ;;  %v7557_v15 = vld [vmem:[#allocation31_spill] sm:$0xff] }
 0x15b   : > { %7540 = vst [vmem:[#allocation16_spill] sm:$0xff] %v5852_v57  ;;  %7542 = vst [vmem:[#allocation17_spill] sm:$0xff] %v5855_v54  ;;  %v5876_v42 = vadd.f32 %v1813_v28, %v7555_v58  ;;  %v5879_v14 = vadd.f32 %v1815_v46, %v7557_v15  ;;  %v7559_v63 = vld [vmem:[#allocation35_spill] sm:$0xff]  ;;  %v7563_v49 = vld [vmem:[#allocation36_spill] sm:$0xff]  ;;  %v5899_v25 = vadd.f32 %v1828_v55, %v7567_v22 }
 0x15c   : > { %7544 = vst [vmem:[#allocation18_spill] sm:$0xff] %v5858_v17  ;;  %7546 = vst [vmem:[#allocation19_spill] sm:$0xff] %v5861_v12  ;;  %v5882_v20 = vadd.f32 %v1818_v47, %v7559_v63  ;;  %v7561_v32 = vld [vmem:[#allocation43_spill] sm:$0xff]  ;;  %v5888_v50 = vadd.f32 %v1823_v60, %v7563_v49  ;;  %v5893_v23 = vld [vmem:[%s6773_s1 + $0xa] ss:$0 sm:$0xff]  ;;  %v5902_v3 = vadd.f32 %v1830_v39, %v7569_v26 }
 0x15d   : > { %7548 = vst [vmem:[#allocation20_spill] sm:$0xff] %v5864_v29  ;;  %7550 = vst [vmem:[#allocation21_spill] sm:$0xff] %v5867_v59  ;;  %v5885_v24 = vadd.f32 %v1820_v8, %v7561_v32  ;;  %v7565_v53 = vld [vmem:[#allocation39_spill] sm:$0xff]  ;;  %v5905_v28 = vadd.f32 %v1833_v4, %v7571_v0  ;;  %v5911_v47 = vadd.f32 %v1838_v45, %v7575_v43  ;;  %v7577_v8 = vld [vmem:[#allocation33_spill] sm:$0xff] }
 0x15e   : > { %7552 = vst [vmem:[#allocation22_spill] sm:$0xff] %v5870_v41  ;;  %7554 = vst [vmem:[#allocation25_spill] sm:$0xff] %v5873_v52  ;;  %v5896_v2 = vadd.f32 %v1825_v61, %v7565_v53  ;;  %v7573_v46 = vld [vmem:[#allocation27_spill] sm:$0xff]  ;;  %v5914_v60 = vadd.f32 %v1840_v16, %v7577_v8  ;;  %v7579_v40 = vld [vmem:[#allocation9_spill] sm:$0xff] }
 0x15f   : > { %7556 = vst [vmem:[#allocation29_spill] sm:$0xff] %v5876_v42  ;;  %7558 = vst [vmem:[#allocation26_spill] sm:$0xff] %v5879_v14  ;;  %v5908_v37 = vadd.f32 %v1835_v44, %v7573_v46  ;;  %v5917_v61 = vadd.f32 %v1843_v9, %v7579_v40  ;;  %v7581_v55 = vld [vmem:[#allocation10_spill] sm:$0xff]  ;;  %v7583_v39 = vld [vmem:[#allocation48_spill] sm:$0xff] }
 0x160   : > { %7560 = vst [vmem:[#allocation30_spill] sm:$0xff] %v5882_v20  ;;  %7562 = vst [vmem:[#allocation34_spill] sm:$0xff] %v5885_v24  ;;  %v5920_v7 = vadd.f32 %v1845_v56, %v7581_v55  ;;  %v5924_v27 = vmul.f32 %v7583_v39, %v5893_v23  ;;  %v7584_v4 = vld [vmem:[#allocation40_spill] sm:$0xff]  ;;  %v7586_v16 = vld [vmem:[#allocation57_spill] sm:$0xff] }
 0x161   : > { %7564 = vst [vmem:[#allocation31_spill] sm:$0xff] %v5888_v50  ;;  %7566 = vst [vmem:[#allocation35_spill] sm:$0xff] %v5896_v2  ;;  %v5928_v44 = vmul.f32 %v7584_v4, %v5893_v23  ;;  %v7585_v45 = vld [vmem:[#allocation44_spill] sm:$0xff]  ;;  %v5936_v51 = vmul.f32 %v7586_v16, %v5893_v23  ;;  %v7587_v9 = vld [vmem:[#allocation45_spill] sm:$0xff] }
 0x162   : > { %7568 = vst [vmem:[#allocation43_spill] sm:$0xff] %v5899_v25  ;;  %7570 = vst [vmem:[#allocation36_spill] sm:$0xff] %v5902_v3  ;;  %v5932_v19 = vmul.f32 %v7585_v45, %v5893_v23  ;;  %v5940_v56 = vmul.f32 %v7587_v9, %v5893_v23  ;;  %v7588_v18 = vld [vmem:[#allocation49_spill] sm:$0xff]  ;;  %v7589_v34 = vld [vmem:[#allocation62_spill] sm:$0xff]  ;;  %v2011_v29 = vrot.slane %v5924_v27, 2 }
 0x163   : > { %7572 = vst [vmem:[#allocation39_spill] sm:$0xff] %v5905_v28  ;;  %7574 = vst [vmem:[#allocation13_spill] sm:$0xff] %v5908_v37  ;;  %v5944_v30 = vmul.f32 %v7588_v18, %v5893_v23  ;;  %v5948_v35 = vmul.f32 %v7589_v34, %v5893_v23  ;;  %v7590_v13 = vld [vmem:[#allocation50_spill] sm:$0xff]  ;;  %v7591_v11 = vld [vmem:[#allocation53_spill] sm:$0xff] }
 0x164   : > { %7576 = vst [vmem:[#allocation23_spill] sm:$0xff] %v5911_v47  ;;  %7578 = vst [vmem:[#allocation24_spill] sm:$0xff] %v5914_v60  ;;  %v5952_v6 = vmul.f32 %v7590_v13, %v5893_v23  ;;  %v5956_v58 = vmul.f32 %v7591_v11, %v5893_v23  ;;  %v7592_v15 = vld [vmem:[#allocation67_spill] sm:$0xff]  ;;  %v7593_v32 = vld [vmem:[#allocation54_spill] sm:$0xff]  ;;  %v2014_v12 = vrot.slane %v5932_v19, 2  ;;  %v2017_v17 = vrot.slane %v5940_v56, 2 }
 0x165   : > { %7580 = vst [vmem:[#allocation27_spill] sm:$0xff] %v5917_v61  ;;  %7582 = vst [vmem:[#allocation32_spill] sm:$0xff] %v5920_v7  ;;  %v5960_v63 = vmul.f32 %v7592_v15, %v5893_v23  ;;  %v5964_v49 = vmul.f32 %v7593_v32, %v5893_v23  ;;  %v7594_v53 = vld [vmem:[#allocation58_spill] sm:$0xff]  ;;  %v7595_v26 = vld [vmem:[#allocation72_spill] sm:$0xff]  ;;  %v2021_v54 = vrot.slane %v5948_v35, 2 }
 0x166   : > { %v5968_v22 = vmul.f32 %v7594_v53, %v5893_v23  ;;  %v5972_v0 = vmul.f32 %v7595_v26, %v5893_v23  ;;  %v7596_v46 = vld [vmem:[#allocation59_spill] sm:$0xff]  ;;  %v7598_v55 = vld [vmem:[#allocation77_spill] sm:$0xff]  ;;  %v7599_v4 = vld [vmem:[#allocation64_spill] sm:$0xff]  ;;  %v2024_v27 = vrot.slane %v5956_v58, 2 }
 0x167   : > { %v5976_v43 = vmul.f32 %v7596_v46, %v5893_v23  ;;  %v7597_v8 = vld [vmem:[#allocation63_spill] sm:$0xff]  ;;  %v5984_v39 = vmul.f32 %v7598_v55, %v5893_v23  ;;  %v5988_v45 = vmul.f32 %v7599_v4, %v5893_v23  ;;  %v7600_v16 = vld [vmem:[#allocation78_spill] sm:$0xff]  ;;  %v7601_v18 = vld [vmem:[#allocation69_spill] sm:$0xff]  ;;  %v2027_v19 = vrot.slane %v5964_v49, 2 }
 0x168   : > { %v5980_v40 = vmul.f32 %v7597_v8, %v5893_v23  ;;  %v5992_v9 = vmul.f32 %v7600_v16, %v5893_v23  ;;  %v5996_v34 = vmul.f32 %v7601_v18, %v5893_v23  ;;  %v7602_v13 = vld [vmem:[#allocation73_spill] sm:$0xff]  ;;  %v7603_v15 = vld [vmem:[#allocation79_spill] sm:$0xff]  ;;  %v7605_v46 = vld [vmem:[#allocation42_spill] sm:$0xff]  ;;  %v2031_v49 = vrot.slane %v5972_v0, 2 }
 0x169   : > { %v6000_v11 = vmul.f32 %v7602_v13, %v5893_v23  ;;  %v6004_v32 = vmul.f32 %v7603_v15, %v5893_v23  ;;  %v7604_v53 = vld [vmem:[#allocation41_spill] sm:$0xff]  ;;  %v6012_v8 = vmul.f32 %v7605_v46, %v5893_v23  ;;  %v7606_v55 = vld [vmem:[#allocation46_spill] sm:$0xff]  ;;  %v7607_v16 = vld [vmem:[#allocation47_spill] sm:$0xff] }
 0x16a   : > { %v6008_v26 = vmul.f32 %v7604_v53, %v5893_v23  ;;  %v6016_v4 = vmul.f32 %v7606_v55, %v5893_v23  ;;  %v6020_v18 = vmul.f32 %v7607_v16, %v5893_v23  ;;  %v7608_v13 = vld [vmem:[#allocation51_spill] sm:$0xff]  ;;  %v7609_v7 = vld [vmem:[#allocation52_spill] sm:$0xff]  ;;  %v7613_v37 = vld [vmem:[#allocation61_spill] sm:$0xff] }
 0x16b   : > { %v6024_v15 = vmul.f32 %v7608_v13, %v5893_v23  ;;  %v6028_v53 = vmul.f32 %v7609_v7, %v5893_v23  ;;  %v7610_v61 = vld [vmem:[#allocation55_spill] sm:$0xff]  ;;  %v7611_v60 = vld [vmem:[#allocation56_spill] sm:$0xff]  ;;  %v6044_v13 = vmul.f32 %v7613_v37, %v5893_v23  ;;  %v7614_v28 = vld [vmem:[#allocation65_spill] sm:$0xff] }
 0x16c   : > { %v6032_v46 = vmul.f32 %v7610_v61, %v5893_v23  ;;  %v6036_v55 = vmul.f32 %v7611_v60, %v5893_v23  ;;  %v7612_v47 = vld [vmem:[#allocation60_spill] sm:$0xff]  ;;  %v6048_v7 = vmul.f32 %v7614_v28, %v5893_v23  ;;  %v7615_v3 = vld [vmem:[#allocation66_spill] sm:$0xff]  ;;  %v7617_v2 = vld [vmem:[#allocation71_spill] sm:$0xff] }
 0x16d   : > { %v6040_v16 = vmul.f32 %v7612_v47, %v5893_v23  ;;  %v6052_v61 = vmul.f32 %v7615_v3, %v5893_v23  ;;  %v7616_v25 = vld [vmem:[#allocation70_spill] sm:$0xff]  ;;  %v6060_v47 = vmul.f32 %v7617_v2, %v5893_v23  ;;  %v7619_v24 = vld [vmem:[#allocation75_spill] sm:$0xff]  ;;  %v7620_v20 = vld [vmem:[#allocation76_spill] sm:$0xff] }
 0x16e   : > { %v6056_v60 = vmul.f32 %v7616_v25, %v5893_v23  ;;  %v7618_v50 = vld [vmem:[#allocation74_spill] sm:$0xff]  ;;  %v6068_v28 = vmul.f32 %v7619_v24, %v5893_v23  ;;  %v6072_v3 = vmul.f32 %v7620_v20, %v5893_v23  ;;  %v7621_v14 = vld [vmem:[#allocation68_spill] sm:$0xff]  ;;  %v7622_v42 = vld [vmem:[#allocation7_spill] sm:$0xff] }
 0x16f   : > { %v6064_v37 = vmul.f32 %v7618_v50, %v5893_v23  ;;  %v6076_v25 = vmul.f32 %v7621_v14, %v5893_v23  ;;  %v6080_v2 = vmul.f32 %v7622_v42, %v5893_v23  ;;  %v7623_v52 = vld [vmem:[#allocation6_spill] sm:$0xff]  ;;  %v7624_v41 = vld [vmem:[#allocation8_spill] sm:$0xff]  ;;  %v2012_v14 = vrot.slane %v5928_v44, 2  ;;  %v3161_v57 = vld [vmem:[#allocation2 + $0x188] sm:$0xff] }
 0x170   : > { %v6084_v50 = vmul.f32 %v7623_v52, %v5893_v23  ;;  %v6088_v24 = vmul.f32 %v7624_v41, %v5893_v23  ;;  %v3160_v59 = vld [vmem:[#allocation2 + $0x180] sm:$0xff]  ;;  %v2016_v42 = vrot.slane %v5936_v51, 2  ;;  %v2019_v52 = vrot.slane %v5944_v30, 2  ;;  %v3162_v33 = vld [vmem:[#allocation2 + $0x190] sm:$0x3]  ;;  %v7626_v35 = vld [vmem:[#allocation15_spill] sm:$0xff] }
 0x171   : > { %v6091_v20 = vmul.f32 %v3160_v59, %v5893_v23  ;;  %v2022_v41 = vrot.slane %v5952_v6, 2  ;;  %v6102_v59 = vmul.f32 %v3161_v57, %v5893_v23  ;;  %v2026_v44 = vrot.slane %v5960_v63, 2  ;;  %v7625_v56 = vld [vmem:[#allocation14_spill] sm:$0xff]  ;;  %v7627_v21 = vld [vmem:[#allocation11_spill] sm:$0xff] }
 0x172   : > { %v6108_v51 = vmul.f32 %v3162_v33, %v5893_v23  ;;  %v6112_v30 = vmul.f32 %v5893_v23, %v7625_v56  ;;  %v6116_v6 = vmul.f32 %v5893_v23, %v7626_v35  ;;  %v2029_v57 = vrot.slane %v5968_v22, 2 }
 0x173   : > { %v6121_v58 = vmul.f32 %v5893_v23, %v7627_v21  ;;  %v2013_v63 = vsel %vm890_vm4, %v2011_v29, %v2012_v14  ;;  %v2032_v33 = vrot.slane %v5976_v43, 2  ;;  %v2015_v31 = vsel %vm890_vm4, %v2012_v14, %v2014_v12 }
 0x174   : > { %v2018_v56 = vsel %vm890_vm4, %v2016_v42, %v2017_v17  ;;  %v2020_v1 = vsel %vm890_vm4, %v2017_v17, %v2019_v52  ;;  %v2023_v35 = vsel %vm890_vm4, %v2021_v54, %v2022_v41  ;;  %v6131_v22 = vsel %vm890_vm4, %v2022_v41, %v2024_v27 }
 0x175   : > { %v6134_v21 = vsel %vm890_vm4, %v2026_v44, %v2027_v19  ;;  %v2034_v29 = vrot.slane %v5980_v40, 2  ;;  %v2036_v23 = vrot.slane %v5984_v39, 2  ;;  %v6139_v0 = vsel %vm890_vm4, %v2027_v19, %v2029_v57 }
 0x176   : > { %v2037_v12 = vrot.slane %v5988_v45, 2  ;;  %v2039_v43 = vrot.slane %v5992_v9, 2  ;;  %v2041_v17 = vrot.slane %v5996_v34, 2  ;;  %v6145_v54 = vsel %vm890_vm4, %v2031_v49, %v2032_v33 }
 0x177   : > { %v2042_v14 = vrot.slane %v6000_v11, 2  ;;  %v2044_v42 = vrot.slane %v6004_v32, 2  ;;  %v2046_v40 = vrot.slane %v6008_v26, 2  ;;  %v2047_v39 = vrot.slane %v6012_v8, 2 }
 0x178   : > { %v2049_v52 = vrot.slane %v6016_v4, 2  ;;  %v2051_v41 = vrot.slane %v6020_v18, 2  ;;  %v2052_v45 = vrot.slane %v6024_v15, 2  ;;  %v2054_v9 = vrot.slane %v6028_v53, 2 }
 0x179   : > { %v2056_v34 = vrot.slane %v6032_v46, 2  ;;  %v2057_v27 = vrot.slane %v6036_v55, 2  ;;  %v2059_v11 = vrot.slane %v6040_v16, 2  ;;  %v2035_v32 = vsel %vm890_vm4, %v2032_v33, %v2034_v29 }
 0x17a   : > { %v2061_v26 = vrot.slane %v6044_v13, 2  ;;  %v2062_v8 = vrot.slane %v6048_v7, 2  ;;  %v2064_v4 = vrot.slane %v6052_v61, 2  ;;  %v2038_v18 = vsel %vm890_vm4, %v2036_v23, %v2037_v12 }
 0x17b   : > { %v2040_v15 = vsel %vm890_vm4, %v2037_v12, %v2039_v43  ;;  %v2066_v53 = vrot.slane %v6056_v60, 2  ;;  %v2067_v46 = vrot.slane %v6060_v47, 2  ;;  %v2043_v55 = vsel %vm890_vm4, %v2041_v17, %v2042_v14 }
 0x17c   : > { %v2045_v16 = vsel %vm890_vm4, %v2042_v14, %v2044_v42  ;;  %v2048_v44 = vsel %vm890_vm4, %v2046_v40, %v2047_v39  ;;  %v2050_v13 = vsel %vm890_vm4, %v2047_v39, %v2049_v52  ;;  %v2053_v7 = vsel %vm890_vm4, %v2051_v41, %v2052_v45  ;;  %v7628_v52 = vld [vmem:[#allocation12_spill] sm:$0xff] }
 0x17d   : > { %v2055_v61 = vsel %vm890_vm4, %v2052_v45, %v2054_v9  ;;  %v2058_v19 = vsel %vm890_vm4, %v2056_v34, %v2057_v27  ;;  %v2060_v57 = vsel %vm890_vm4, %v2057_v27, %v2059_v11  ;;  %v2063_v60 = vsel %vm890_vm4, %v2061_v26, %v2062_v8  ;;  %v7629_v45 = vld [vmem:[#allocation37_spill] sm:$0xff]  ;;  %v7630_v27 = vld [vmem:[#allocation38_spill] sm:$0xff]  ;;  %v7631_v26 = vld [vmem:[#allocation28_spill] sm:$0xff] }
 0x17e   : > { %v6176_v47 = vsel %vm890_vm4, %v2062_v8, %v2064_v4  ;;  %v2069_v49 = vrot.slane %v6064_v37, 2  ;;  %v2071_v33 = vrot.slane %v6068_v28, 2  ;;  %v2068_v29 = vsel %vm890_vm4, %v2066_v53, %v2067_v46  ;;  %v6191_v37 = vld [vmem:[%s6774_s2] ss:$0 sm:$0xff] }
 0x17f   : > { %v2072_v23 = vrot.slane %v6072_v3, 2  ;;  %v2123_v12 = vadd.f32 %v2013_v63, %v5817_v48  ;;  %v2124_v43 = vadd.f32 %v2015_v31, %v5822_v10  ;;  %v2074_v17 = vrot.slane %v6076_v25, 2  ;;  %v7632_v4 = vld [vmem:[#allocation16_spill] sm:$0xff] }
 0x180   : > { %v2076_v14 = vrot.slane %v6080_v2, 2  ;;  %v2077_v42 = vrot.slane %v6084_v50, 2  ;;  %v2125_v40 = vadd.f32 %v2018_v56, %v5826_v36  ;;  %v2079_v28 = vrot.slane %v6088_v24, 2 }
 0x181   : > { %v2081_v3 = vrot.slane %v6091_v20, 2  ;;  %v2082_v48 = vrot.slane %v6102_v59, 2  ;;  %v2126_v10 = vadd.f32 %v2020_v1, %v5830_v5  ;;  %v2084_v31 = vrot.slane %v6108_v51, 2 }
 0x182   : > { %v2086_v25 = vrot.slane %v6112_v30, 2  ;;  %v2087_v2 = vrot.slane %v6116_v6, 2  ;;  %v2089_v36 = vrot.slane %v6121_v58, 2  ;;  %v2070_v50 = vsel %vm890_vm4, %v2067_v46, %v2069_v49 }
 0x183   : > { %v2127_v63 = vadd.f32 %v2023_v35, %v5834_v62  ;;  %v6204_v24 = vadd.f32 %v6191_v37, %v2123_v12  ;;  %v6207_v20 = vadd.f32 %v6191_v37, %v2124_v43  ;;  %v2073_v5 = vsel %vm890_vm4, %v2071_v33, %v2072_v23  ;;  %v7634_v33 = vld [vmem:[#allocation18_spill] sm:$0xff]  ;;  %v7635_v43 = vld [vmem:[#allocation19_spill] sm:$0xff] }
 0x184   : > { %v2075_v1 = vsel %vm890_vm4, %v2072_v23, %v2074_v17  ;;  %v2078_v59 = vsel %vm890_vm4, %v2076_v14, %v2077_v42  ;;  %v6213_v51 = vadd.f32 %v6191_v37, %v2125_v40  ;;  %v2080_v30 = vsel %vm890_vm4, %v2077_v42, %v2079_v28  ;;  %v7636_v14 = vld [vmem:[#allocation20_spill] sm:$0xff] }
 0x185   : > { %v2083_v6 = vsel %vm890_vm4, %v2081_v3, %v2082_v48  ;;  %v2128_v62 = vadd.f32 %v6131_v22, %v5837_v38  ;;  %v6220_v58 = vadd.f32 %v6191_v37, %v2126_v10  ;;  %v2085_v56 = vsel %vm890_vm4, %v2082_v48, %v2084_v31  ;;  %v7639_v48 = vld [vmem:[#allocation25_spill] sm:$0xff] }
 0x186   : > { %v2088_v35 = vsel %vm890_vm4, %v2086_v25, %v2087_v2  ;;  %v2090_v39 = vsel %vm890_vm4, %v2087_v2, %v2089_v36  ;;  %v2129_v41 = vadd.f32 %v6134_v21, %v7628_v52  ;;  %v2130_v9 = vadd.f32 %v6139_v0, %v7629_v45  ;;  %v7633_v21 = vld [vmem:[#allocation17_spill] sm:$0xff]  ;;  %v7642_v2 = vld [vmem:[#allocation30_spill] sm:$0xff]  ;;  %v7645_v45 = vld [vmem:[#allocation35_spill] sm:$0xff] }
 0x187   : > { %v6230_v34 = vadd.f32 %v6191_v37, %v2127_v63  ;;  %v2194_v38 = vadd.f32 3.0, %v6204_v24  ;;  %v2195_v22 = vadd.f32 3.0, %v6207_v20  ;;  %v2131_v11 = vadd.f32 %v6145_v54, %v7630_v27  ;;  %v7637_v54 = vld [vmem:[#allocation21_spill] sm:$0xff]  ;;  %v7643_v52 = vld [vmem:[#allocation34_spill] sm:$0xff] }
 0x188   : > { %v2132_v8 = vadd.f32 %v2035_v32, %v7631_v26  ;;  %v2133_v53 = vadd.f32 %v2038_v18, %v7632_v4  ;;  %v2196_v46 = vadd.f32 3.0, %v6213_v51  ;;  %v2134_v49 = vadd.f32 %v2040_v15, %v7633_v21  ;;  %v7638_v32 = vld [vmem:[#allocation22_spill] sm:$0xff]  ;;  %v7640_v31 = vld [vmem:[#allocation29_spill] sm:$0xff]  ;;  %v7646_v26 = vld [vmem:[#allocation43_spill] sm:$0xff] }
 0x189   : > { %v2135_v0 = vadd.f32 %v2043_v55, %v7634_v33  ;;  %v6242_v23 = vadd.f32 %v6191_v37, %v2128_v62  ;;  %v2197_v12 = vadd.f32 3.0, %v6220_v58  ;;  %v2136_v17 = vadd.f32 %v2045_v16, %v7635_v43  ;;  %v7641_v16 = vld [vmem:[#allocation26_spill] sm:$0xff]  ;;  %v7648_v21 = vld [vmem:[#allocation39_spill] sm:$0xff] }
 0x18a   : > { %v2137_v42 = vadd.f32 %v2048_v44, %v7636_v14  ;;  %v2138_v40 = vadd.f32 %v2050_v13, %v7637_v54  ;;  %v6249_v28 = vadd.f32 %v2053_v7, %v7638_v32  ;;  %v6252_v18 = vadd.f32 %v6191_v37, %v2129_v41  ;;  %v7644_v41 = vld [vmem:[#allocation31_spill] sm:$0xff]  ;;  %v7649_v14 = vld [vmem:[#allocation13_spill] sm:$0xff] }
 0x18b   : > { %v2198_v15 = vadd.f32 3.0, %v6230_v34  ;;  %v2226_v55 = vmax.f32 %v2194_v38, 0.0  ;;  %v2227_v3 = vmax.f32 %v2195_v22, 0.0  ;;  %v6256_v10 = vadd.f32 %v2055_v61, %v7639_v48  ;;  %v7650_v32 = vld [vmem:[#allocation23_spill] sm:$0xff]  ;;  %v7651_v48 = vld [vmem:[#allocation24_spill] sm:$0xff] }
 0x18c   : > { %v6259_v25 = vadd.f32 %v2058_v19, %v7640_v31  ;;  %v6262_v44 = vadd.f32 %v2060_v57, %v7641_v16  ;;  %v2228_v13 = vmax.f32 %v2196_v46, 0.0  ;;  %v6265_v7 = vadd.f32 %v2063_v60, %v7642_v2  ;;  %v7647_v46 = vld [vmem:[#allocation36_spill] sm:$0xff]  ;;  %v7652_v16 = vld [vmem:[#allocation27_spill] sm:$0xff] }
 0x18d   : > { %v6268_v36 = vadd.f32 %v6191_v37, %v2130_v9  ;;  %v2199_v63 = vadd.f32 3.0, %v6242_v23  ;;  %v2229_v62 = vmax.f32 %v2197_v12, 0.0  ;;  %v6273_v61 = vadd.f32 %v6176_v47, %v7643_v52 }
 0x18e   : > { %v6276_v19 = vadd.f32 %v2068_v29, %v7644_v41  ;;  %v6279_v57 = vadd.f32 %v2070_v50, %v7645_v45  ;;  %v6282_v38 = vadd.f32 %v6191_v37, %v2131_v11  ;;  %v2200_v60 = vadd.f32 3.0, %v6252_v18 }
 0x18f   : > { %v2230_v9 = vmax.f32 %v2198_v15, 0.0  ;;  %v2258_v22 = vmin.f32 %v2226_v55, 6.0  ;;  %v2259_v27 = vmin.f32 %v2227_v3, 6.0  ;;  %v6286_v4 = vadd.f32 %v2073_v5, %v7646_v26 }
 0x190   : > { %v6289_v47 = vadd.f32 %v2075_v1, %v7647_v46  ;;  %v6292_v29 = vadd.f32 %v2078_v59, %v7648_v21  ;;  %v2260_v33 = vmin.f32 %v2228_v13, 6.0  ;;  %v6295_v50 = vadd.f32 %v6191_v37, %v2132_v8 }
 0x191   : > { %v2201_v11 = vadd.f32 3.0, %v6268_v36  ;;  %v2231_v12 = vmax.f32 %v2199_v63, 0.0  ;;  %v2261_v43 = vmin.f32 %v2229_v62, 6.0  ;;  %v6299_v54 = vadd.f32 %v2080_v30, %v7649_v14 }
 0x192   : > { %v6302_v5 = vadd.f32 %v2083_v6, %v7650_v32  ;;  %v6305_v1 = vadd.f32 %v6191_v37, %v2133_v53  ;;  %v2202_v59 = vadd.f32 3.0, %v6282_v38  ;;  %v2232_v15 = vmax.f32 %v2200_v60, 0.0 }
 0x193   : > { %v2262_v55 = vmin.f32 %v2230_v9, 6.0  ;;  %v2290_v8 = vmul.f32 %v2258_v22, %v6204_v24  ;;  %v2291_v3 = vmul.f32 %v2259_v27, %v6207_v20  ;;  %v6311_v31 = vadd.f32 %v2085_v56, %v7651_v48  ;;  %v7653_v24 = vld [vmem:[#allocation32_spill] sm:$0xff] }
 0x194   : > { %v6314_v30 = vadd.f32 %v2088_v35, %v7652_v16  ;;  %v6317_v6 = vadd.f32 %v6191_v37, %v2134_v49  ;;  %v2292_v53 = vmul.f32 %v2260_v33, %v6213_v51  ;;  %v2203_v13 = vadd.f32 3.0, %v6295_v50 }
 0x195   : > { %v2233_v2 = vmax.f32 %v2201_v11, 0.0  ;;  %v2263_v63 = vmin.f32 %v2231_v12, 6.0  ;;  %v2293_v62 = vmul.f32 %v2261_v43, %v6220_v58  ;;  %v6323_v52 = vadd.f32 %v2090_v39, %v7653_v24 }
 0x196   : > { %v6326_v20 = vadd.f32 %v6191_v37, %v2135_v0  ;;  %v2204_v56 = vadd.f32 3.0, %v6305_v1  ;;  %v2234_v35 = vmax.f32 %v2202_v59, 0.0  ;;  %v2264_v41 = vmin.f32 %v2232_v15, 6.0 }
 0x197   : > { %v2294_v49 = vmul.f32 %v2262_v55, %v6230_v34  ;;  %v6330_v45 = vmul.f32 0.16666667, %v2290_v8  ;;  %v6332_v51 = vmul.f32 0.16666667, %v2291_v3  ;;  %v6335_v60 = vadd.f32 %v6191_v37, %v2136_v17 }
 0x198   : > { %v6338_v58 = vadd.f32 %v6191_v37, %v2137_v42  ;;  %v2205_v39 = vadd.f32 3.0, %v6317_v6  ;;  %v6341_v0 = vmul.f32 0.16666667, %v2292_v53  ;;  %v2235_v9 = vmax.f32 %v2203_v13, 0.0 }
 0x199   : > { %v2265_v22 = vmin.f32 %v2233_v2, 6.0  ;;  %v2295_v27 = vmul.f32 %v2263_v63, %v6242_v23  ;;  %v6344_v26 = vmul.f32 0.16666667, %v2293_v62  ;;  %v6347_v34 = vadd.f32 %v6191_v37, %v2138_v40 }
 0x19a   : > { %v2206_v46 = vadd.f32 3.0, %v6326_v20  ;;  %v2236_v17 = vmax.f32 %v2204_v56, 0.0  ;;  %v2266_v21 = vmin.f32 %v2234_v35, 6.0  ;;  %v2296_v42 = vmul.f32 %v2264_v41, %v6252_v18 }
 0x19b   : > { %v6351_v33 = vmul.f32 0.16666667, %v2294_v49  ;;  %v2354_v11 = vsel %vm331_vm0, %v6330_v45, 0.0  ;;  %v2355_v12 = vsel %vm331_vm0, %v6332_v51, 0.0  ;;  %v2207_v23 = vadd.f32 3.0, %v6335_v60 }
 0x19c   : > { %v2237_v43 = vmax.f32 %v2205_v39, 0.0  ;;  %v2356_v14 = vadd.f32 %v2355_v12, %v2354_v11  ;;  %v2357_v40 = vsel %vm331_vm0, %v6341_v0, 0.0  ;;  %v2267_v32 = vmin.f32 %v2235_v9, 6.0 }
 0x19d   : > { %v2297_v59 = vmul.f32 %v2265_v22, %v6268_v36  ;;  %v6361_v15 = vmul.f32 0.16666667, %v2295_v27  ;;  %v2359_v18 = vsel %vm331_vm0, %v6344_v26, 0.0  ;;  %v6367_v55 = vadd.f32 %v6191_v37, %v6249_v28 }
 0x19e   : > { %v2208_v8 = vadd.f32 3.0, %v6338_v58  ;;  %v2238_v3 = vmax.f32 %v2206_v46, 0.0  ;;  %v2358_v48 = vadd.f32 %v2357_v40, %v2356_v14  ;;  %v2268_v16 = vmin.f32 %v2236_v17, 6.0 }
 0x19f   : > { %v2298_v53 = vmul.f32 %v2266_v21, %v6282_v38  ;;  %v6371_v13 = vmul.f32 0.16666667, %v2296_v42  ;;  %v2361_v36 = vsel %vm331_vm0, %v6351_v33, 0.0  ;;  %v6377_v2 = vadd.f32 %v6191_v37, %v6256_v10 }
 0x1a0   : > { %v2209_v63 = vadd.f32 3.0, %v6347_v34  ;;  %v2239_v28 = vmax.f32 %v2207_v23, 0.0  ;;  %v2360_v62 = vadd.f32 %v2359_v18, %v2358_v48  ;;  %v2269_v24 = vmin.f32 %v2237_v43, 6.0 }
 0x1a1   : > { %v2299_v56 = vmul.f32 %v2267_v32, %v6295_v50  ;;  %v6381_v35 = vmul.f32 0.16666667, %v2297_v59  ;;  %v2363_v38 = vsel %vm331_vm0, %v6361_v15, 0.0  ;;  %v6387_v41 = vadd.f32 %v6191_v37, %v6259_v25 }
 0x1a2   : > { %v2210_v49 = vadd.f32 3.0, %v6367_v55  ;;  %v2240_v10 = vmax.f32 %v2208_v8, 0.0  ;;  %v2362_v39 = vadd.f32 %v2361_v36, %v2360_v62  ;;  %v2270_v9 = vmin.f32 %v2238_v3, 6.0 }
 0x1a3   : > { %v2300_v22 = vmul.f32 %v2268_v16, %v6305_v1  ;;  %v6391_v27 = vmul.f32 0.16666667, %v2298_v53  ;;  %v2365_v50 = vsel %vm331_vm0, %v6371_v13, 0.0  ;;  %v6397_v46 = vadd.f32 %v6191_v37, %v6262_v44 }
 0x1a4   : > { %v2211_v17 = vadd.f32 3.0, %v6377_v2  ;;  %v2241_v25 = vmax.f32 %v2209_v63, 0.0  ;;  %v2364_v21 = vadd.f32 %v2363_v38, %v2362_v39  ;;  %v2271_v42 = vmin.f32 %v2239_v28, 6.0 }
 0x1a5   : > { %v2301_v11 = vmul.f32 %v2269_v24, %v6317_v6  ;;  %v6401_v12 = vmul.f32 0.16666667, %v2299_v56  ;;  %v2367_v1 = vsel %vm331_vm0, %v6381_v35, 0.0  ;;  %v6407_v23 = vadd.f32 %v6191_v37, %v6265_v7 }
 0x1a6   : > { %v2212_v43 = vadd.f32 3.0, %v6387_v41  ;;  %v2242_v44 = vmax.f32 %v2210_v49, 0.0  ;;  %v2366_v14 = vadd.f32 %v2365_v50, %v2364_v21  ;;  %v2272_v40 = vmin.f32 %v2240_v10, 6.0 }
 0x1a7   : > { %v2302_v32 = vmul.f32 %v2270_v9, %v6326_v20  ;;  %v6411_v59 = vmul.f32 0.16666667, %v2300_v22  ;;  %v2369_v6 = vsel %vm331_vm0, %v6391_v27, 0.0  ;;  %v6417_v18 = vadd.f32 %v6191_v37, %v6273_v61 }
 0x1a8   : > { %v2213_v8 = vadd.f32 3.0, %v6397_v46  ;;  %v2243_v7 = vmax.f32 %v2211_v17, 0.0  ;;  %v2368_v3 = vadd.f32 %v2367_v1, %v2366_v14  ;;  %v2273_v48 = vmin.f32 %v2241_v25, 6.0 }
 0x1a9   : > { %v2303_v16 = vmul.f32 %v2271_v42, %v6335_v60  ;;  %v6421_v53 = vmul.f32 0.16666667, %v2301_v11  ;;  %v2371_v20 = vsel %vm331_vm0, %v6401_v12, 0.0  ;;  %v6427_v36 = vadd.f32 %v6191_v37, %v6276_v19 }
 0x1aa   : > { %v2214_v63 = vadd.f32 3.0, %v6407_v23  ;;  %v2244_v61 = vmax.f32 %v2212_v43, 0.0  ;;  %v2370_v28 = vadd.f32 %v2369_v6, %v2368_v3  ;;  %v2274_v62 = vmin.f32 %v2242_v44, 6.0 }
 0x1ab   : > { %v2304_v24 = vmul.f32 %v2272_v40, %v6338_v58  ;;  %v6431_v56 = vmul.f32 0.16666667, %v2302_v32  ;;  %v2373_v60 = vsel %vm331_vm0, %v6411_v59, 0.0  ;;  %v6437_v38 = vadd.f32 %v6191_v37, %v6279_v57 }
 0x1ac   : > { %v2215_v49 = vadd.f32 3.0, %v6417_v18  ;;  %v2245_v19 = vmax.f32 %v2213_v8, 0.0  ;;  %v2372_v10 = vadd.f32 %v2371_v20, %v2370_v28  ;;  %v2275_v39 = vmin.f32 %v2243_v7, 6.0 }
 0x1ad   : > { %v2305_v9 = vmul.f32 %v2273_v48, %v6347_v34  ;;  %v6441_v22 = vmul.f32 0.16666667, %v2303_v16  ;;  %v2375_v58 = vsel %vm331_vm0, %v6421_v53, 0.0  ;;  %v6447_v50 = vadd.f32 %v6191_v37, %v6286_v4 }
 0x1ae   : > { %v2216_v17 = vadd.f32 3.0, %v6427_v36  ;;  %v2246_v57 = vmax.f32 %v2214_v63, 0.0  ;;  %v2374_v25 = vadd.f32 %v2373_v60, %v2372_v10  ;;  %v2276_v21 = vmin.f32 %v2244_v61, 6.0 }
 0x1af   : > { %v2306_v42 = vmul.f32 %v2274_v62, %v6367_v55  ;;  %v6451_v11 = vmul.f32 0.16666667, %v2304_v24  ;;  %v2377_v34 = vsel %vm331_vm0, %v6431_v56, 0.0  ;;  %v6457_v1 = vadd.f32 %v6191_v37, %v6289_v47 }
 0x1b0   : > { %v2217_v43 = vadd.f32 3.0, %v6437_v38  ;;  %v2247_v4 = vmax.f32 %v2215_v49, 0.0  ;;  %v2376_v44 = vadd.f32 %v2375_v58, %v2374_v25  ;;  %v2277_v14 = vmin.f32 %v2245_v19, 6.0 }
 0x1b1   : > { %v2307_v40 = vmul.f32 %v2275_v39, %v6377_v2  ;;  %v6461_v32 = vmul.f32 0.16666667, %v2305_v9  ;;  %v2379_v55 = vsel %vm331_vm0, %v6441_v22, 0.0  ;;  %v6467_v6 = vadd.f32 %v6191_v37, %v6292_v29 }
 0x1b2   : > { %v2218_v8 = vadd.f32 3.0, %v6447_v50  ;;  %v2248_v47 = vmax.f32 %v2216_v17, 0.0  ;;  %v2378_v7 = vadd.f32 %v2377_v34, %v2376_v44  ;;  %v2278_v3 = vmin.f32 %v2246_v57, 6.0 }
 0x1b3   : > { %v2308_v48 = vmul.f32 %v2276_v21, %v6387_v41  ;;  %v6471_v16 = vmul.f32 0.16666667, %v2306_v42  ;;  %v2381_v2 = vsel %vm331_vm0, %v6451_v11, 0.0  ;;  %v6477_v20 = vadd.f32 %v6191_v37, %v6299_v54 }
 0x1b4   : > { %v2219_v63 = vadd.f32 3.0, %v6457_v1  ;;  %v2249_v29 = vmax.f32 %v2217_v43, 0.0  ;;  %v2380_v61 = vadd.f32 %v2379_v55, %v2378_v7  ;;  %v2279_v28 = vmin.f32 %v2247_v4, 6.0 }
 0x1b5   : > { %v2309_v62 = vmul.f32 %v2277_v14, %v6397_v46  ;;  %v6481_v24 = vmul.f32 0.16666667, %v2307_v40  ;;  %v2383_v41 = vsel %vm331_vm0, %v6461_v32, 0.0  ;;  %v2190_v60 = vadd.f32 %v6191_v37, %v6302_v5 }
 0x1b6   : > { %v2220_v49 = vadd.f32 3.0, %v6467_v6  ;;  %v2250_v19 = vmax.f32 %v2218_v8, 0.0  ;;  %v2382_v54 = vadd.f32 %v2381_v2, %v2380_v61  ;;  %v2280_v10 = vmin.f32 %v2248_v47, 6.0 }
 0x1b7   : > { %v2310_v39 = vmul.f32 %v2278_v3, %v6407_v23  ;;  %v6489_v9 = vmul.f32 0.16666667, %v2308_v48  ;;  %v2385_v46 = vsel %vm331_vm0, %v6471_v16, 0.0  ;;  %v2191_v58 = vadd.f32 %v6191_v37, %v6311_v31 }
 0x1b8   : > { %v2221_v17 = vadd.f32 3.0, %v6477_v20  ;;  %v2251_v57 = vmax.f32 %v2219_v63, 0.0  ;;  %v2384_v25 = vadd.f32 %v2383_v41, %v2382_v54  ;;  %v2281_v5 = vmin.f32 %v2249_v29, 6.0 }
 0x1b9   : > { %v2311_v21 = vmul.f32 %v2279_v28, %v6417_v18  ;;  %v6497_v42 = vmul.f32 0.16666667, %v2309_v62  ;;  %v2387_v23 = vsel %vm331_vm0, %v6481_v24, 0.0  ;;  %v2192_v34 = vadd.f32 %v6191_v37, %v6314_v30 }
 0x1ba   : > { %v2222_v43 = vadd.f32 3.0, %v2190_v60  ;;  %v2252_v4 = vmax.f32 %v2220_v49, 0.0  ;;  %v2386_v44 = vadd.f32 %v2385_v46, %v2384_v25  ;;  %v2282_v14 = vmin.f32 %v2250_v19, 6.0 }
 0x1bb   : > { %v2312_v31 = vmul.f32 %v2280_v10, %v6427_v36  ;;  %v6504_v40 = vmul.f32 0.16666667, %v2310_v39  ;;  %v2389_v55 = vsel %vm331_vm0, %v6489_v9, 0.0  ;;  %v2193_v18 = vadd.f32 %v6191_v37, %v6323_v52 }
 0x1bc   : > { %v2223_v8 = vadd.f32 3.0, %v2191_v58  ;;  %v2253_v47 = vmax.f32 %v2221_v17, 0.0  ;;  %v2388_v7 = vadd.f32 %v2387_v23, %v2386_v44  ;;  %v2283_v3 = vmin.f32 %v2251_v57, 6.0 }
 0x1bd   : > { %v2313_v30 = vmul.f32 %v2281_v5, %v6437_v38  ;;  %v6511_v48 = vmul.f32 0.16666667, %v2311_v21  ;;  %v2391_v2 = vsel %vm331_vm0, %v6497_v42, 0.0  ;;  %v2224_v36 = vadd.f32 3.0, %v2192_v34 }
 0x1be   : > { %v2254_v63 = vmax.f32 %v2222_v43, 0.0  ;;  %v2390_v29 = vadd.f32 %v2389_v55, %v2388_v7  ;;  %v2284_v61 = vmin.f32 %v2252_v4, 6.0  ;;  %v2314_v28 = vmul.f32 %v2282_v14, %v6447_v50 }
 0x1bf   : > { %v6516_v62 = vmul.f32 0.16666667, %v2312_v31  ;;  %v2393_v37 = vsel %vm331_vm0, %v6504_v40, 0.0  ;;  %v2225_v52 = vadd.f32 3.0, %v2193_v18  ;;  %v2255_v41 = vmax.f32 %v2223_v8, 0.0 }
 0x1c0   : > { %v2392_v49 = vadd.f32 %v2391_v2, %v2390_v29  ;;  %v2285_v38 = vmin.f32 %v2253_v47, 6.0  ;;  %v2315_v19 = vmul.f32 %v2283_v3, %v6457_v1  ;;  %v6521_v54 = vmul.f32 0.16666667, %v2313_v30 }
 0x1c1   : > { %v2395_v10 = vsel %vm331_vm0, %v6511_v48, 0.0  ;;  %v2256_v39 = vmax.f32 %v2224_v36, 0.0  ;;  %v2286_v17 = vmin.f32 %v2254_v63, 6.0  ;;  %v2316_v50 = vmul.f32 %v2284_v61, %v6467_v6 }
 0x1c2   : > { %v2394_v46 = vadd.f32 %v2393_v37, %v2392_v49  ;;  %v6526_v57 = vmul.f32 0.16666667, %v2314_v28  ;;  %v2397_v25 = vsel %vm331_vm0, %v6516_v62, 0.0  ;;  %v2257_v5 = vmax.f32 %v2225_v52, 0.0 }
 0x1c3   : > { %v2287_v23 = vmin.f32 %v2255_v41, 6.0  ;;  %v2317_v1 = vmul.f32 %v2285_v38, %v6477_v20  ;;  %v6531_v43 = vmul.f32 0.16666667, %v2315_v19  ;;  %v2399_v4 = vsel %vm331_vm0, %v6521_v54, 0.0 }
 0x1c4   : > { %v2396_v21 = vadd.f32 %v2395_v10, %v2394_v46  ;;  %v2288_v14 = vmin.f32 %v2256_v39, 6.0  ;;  %v2318_v31 = vmul.f32 %v2286_v17, %v2190_v60  ;;  %v6535_v55 = vmul.f32 0.16666667, %v2316_v50 }
 0x1c5   : > { %v2401_v6 = vsel %vm331_vm0, %v6526_v57, 0.0  ;;  %v2289_v47 = vmin.f32 %v2257_v5, 6.0  ;;  %v2319_v7 = vmul.f32 %v2287_v23, %v2191_v58  ;;  %v6539_v3 = vmul.f32 0.16666667, %v2317_v1 }
 0x1c6   : > { %v2398_v44 = vadd.f32 %v2397_v25, %v2396_v21  ;;  %v2403_v20 = vsel %vm331_vm0, %v6531_v43, 0.0  ;;  %v2320_v2 = vmul.f32 %v2288_v14, %v2192_v34  ;;  %v6543_v36 = vmul.f32 0.16666667, %v2318_v31 }
 0x1c7   : > { %v2405_v60 = vsel %vm331_vm0, %v6535_v55, 0.0  ;;  %v2321_v29 = vmul.f32 %v2289_v47, %v2193_v18  ;;  %v6547_v61 = vmul.f32 0.16666667, %v2319_v7  ;;  %v2407_v28 = vsel %vm331_vm0, %v6539_v3, 0.0  ;;  %v6567_v47 = vld [vmem:[%s6779_s7] sm:$0xff]  ;;  %v6572_v7 = vld [vmem:[%s6779_s7 + $0x8] sm:$0xff] }
 0x1c8   : > { %v2400_v8 = vadd.f32 %v2399_v4, %v2398_v44  ;;  %v2352_v37 = vmul.f32 0.16666667, %v2320_v2  ;;  %v2409_v52 = vsel %vm331_vm0, %v6543_v36, 0.0  ;;  %v2501_v4 = vld [vmem:[%s6777_s5] sm:$0x3]  ;;  %v2627_v2 = vld [vmem:[%s6780_s8 + $0x8] sm:$0xff] }
 0x1c9   : > { %v2353_v49 = vmul.f32 0.16666667, %v2321_v29  ;;  %v2411_v34 = vsel %vm331_vm0, %v6547_v61, 0.0  ;;  %3030 = vmatpush3.msk.msra.mxu1 %vm2507_vm5, %v2501_v4  ;;  %v2426_v44 = vld [vmem:[%s6776_s4] sm:$0x1] }
 0x1ca   : > { %v2402_v30 = vadd.f32 %v2401_v6, %v2400_v8  ;;  %v2413_v19 = vsel %vm331_vm0, %v2352_v37, 0.0 }
 0x1cb   : > { %v2415_v18 = vsel %vm331_vm0, %v2353_v49, 0.0 }
 0x1cc   : > { %v2404_v63 = vadd.f32 %v2403_v20, %v2402_v30  ;;  %v2626_v20 = vld [vmem:[%s6780_s8] sm:$0xff]  ;;  %v3227_v30 = vmov 0  }
 0x1cd   : > { %3110 = vset.pattern.permute.xlu0 %v3227_v30 }
 0x1ce   : > { %v2406_v58 = vadd.f32 %v2405_v60, %v2404_v63  ;;  %2630 = vperm.xlu0 %3110, %v2626_v20   ;;  %v2502_v60 = vld [vmem:[%s6778_s6] sm:$0x1] }
 0x1d0   : > { %v2408_v41 = vadd.f32 %v2407_v28, %v2406_v58 }
 0x1d2   : > { %v2410_v38 = vadd.f32 %v2409_v52, %v2408_v41  ;;  %2635 = vperm.xlu0 %3110, %v2627_v2  }
 0x1d4   : > { %v2412_v10 = vadd.f32 %v2411_v34, %v2410_v38  ;;  %v2588_v38 = vlaneseq }
 0x1d6   : > { %v2414_v39 = vadd.f32 %v2413_v19, %v2412_v10  ;;  %v2589_v19 = vshrl.u32 %v2588_v38, 7 }
 0x1d8   : > { %v2416_v46 = vadd.f32 %v2415_v18, %v2414_v39  ;;  %v2590_v10 = vsub.s32 0, %v2589_v19 }
 0x1da   : > { %v2417_v17 = vrot.slane %v2416_v46, 4 }
 0x1dc   : > { %v2418_v50 = vadd.f32 %v2417_v17, %v2416_v46 }
 0x1de   : > { %v2419_v25 = vrot.slane %v2418_v50, 2 }
 0x1e0   : > { %v2420_v5 = vadd.f32 %v2419_v25, %v2418_v50 }
 0x1e2   : > { %v2421_v21 = vrot.slane %v2420_v5, 1 }
 0x1e4   : > { %v2422_v23 = vadd.f32 %v2421_v21, %v2420_v5 }
 0x1e6   : > { %v2424_v1 = vmul.f32 0.00390625, %v2422_v23 }
 0x1e8   : > { %3027 = vmatmul.mubr.msk.f32.vlgmr.msra.gmra.mxu0 %vm331_vm0, %v2424_v1 }
 0x1e9   : > { %3020 = vmatprep.mubr.msk.f32.mxu0 %vm331_vm0, %v6567_v47 }
 0x2a8   : > { %v2496_v14 = vpop.f32.mrf.mxu0 }
 0x2a9   : > { %v2497_v31 = vadd.f32 %v2496_v14, %v2426_v44 }
 0x2aa   : > { %v3028_v6 = vpop.f32.mrf.mxu0 }
 0x2ab   : > { %v2500_v8 = vmax.f32 %v2497_v31, 0.0 }
 0x2ad   : > { %3032 = vmatmul.mubr.msk.f32.vlgmr.msra.gmra.mxu1 %vm2503_vm6, %v2500_v8 }
 0x2ae   : > { %3022 = vmatprep.mubr.msk.f32.mxu1 %vm331_vm0, %v6572_v7 }
 0x36d   : > { %v2577_v63 = vpop.f32.mrf.mxu1 }
 0x36e   : > { %v2578_v29 = vadd.f32 %v2577_v63, %v2502_v60 }
 0x36f   : > { %v3033_v28 = vpop.f32.mrf.mxu1 }
 0x370   : > { %v2581_v58 = vsub.f32 0.0, %v2578_v29 }
 0x372   : > { %v2582_v52 = vmul.f32 1.442695, %v2581_v58 }
 0x374   : > { %3111 = vpow2.f32 %v2582_v52 }
 0x381   : > { %v3112_v41 = vpop.eup %3111 }
 0x382   : > { %v2584_v34 = vadd.f32 1.0, %v3112_v41 }
 0x384   : > { %3113 = vrcp.f32 %v2584_v34 }
 0x391   : > { %v3114_v18 = vpop.eup %3113 }
 0x392   : > { %v2587_v39 = vmul.f32 %v3114_v18, %v2578_v29 }
 0x394   : > { %v6587_v46 = vrot.slane %v2587_v39, %v2590_v10 }
 0x396   : > { %v2623_v17 = vmul.f32 %v6587_v46, %v2353_v49  ;;  %v2607_v50 = vmul.f32 %v6587_v46, %v6461_v32  ;;  %v2622_v25 = vmul.f32 %v6587_v46, %v2352_v37  ;;  %v2606_v49 = vmul.f32 %v6587_v46, %v6451_v11 }
 0x397   : > { %v2621_v32 = vmul.f32 %v6587_v46, %v6547_v61  ;;  %v2605_v37 = vmul.f32 %v6587_v46, %v6441_v22  ;;  %v2620_v5 = vmul.f32 %v6587_v46, %v6543_v36  ;;  %v2604_v11 = vmul.f32 %v6587_v46, %v6431_v56 }
 0x398   : > { %2988 = vmatprep.subr.msk.mxu0 %vm331_vm0, %v2623_v17  ;;  %3034 = vmatprep.subr.msk.mxu1 %vm331_vm0, %v2623_v17  ;;  %v2619_v61 = vmul.f32 %v6587_v46, %v6539_v3  ;;  %v2603_v22 = vmul.f32 %v6587_v46, %v6421_v53  ;;  %v2618_v36 = vmul.f32 %v6587_v46, %v6535_v55 }
 0x399   : > { %2989 = vmatpush3.xpose.msk.msra.mxu0 %vm331_vm0, %v2607_v50  ;;  %3050 = vmatpush3.xpose.msk.msra.mxu1 %vm331_vm0, %v2607_v50  ;;  %v2602_v56 = vmul.f32 %v6587_v46, %v6411_v59  ;;  %v2617_v3 = vmul.f32 %v6587_v46, %v6531_v43  ;;  %v2601_v53 = vmul.f32 %v6587_v46, %v6401_v12 }
 0x39a   : > { %2990 = vmatprep.subr.msk.mxu0 %vm331_vm0, %v2622_v25  ;;  %3035 = vmatprep.subr.msk.mxu1 %vm331_vm0, %v2622_v25  ;;  %v2616_v55 = vmul.f32 %v6587_v46, %v6526_v57  ;;  %v2600_v59 = vmul.f32 %v6587_v46, %v6391_v27  ;;  %v2615_v43 = vmul.f32 %v6587_v46, %v6521_v54 }
 0x39b   : > { %v2599_v12 = vmul.f32 %v6587_v46, %v6381_v35  ;;  %v2614_v57 = vmul.f32 %v6587_v46, %v6516_v62  ;;  %v2598_v27 = vmul.f32 %v6587_v46, %v6371_v13  ;;  %v2613_v54 = vmul.f32 %v6587_v46, %v6511_v48 }
 0x39c   : > { %v2597_v35 = vmul.f32 %v6587_v46, %v6361_v15  ;;  %v2612_v62 = vmul.f32 %v6587_v46, %v6504_v40  ;;  %v2596_v13 = vmul.f32 %v6587_v46, %v6351_v33  ;;  %v2611_v48 = vmul.f32 %v6587_v46, %v6497_v42 }
 0x39d   : > { %2991 = vmatpush3.xpose.msk.msra.mxu0 %vm331_vm0, %v2606_v49  ;;  %3051 = vmatpush3.xpose.msk.msra.mxu1 %vm331_vm0, %v2606_v49  ;;  %v2595_v15 = vmul.f32 %v6587_v46, %v6344_v26  ;;  %v2610_v40 = vmul.f32 %v6587_v46, %v6489_v9  ;;  %v2594_v33 = vmul.f32 %v6587_v46, %v6341_v0 }
 0x39e   : > { %2992 = vmatprep.subr.msk.mxu0 %vm331_vm0, %v2621_v32  ;;  %3036 = vmatprep.subr.msk.mxu1 %vm331_vm0, %v2621_v32  ;;  %v2609_v42 = vmul.f32 %v6587_v46, %v6481_v24  ;;  %v2593_v26 = vmul.f32 %v6587_v46, %v6332_v51  ;;  %v2608_v9 = vmul.f32 %v6587_v46, %v6471_v16  ;;  %v2631_v51 = vpop.permute.xlu0 %2630 }
 0x39f   : > { %v2592_v0 = vmul.f32 %v6587_v46, %v6330_v45 }
 0x3a1   : > { %2993 = vmatpush3.xpose.msk.msra.mxu0 %vm331_vm0, %v2605_v37  ;;  %3052 = vmatpush3.xpose.msk.msra.mxu1 %vm331_vm0, %v2605_v37 }
 0x3a2   : > { %2994 = vmatprep.subr.msk.mxu0 %vm331_vm0, %v2620_v5  ;;  %3037 = vmatprep.subr.msk.mxu1 %vm331_vm0, %v2620_v5  ;;  %v2636_v16 = vpop.permute.xlu0 %2635 }
 0x3a5   : > { %2995 = vmatpush3.xpose.msk.msra.mxu0 %vm331_vm0, %v2604_v11  ;;  %3053 = vmatpush3.xpose.msk.msra.mxu1 %vm331_vm0, %v2604_v11 }
 0x3a6   : > { %2996 = vmatprep.subr.msk.mxu0 %vm331_vm0, %v2619_v61  ;;  %3038 = vmatprep.subr.msk.mxu1 %vm331_vm0, %v2619_v61 }
 0x3a9   : > { %2997 = vmatpush3.xpose.msk.msra.mxu0 %vm331_vm0, %v2603_v22  ;;  %3054 = vmatpush3.xpose.msk.msra.mxu1 %vm331_vm0, %v2603_v22 }
 0x3aa   : > { %2998 = vmatprep.subr.msk.mxu0 %vm331_vm0, %v2618_v36  ;;  %3039 = vmatprep.subr.msk.mxu1 %vm331_vm0, %v2618_v36 }
 0x3ad   : > { %2999 = vmatpush3.xpose.msk.msra.mxu0 %vm331_vm0, %v2602_v56  ;;  %3055 = vmatpush3.xpose.msk.msra.mxu1 %vm331_vm0, %v2602_v56 }
 0x3ae   : > { %3000 = vmatprep.subr.msk.mxu0 %vm331_vm0, %v2617_v3  ;;  %3040 = vmatprep.subr.msk.mxu1 %vm331_vm0, %v2617_v3 }
 0x3b1   : > { %3001 = vmatpush3.xpose.msk.msra.mxu0 %vm331_vm0, %v2601_v53  ;;  %3056 = vmatpush3.xpose.msk.msra.mxu1 %vm331_vm0, %v2601_v53 }
 0x3b2   : > { %3002 = vmatprep.subr.msk.mxu0 %vm331_vm0, %v2616_v55  ;;  %3041 = vmatprep.subr.msk.mxu1 %vm331_vm0, %v2616_v55 }
 0x3b5   : > { %3003 = vmatpush3.xpose.msk.msra.mxu0 %vm331_vm0, %v2600_v59  ;;  %3057 = vmatpush3.xpose.msk.msra.mxu1 %vm331_vm0, %v2600_v59 }
 0x3b6   : > { %3004 = vmatprep.subr.msk.mxu0 %vm331_vm0, %v2615_v43  ;;  %3042 = vmatprep.subr.msk.mxu1 %vm331_vm0, %v2615_v43 }
 0x3b9   : > { %3005 = vmatpush3.xpose.msk.msra.mxu0 %vm331_vm0, %v2599_v12  ;;  %3058 = vmatpush3.xpose.msk.msra.mxu1 %vm331_vm0, %v2599_v12 }
 0x3ba   : > { %3006 = vmatprep.subr.msk.mxu0 %vm331_vm0, %v2614_v57  ;;  %3043 = vmatprep.subr.msk.mxu1 %vm331_vm0, %v2614_v57 }
 0x3bd   : > { %3007 = vmatpush3.xpose.msk.msra.mxu0 %vm331_vm0, %v2598_v27  ;;  %3059 = vmatpush3.xpose.msk.msra.mxu1 %vm331_vm0, %v2598_v27 }
 0x3be   : > { %3008 = vmatprep.subr.msk.mxu0 %vm331_vm0, %v2613_v54  ;;  %3044 = vmatprep.subr.msk.mxu1 %vm331_vm0, %v2613_v54 }
 0x3c1   : > { %3009 = vmatpush3.xpose.msk.msra.mxu0 %vm331_vm0, %v2597_v35  ;;  %3060 = vmatpush3.xpose.msk.msra.mxu1 %vm331_vm0, %v2597_v35 }
 0x3c2   : > { %3010 = vmatprep.subr.msk.mxu0 %vm331_vm0, %v2612_v62  ;;  %3045 = vmatprep.subr.msk.mxu1 %vm331_vm0, %v2612_v62 }
 0x3c5   : > { %3011 = vmatpush3.xpose.msk.msra.mxu0 %vm331_vm0, %v2596_v13  ;;  %3061 = vmatpush3.xpose.msk.msra.mxu1 %vm331_vm0, %v2596_v13 }
 0x3c6   : > { %3012 = vmatprep.subr.msk.mxu0 %vm331_vm0, %v2611_v48  ;;  %3046 = vmatprep.subr.msk.mxu1 %vm331_vm0, %v2611_v48 }
 0x3c9   : > { %3013 = vmatpush3.xpose.msk.msra.mxu0 %vm331_vm0, %v2595_v15  ;;  %3062 = vmatpush3.xpose.msk.msra.mxu1 %vm331_vm0, %v2595_v15 }
 0x3ca   : > { %3014 = vmatprep.subr.msk.mxu0 %vm331_vm0, %v2610_v40  ;;  %3047 = vmatprep.subr.msk.mxu1 %vm331_vm0, %v2610_v40 }
 0x3cd   : > { %3015 = vmatpush3.xpose.msk.msra.mxu0 %vm331_vm0, %v2594_v33  ;;  %3063 = vmatpush3.xpose.msk.msra.mxu1 %vm331_vm0, %v2594_v33 }
 0x3ce   : > { %3016 = vmatprep.subr.msk.mxu0 %vm331_vm0, %v2609_v42  ;;  %3048 = vmatprep.subr.msk.mxu1 %vm331_vm0, %v2609_v42 }
 0x3d1   : > { %3017 = vmatpush3.xpose.msk.msra.mxu0 %vm331_vm0, %v2593_v26  ;;  %3064 = vmatpush3.xpose.msk.msra.mxu1 %vm331_vm0, %v2593_v26 }
 0x3d2   : > { %3018 = vmatprep.subr.msk.mxu0 %vm331_vm0, %v2608_v9  ;;  %3049 = vmatprep.subr.msk.mxu1 %vm331_vm0, %v2608_v9 }
 0x3d5   : > { %3019 = vmatpush3.xpose.msk.msra.mxu0 %vm331_vm0, %v2592_v0  ;;  %3065 = vmatpush3.xpose.msk.msra.mxu1 %vm331_vm0, %v2592_v0 }
 0x3d8   : > { %3021 = vmatmul.mubr.msk.f32.vlgmr.msra.gmra.mxu0 %vm331_vm0, %v6567_v47  ;;  %3023 = vmatmul.mubr.msk.f32.vlgmr.msra.gmra.mxu1 %vm331_vm0, %v6572_v7 }
 0x498   : > { %v2806_v24 = vpop.f32.mrf.mxu0  ;;  %v2812_v21 = vpop.f32.mrf.mxu1 }
 0x499   : > { %v2807_v23 = vadd.f32 %v2806_v24, %v2631_v51  ;;  %v2813_v1 = vadd.f32 %v2812_v21, %v2636_v16 }
 0x49a   : > { %v2808_v4 = vpop.f32.mrf.mxu0  ;;  %v2814_v44 = vpop.f32.mrf.mxu1 }
 0x49b   : > { %v2817_v45 = vadd.f32 3.0, %v2807_v23  ;;  %v2819_v14 = vadd.f32 3.0, %v2813_v1  ;;  %v2809_v31 = vadd.f32 %v2808_v4, %v2631_v51  ;;  %v2815_v6 = vadd.f32 %v2814_v44, %v2636_v16 }
 0x49d   : > { %v2821_v8 = vmax.f32 %v2817_v45, 0.0  ;;  %v2823_v47 = vmax.f32 %v2819_v14, 0.0  ;;  %v2818_v20 = vadd.f32 3.0, %v2809_v31  ;;  %v2820_v7 = vadd.f32 3.0, %v2815_v6 }
 0x49f   : > { %v2825_v30 = vmin.f32 %v2821_v8, 6.0  ;;  %v2827_v2 = vmin.f32 %v2823_v47, 6.0  ;;  %v2822_v60 = vmax.f32 %v2818_v20, 0.0  ;;  %v2824_v63 = vmax.f32 %v2820_v7, 0.0 }
 0x4a1   : > { %v2829_v29 = vmul.f32 %v2825_v30, %v2807_v23  ;;  %v2831_v28 = vmul.f32 %v2827_v2, %v2813_v1  ;;  %v2826_v58 = vmin.f32 %v2822_v60, 6.0  ;;  %v2828_v52 = vmin.f32 %v2824_v63, 6.0 }
 0x4a3   : > { %v2833_v41 = vmul.f32 0.16666667, %v2829_v29  ;;  %v2835_v34 = vmul.f32 0.16666667, %v2831_v28  ;;  %v2830_v38 = vmul.f32 %v2826_v58, %v2809_v31  ;;  %v2832_v19 = vmul.f32 %v2828_v52, %v2815_v6 }
 0x4a5   : > { %2837 = vst [vmem:[%s325_s28] sm:$0xff] %v2833_v41  ;;  %2839 = vst [vmem:[%s325_s28 + $0x10] sm:$0xff] %v2835_v34  ;;  %v2834_v10 = vmul.f32 0.16666667, %v2830_v38  ;;  %v2836_v18 = vmul.f32 0.16666667, %v2832_v19 }
 0x4a7   : > { %2838 = vst [vmem:[%s325_s28 + $0x8] sm:$0xff] %v2834_v10  ;;  %2840 = vst [vmem:[%s325_s28 + $0x18] sm:$0xff] %v2836_v18 }
 0x4a8   : > { %3176 = shalt.err (!%p3173_p3)
}
 0x4a9   : > { %s3177_s26 = scalar_lea.hbm %s6728_s21, 512  ;;  %s3181_s14 = scalar_lea.hbm %s6781_s9, 1024 }
 0x4aa   : > { %p3178_p4 = scmp.ne.s32.totalorder %s6728_s21, %s3177_s26  ;;  %p3182_p9 = scmp.lt.s32.totalorder %s6728_s21, %s6781_s9 }
 0x4ab   : > { %p3183_p10 = scmp.lt.s32.totalorder %s3181_s14, %s3177_s26 }
 0x4ac   : > { %p3179_p7 = pnand %p3178_p4, %p3319_p5 }
 0x4ad   : > { %p3184_p11 = por %p3183_p10, %p3182_p9 }
 0x4ae   : > { %p3180_p8 = pneg %p3179_p7 }
 0x4b0   : > { %p3185_p12 = pnand %p3184_p11, %p3180_p8 }
 0x4b2   : > { %3188 = shalt.err (!%p3185_p12)
}
 0x4b3   : > { %s3229_s22 = smov 256   ;;  %s3230_s23 = smov 16  }
 0x4b4   : > { %3066 = dma.vmem_to_hbm [thread:$0]  (%p3319_p5), %s6723_s29, 512, %s6728_s21, %s6732_s13, %s3229_s22, %s3229_s22, %s3230_s23  }
 0x4b5 PF: > { %p3072_p13 = scmp.ge.s32.totalorder %s3223_s12, 2  ;;  %s2870_s24 = sand.u32 1, %s3211_s30  }
 0x4b6   : > { %s2871_s25 = scalar_lea.sflag [#allocation4], %s2870_s24 }
 0x4b7   : > { %p3069_p0 = pnand %p3072_p13, %p3323_p6 }
 0x4b9   : > { %p3070_p1 = pneg %p3069_p0 }
 0x4bb   : > { %3206 = dma.done.wait (%p3070_p1), %s2871_s25, 512  }
 0x4bc   : > { %3208 = vsyncadd (%p3070_p1), %s2871_s25, 4294966784  ;;  %p19_p2 = scmp.ge.s32.totalorder %s3306_s15, 4   ;;  %s7654_s30 = smov %s3215_s10 }
 0x4bd   : > { %s7655_s10 = smov %s3219_s11  ;;  %s7656_s11 = smov %s3317_s18 }
 0x4be   : > { %s7657_s12 = smov %s3306_s15  ;;  %21 = sbr.rel (!%p19_p2) target bundleno = 3 (0x3), region = 94 }
 0x4c3   :  { %2876 = vsyncpa [#allocation4], 1 }
 0x4c4   :  { %2878 = vsyncpa [#allocation4 + $0x1], 1 }

</bundles_post_ra>
